<compile_context>
chip_gen: v7x
topology: tpu7x:2x2x1
jax: 0.10.0
libtpu: 0.0.40
codegen_flags: <defaults>
</compile_context>

<pallas_src>
import jax
import jax.numpy as jnp
import numpy as np
from jax import lax
from jax.experimental import pallas as pl
from jax.experimental.pallas import tpu as pltpu


_INV_SQRT2 = 0.7071067811865476


def _gelu_exact(x):
    # torch.nn.GELU() default = exact erf formulation
    return 0.5 * x * (1.0 + lax.erf(x * _INV_SQRT2))


def _round_up(x, m):
    return (x + m - 1) // m * m


# ----------------------------- Pallas kernel ---------------------------------

def _pwff_kernel(x_ref, w_in_ref, b_in_ref, w_out_ref, b_out_ref, o_ref):
    # x_ref: (TR, Hp) bf16, w_in_ref: (Hp, Fp) bf16, b_in_ref: (1, Fp) f32,
    # w_out_ref: (Fp, Hp) bf16, b_out_ref: (1, Hp) f32, o_ref: (TR, Hp) f32.
    x = x_ref[...]
    # Linear 1 (MXU, bf16 operands, f32 accumulation) + bias
    h = jnp.dot(x, w_in_ref[...], preferred_element_type=jnp.float32)
    h = _gelu_exact(h + b_in_ref[...])                      # f32, lane-dense (TR, Fp)
    # Linear 2
    y = jnp.dot(h.astype(w_out_ref.dtype), w_out_ref[...],
                preferred_element_type=jnp.float32)
    o_ref[...] = (y + b_out_ref[...]).astype(o_ref.dtype)


# ------------------------------ wrapper ---------------------------------------

def position_wise_feed_forward(h_V, w_in, b_in, w_out, b_out, *,
                               act_dtype=jnp.bfloat16, max_tile_rows=1024):
    """Fused Linear->GELU->Linear on TPU.

    h_V:   [..., num_hidden]  (float32)
    w_in:  [num_hidden, num_ff]   == torch W_in.weight.T
    b_in:  [num_ff]
    w_out: [num_ff, num_hidden]   == torch W_out.weight.T
    b_out: [num_hidden]
    """
    orig_shape = h_V.shape
    H = orig_shape[-1]
    F = w_in.shape[-1]
    out_dtype = h_V.dtype

    x = h_V.reshape(-1, H).astype(jnp.float32)
    BN = x.shape[0]

    # Pad feature dims to lane multiples (exact: GELU(0)=0, zero weight pads).
    Hp, Fp = _round_up(H, 128), _round_up(F, 128)
    x = jnp.pad(x, ((0, 0), (0, Hp - H)))
    w_in_p = jnp.pad(w_in.astype(jnp.float32), ((0, Hp - H), (0, Fp - F)))
    b_in_p = jnp.pad(b_in.astype(jnp.float32).reshape(1, F), ((0, 0), (0, Fp - F)))
    w_out_p = jnp.pad(w_out.astype(jnp.float32), ((0, Fp - F), (0, Hp - H)))
    b_out_p = jnp.pad(b_out.astype(jnp.float32).reshape(1, H), ((0, 0), (0, Hp - H)))

    # Row tile: large (amortize ~0.35us/grid-step), but aim for >=2 tiles so the
    # "parallel" axis can feed both v7x TensorCores, with a small padded tail.
    tile = min(max_tile_rows, max(128, _round_up(pl.cdiv(BN, 2), 8)))
    n_tiles = pl.cdiv(BN, tile)
    BN_pad = n_tiles * tile
    if BN_pad != BN:
        x = jnp.pad(x, ((0, BN_pad - BN), (0, 0)))

    # bf16 operands for the MXU; accumulation stays f32 inside the kernel.
    x_q = x.astype(act_dtype)
    w_in_q = w_in_p.astype(act_dtype)
    w_out_q = w_out_p.astype(act_dtype)

    out = pl.pallas_call(
        _pwff_kernel,
        out_shape=jax.ShapeDtypeStruct((BN_pad, Hp), jnp.float32),
        grid_spec=pltpu.PrefetchScalarGridSpec(
            num_scalar_prefetch=0,
            grid=(n_tiles,),
            in_specs=[
                pl.BlockSpec((tile, Hp), lambda i: (i, 0)),   # x (bf16, streamed)
                pl.BlockSpec((Hp, Fp), lambda i: (0, 0)),     # W_in  (resident)
                pl.BlockSpec((1, Fp), lambda i: (0, 0)),      # b_in  (resident)
                pl.BlockSpec((Fp, Hp), lambda i: (0, 0)),     # W_out (resident)
                pl.BlockSpec((1, Hp), lambda i: (0, 0)),      # b_out (resident)
            ],
            out_specs=pl.BlockSpec((tile, Hp), lambda i: (i, 0)),
        ),
        compiler_params=pltpu.CompilerParams(
            dimension_semantics=("parallel",),    # shard row tiles across v7x's 2 TCs
            vmem_limit_bytes=32 * 1024 * 1024),
    )(x_q, w_in_q, b_in_p, w_out_q, b_out_p)

    out = out[:BN, :H].astype(out_dtype)
    return out.reshape(orig_shape[:-1] + (H,))


# ------------------------------ reference -------------------------------------

def pwff_reference(h_V, w_in, b_in, w_out, b_out, act_dtype=jnp.float32):
    """Pure-JAX mirror of the PyTorch forward.  act_dtype=bfloat16 reproduces
    the kernel's operand quantization; float32 is the exact PyTorch math."""
    x = h_V.astype(act_dtype).astype(jnp.float32)
    wi = w_in.astype(act_dtype).astype(jnp.float32)
    wo = w_out.astype(act_dtype).astype(jnp.float32)
    h = x @ wi + b_in
    h = 0.5 * h * (1.0 + lax.erf(h * _INV_SQRT2))
    h = h.astype(act_dtype).astype(jnp.float32)
    return h @ wo + b_out


# --------------------------------- main ---------------------------------------

if __name__ == "__main__":
    # Small shapes consistent with the module's use in ProteinMPNN
    # (h_V: [B, N, num_hidden]); B*N deliberately NOT a tile multiple so the
    # cdiv + padding path is exercised, and hidden/ff are lane-aligned.
    B, N = 2, 300
    num_hidden, num_ff = 128, 512

    key = jax.random.PRNGKey(0)
    k0, k1, k2, k3, k4 = jax.random.split(key, 5)

    h_V = jax.random.normal(k0, (B, N, num_hidden), jnp.float32)
    # Weights stored as (in, out) == torch .weight.T
    w_in = jax.random.normal(k1, (num_hidden, num_ff), jnp.float32) / np.sqrt(num_hidden)
    b_in = 0.1 * jax.random.normal(k2, (num_ff,), jnp.float32)
    w_out = jax.random.normal(k3, (num_ff, num_hidden), jnp.float32) / np.sqrt(num_ff)
    b_out = 0.1 * jax.random.normal(k4, (num_hidden,), jnp.float32)

    out = position_wise_feed_forward(h_V, w_in, b_in, w_out, b_out)
    jax.block_until_ready(out)

    # Tight check vs. a reference using the same bf16 operand quantization.
    ref_q = pwff_reference(h_V, w_in, b_in, w_out, b_out, act_dtype=jnp.bfloat16)
    np.testing.assert_allclose(np.asarray(out), np.asarray(ref_q),
                               rtol=2e-3, atol=2e-3)

    # Loose check vs. the exact f32 PyTorch math (bf16-operand quantization error).
    ref_f32 = pwff_reference(h_V, w_in, b_in, w_out, b_out, act_dtype=jnp.float32)
    np.testing.assert_allclose(np.asarray(out), np.asarray(ref_f32),
                               rtol=6e-2, atol=6e-2)

    print("KERNEL_OK")
</pallas_src>

<mosaic_0001>
module attributes {stable_mosaic.version = 11 : i64} {
  func.func @_pwff_kernel(%arg0: i32, %arg1: memref<304x128xbf16, #tpu.memory_space<vmem>>, %arg2: memref<128x512xbf16, #tpu.memory_space<vmem>>, %arg3: memref<1x512xf32, #tpu.memory_space<vmem>>, %arg4: memref<512x128xbf16, #tpu.memory_space<vmem>>, %arg5: memref<1x128xf32, #tpu.memory_space<vmem>>, %arg6: memref<304x128xf32, #tpu.memory_space<vmem>>) attributes {dimension_semantics = [#tpu.dimension_semantics<parallel>], iteration_bounds = array<i64: 2>, scalar_prefetch = 0 : i64, scratch_operands = 0 : i64, tpu.core_type = #tpu.core_type<tc>, window_params = [{transform_indices = @transform_0, window_bounds = array<i64: 304, 128>}, {pipeline_mode = #tpu.pipeline_mode<synchronous>, transform_indices = @transform_1, window_bounds = array<i64: 128, 512>}, {pipeline_mode = #tpu.pipeline_mode<synchronous>, transform_indices = @transform_2, window_bounds = array<i64: 1, 512>}, {pipeline_mode = #tpu.pipeline_mode<synchronous>, transform_indices = @transform_3, window_bounds = array<i64: 512, 128>}, {pipeline_mode = #tpu.pipeline_mode<synchronous>, transform_indices = @transform_4, window_bounds = array<i64: 1, 128>}, {transform_indices = @transform_5, window_bounds = array<i64: 304, 128>}]} {
    %c0 = arith.constant 0 : index
    %c0_0 = arith.constant 0 : index
    %0 = vector.load %arg1[%c0, %c0_0] : memref<304x128xbf16, #tpu.memory_space<vmem>>, vector<304x128xbf16>
    %c0_1 = arith.constant 0 : index
    %c0_2 = arith.constant 0 : index
    %1 = vector.load %arg2[%c0_1, %c0_2] : memref<128x512xbf16, #tpu.memory_space<vmem>>, vector<128x512xbf16>
    %cst = arith.constant dense<0.000000e+00> : vector<304x512xf32>
    %2 = tpu.matmul %0, %1, %cst {dimension_numbers = #tpu.dot_dimension_numbers<[1], [0], [0], [1], [0, 0, 1, 1], [], []>} : vector<304x128xbf16>, vector<128x512xbf16>, vector<304x512xf32> -> vector<304x512xf32>
    %c0_3 = arith.constant 0 : index
    %c0_4 = arith.constant 0 : index
    %3 = vector.load %arg3[%c0_3, %c0_4] : memref<1x512xf32, #tpu.memory_space<vmem>>, vector<1x512xf32>
    %4 = vector.broadcast %3 : vector<1x512xf32> to vector<304x512xf32>
    %5 = arith.addf %2, %4 : vector<304x512xf32>
    %cst_5 = arith.constant 5.000000e-01 : f32
    %6 = vector.broadcast %cst_5 : f32 to vector<304x512xf32>
    %7 = arith.mulf %6, %5 : vector<304x512xf32>
    %cst_6 = arith.constant 0.707106769 : f32
    %8 = vector.broadcast %cst_6 : f32 to vector<304x512xf32>
    %9 = arith.mulf %5, %8 : vector<304x512xf32>
    %10 = math.erf %9 : vector<304x512xf32>
    %cst_7 = arith.constant 1.000000e+00 : f32
    %11 = vector.broadcast %cst_7 : f32 to vector<304x512xf32>
    %12 = arith.addf %11, %10 : vector<304x512xf32>
    %13 = arith.mulf %7, %12 : vector<304x512xf32>
    %14 = arith.truncf %13 : vector<304x512xf32> to vector<304x512xbf16>
    %c0_8 = arith.constant 0 : index
    %c0_9 = arith.constant 0 : index
    %15 = vector.load %arg4[%c0_8, %c0_9] : memref<512x128xbf16, #tpu.memory_space<vmem>>, vector<512x128xbf16>
    %cst_10 = arith.constant dense<0.000000e+00> : vector<304x128xf32>
    %16 = tpu.matmul %14, %15, %cst_10 {dimension_numbers = #tpu.dot_dimension_numbers<[1], [0], [0], [1], [0, 0, 1, 1], [], []>} : vector<304x512xbf16>, vector<512x128xbf16>, vector<304x128xf32> -> vector<304x128xf32>
    %c0_11 = arith.constant 0 : index
    %c0_12 = arith.constant 0 : index
    %17 = vector.load %arg5[%c0_11, %c0_12] : memref<1x128xf32, #tpu.memory_space<vmem>>, vector<1x128xf32>
    %18 = vector.broadcast %17 : vector<1x128xf32> to vector<304x128xf32>
    %19 = arith.addf %16, %18 : vector<304x128xf32>
    %c0_13 = arith.constant 0 : index
    %c0_14 = arith.constant 0 : index
    %20 = vector.load %arg6[%c0_13, %c0_14] : memref<304x128xf32, #tpu.memory_space<vmem>>, vector<304x128xf32>
    tpu.vector_store %arg6[%c0_13, %c0_14], %19 {strides = array<i32>} : memref<304x128xf32, #tpu.memory_space<vmem>>, vector<304x128xf32>,
    return
  }
  func.func @transform_0(%arg0: i32) -> (i32, i32) {
    %c0_i32 = arith.constant 0 : i32
    %c0_i32_0 = arith.constant 0 : i32
    return %arg0, %c0_i32 : i32, i32
  }
  func.func @transform_1(%arg0: i32) -> (i32, i32) {
    %c0_i32 = arith.constant 0 : i32
    %c0_i32_0 = arith.constant 0 : i32
    %c0_i32_1 = arith.constant 0 : i32
    return %c0_i32, %c0_i32_0 : i32, i32
  }
  func.func @transform_2(%arg0: i32) -> (i32, i32) {
    %c0_i32 = arith.constant 0 : i32
    %c0_i32_0 = arith.constant 0 : i32
    %c0_i32_1 = arith.constant 0 : i32
    return %c0_i32, %c0_i32_0 : i32, i32
  }
  func.func @transform_3(%arg0: i32) -> (i32, i32) {
    %c0_i32 = arith.constant 0 : i32
    %c0_i32_0 = arith.constant 0 : i32
    %c0_i32_1 = arith.constant 0 : i32
    return %c0_i32, %c0_i32_0 : i32, i32
  }
  func.func @transform_4(%arg0: i32) -> (i32, i32) {
    %c0_i32 = arith.constant 0 : i32
    %c0_i32_0 = arith.constant 0 : i32
    %c0_i32_1 = arith.constant 0 : i32
    return %c0_i32, %c0_i32_0 : i32, i32
  }
  func.func @transform_5(%arg0: i32) -> (i32, i32) {
    %c0_i32 = arith.constant 0 : i32
    %c0_i32_0 = arith.constant 0 : i32
    return %arg0, %c0_i32 : i32, i32
  }
}

</mosaic_0001>

<bundles_post_ra>
// kernel: tpu_custom_call.1
= control target key start
LH: loop header
LB: loop body
LE: loop exit
PB: predicated region body
PF: predicated region fallthrough
CT: control target
= control target key end

     0   :  { %10 = vsyncpa [#allocation3], 0  ;;  %s5361_s0 = inlined_call_operand.hbm [shape: bf16[608,128], index: 0, kind: input, shape index: {}]   ;;  %s5362_s1 = inlined_call_operand.hbm [shape: bf16[128,512], index: 1, kind: input, shape index: {}]   ;;  %s5363_s2 = inlined_call_operand.vmem [shape: f32[1,512], index: 2, kind: input, shape index: {}]   ;;  %s5364_s3 = inlined_call_operand.hbm [shape: bf16[512,128], index: 3, kind: input, shape index: {}]   ;;  %s5365_s4 = inlined_call_operand.vmem [shape: f32[1,128], index: 4, kind: input, shape index: {}]   ;;  %s5366_s5 = inlined_call_operand.hbm [shape: f32[608,128], index: 5, kind: output, shape index: {}]  }
   0x1   :  { %12 = vsyncpa [#allocation3 + $0x1], 0 }
   0x2   :  { %13 = vsyncpa [#allocation6], 0 }
   0x3   :  { %14 = vsyncpa [#allocation4], 0 }
   0x4   :  { %16 = vsyncpa [#allocation4 + $0x1], 0  ;;  %s3553_s18 = smov 0   ;;  %s3555_s19 = smov 0  }
   0x5   :  { %s3557_s20 = smov 0   ;;  %s3559_s21 = smov 0  }
   0x6 LB: > { %s3574_s22 = sadd.s32 4294967295, %s3510_s21   ;;  %s2700_s23 = sadd.s32 4294967294, %s3510_s21   ;;  %s3510_s21 = sphi %s3559_s21, %s5512_s21   ;;  %s3506_s20 = sphi %s3557_s20, %s5511_s20   ;;  %s3502_s19 = sphi %s3555_s19, %s5510_s19   ;;  %s3498_s18 = sphi %s3553_s18, %s5509_s18  }
   0x7   : > { %p42_p0 = scmp.ne.s32.totalorder %s3502_s19, %s3498_s18  ;;  %p5367_p1 = scmp.eq.s32.totalorder %s3574_s22, 0 }
   0x8   : > { %p156_p3 = scmp.eq.s32.totalorder %s2700_s23, 1  ;;  %p2701_p5 = scmp.ge.s32.totalorder %s3510_s21, 1 }
   0x9   : > { %p3583_p4 = por %p5367_p1, %p42_p0  ;;  %p163_p7 = scmp.lt.s32.totalorder %s3510_s21, 3 }
   0xa   : > { %p3588_p6 = por %p156_p3, %p42_p0  ;;  %s3512_s27 = smov [#allocation5]  }
   0xb   : > { %s5371_s24 = scalar_select %p3583_p4, 1, 0 }
   0xc   : > { %s5372_s25 = scalar_select %p3588_p6, 1, 0 }
   0xd   : > { %p3593_p8 = pnand %p2701_p5, %p163_p7  ;;  %s175_s28 = sshll.u32 %s3512_s27, 4  ;;  %s3597_s28 = int_to_ptr.vmem [resolvable:$true] %s175_s28 }
   0xe   : > { %s3513_s30 = smov [#allocation7]   ;;  %s3354_s9 = scalar_lea.hbm %s5362_s1, 4096 }
   0xf   : > { %p2889_p9 = pneg %p3593_p8  ;;  %s191_s6 = sshll.u32 %s3513_s30, 4  ;;  %s3608_s6 = int_to_ptr.vmem [resolvable:$true] %s191_s6 }
  0x10   : > { %p3355_p12 = scmp.ne.s32.totalorder %s5362_s1, %s3354_s9  ;;  %p3361_p5 = scmp.lt.u32.totalorder %s3354_s9, %s5362_s1 }
  0x11   : > { %p3604_p11 = pnand %p2889_p9, %p5367_p1 }
  0x13   : > { %p3356_p13 = pneg %p3604_p11 }
  0x15   : > { %p3357_p0 = pnand %p3356_p13, %p3355_p12 }
  0x17   : > { %p3358_p3 = pneg %p3357_p0 }
  0x19   : > { %p3363_p7 = pnand %p3361_p5, %p3358_p3 }
  0x1b   : > { %3366 = shalt.err (!%p3363_p7)
}
  0x1c   : > { %s3367_s14 = scalar_lea.vmem %s3597_s28, 4096  ;;  %p3375_p2 = scmp.lt.s32.totalorder %s3597_s28, %s3597_s28 }
  0x1d   : > { %p3368_p9 = scmp.ne.s32.totalorder %s3597_s28, %s3367_s14  ;;  %p3376_p12 = scmp.lt.s32.totalorder %s3367_s14, %s3367_s14 }
  0x1f   : > { %p3370_p10 = pnand %p3368_p9, %p3356_p13  ;;  %p3377_p0 = por %p3376_p12, %p3375_p2 }
  0x21   : > { %p3371_p1 = pneg %p3370_p10 }
  0x23   : > { %p3378_p6 = pnand %p3377_p0, %p3371_p1 }
  0x25   : > { %3381 = shalt.err (!%p3378_p6)
}
  0x26   : > { %s3514_s15 = smov 256   ;;  %s3515_s16 = smov 16  }
  0x27   : > { %2892 = dma.hbm_to_vmem [thread:$0]  (!%p3604_p11), %s5362_s1, 4096, %s3597_s28, [#allocation6], %s3514_s15, %s3514_s15, %s3515_s16  }
  0x28   : > { %s3382_s7 = scalar_lea.hbm %s5364_s3, 4096 }
  0x29   : > { %p3383_p2 = scmp.ne.s32.totalorder %s5364_s3, %s3382_s7  ;;  %p3389_p10 = scmp.lt.u32.totalorder %s3382_s7, %s5364_s3 }
  0x2b   : > { %p3385_p1 = pnand %p3383_p2, %p3356_p13 }
  0x2d   : > { %p3386_p6 = pneg %p3385_p1 }
  0x2f   : > { %p3391_p3 = pnand %p3389_p10, %p3386_p6 }
  0x31   : > { %3394 = shalt.err (!%p3391_p3)
}
  0x32   : > { %s3395_s28 = scalar_lea.vmem %s3608_s6, 4096  ;;  %p3403_p12 = scmp.lt.s32.totalorder %s3608_s6, %s3608_s6 }
  0x33   : > { %p3396_p5 = scmp.ne.s32.totalorder %s3608_s6, %s3395_s28  ;;  %p3404_p0 = scmp.lt.s32.totalorder %s3395_s28, %s3395_s28 }
  0x35   : > { %p3398_p7 = pnand %p3396_p5, %p3356_p13  ;;  %p3405_p2 = por %p3404_p0, %p3403_p12 }
  0x37   : > { %p3399_p9 = pneg %p3398_p7 }
  0x39   : > { %p3406_p1 = pnand %p3405_p2, %p3399_p9 }
  0x3b   : > { %3409 = shalt.err (!%p3406_p1)
}
  0x3c   : > { %s5368_s12 = smov 64   ;;  %s3517_s13 = smov 4  }
  0x3d   : > { %2895 = dma.hbm_to_vmem [thread:$0]  (!%p3604_p11), %s5364_s3, 4096, %s3608_s6, [#allocation6], %s5368_s12, %s5368_s12, %s3517_s13  }
  0x3e   : > { %s3666_s16 = sadd.s32 1, %s3510_s21   ;;  %s29_s23 = sadd.s32 1, %s3506_s20 }
  0x3f   : > { %s26_s17 = ssub.s32 %s3510_s21, %s3666_s16  ;;  %p36_p6 = scmp.ne.s32.totalorder %s3506_s20, %s3502_s19 }
  0x40   : > { %p27_p13 = scmp.eq.s32.totalorder %s26_s17, 0  ;;  %p37_p10 = scmp.eq.s32.totalorder %s3510_s21, 0 }
  0x41   : > { %p5375_p5 = scmp.eq.s32.totalorder %s3574_s22, 1  ;;  %p2906_p9 = scmp.lt.s32.totalorder %s3510_s21, 2 }
  0x42   : > { %s3675_s27 = scalar_select %p27_p13, %s3506_s20, %s29_s23  }
  0x43   : > { %p38_p3 = por %p37_p10, %p36_p6  ;;  %p3679_p7 = por %p5375_p5, %p36_p6 }
  0x44   : > { %s208_s30 = sand.u32 1, %s3506_s20   ;;  %s2796_s6 = smul.u32 2432, %s3510_s21 }
  0x45   : > { %s5376_s29 = scalar_select %p3679_p7, 1, 0 }
  0x46   : > { %s2874_s7 = smul.u32 152, %s208_s30  ;;  %p3686_p11 = pnand %p2906_p9, %p38_p3 }
  0x47   : > { %s3693_s11 = scalar_lea.hbm %s5361_s0, %s2796_s6  ;;  %s3697_s15 = scalar_lea.sflag [#allocation3], %s208_s30 }
  0x48   : > { %s212_s28 = scalar_lea.vmem [#allocation2], %s2874_s7  ;;  %s3410_s17 = scalar_lea.hbm %s3693_s11, 2432 }
  0x49   : > { %s219_s14 = sshll.u32 %s212_s28, 4  ;;  %p3411_p12 = scmp.ne.s32.totalorder %s3693_s11, %s3410_s17  ;;  %s3695_s14 = int_to_ptr.vmem [resolvable:$true] %s219_s14 }
  0x4a   : > { %p3412_p0 = pneg %p3686_p11  ;;  %s3415_s9 = scalar_lea.hbm %s5361_s0, 4864 }
  0x4b   : > { %p3416_p13 = scmp.lt.u32.totalorder %s3693_s11, %s5361_s0  ;;  %p3417_p6 = scmp.lt.u32.totalorder %s3415_s9, %s3410_s17 }
  0x4c   : > { %p3413_p2 = pnand %p3412_p0, %p3411_p12  ;;  %p3419_p3 = scmp.lt.u32.totalorder %s3410_s17, %s3693_s11 }
  0x4d   : > { %p3418_p10 = por %p3417_p6, %p3416_p13 }
  0x4e   : > { %p3414_p1 = pneg %p3413_p2 }
  0x4f   : > { %p3420_p5 = por %p3419_p3, %p3418_p10 }
  0x51   : > { %p3421_p9 = pnand %p3420_p5, %p3414_p1 }
  0x53   : > { %3424 = shalt.err (!%p3421_p9)
}
  0x54   : > { %s3425_s30 = scalar_lea.vmem %s3695_s14, 2432  ;;  %s3518_s7 = smov [#allocation2]  }
  0x55   : > { %p3426_p12 = scmp.ne.s32.totalorder %s3695_s14, %s3425_s30  ;;  %s3430_s28 = sshll.u32 %s3518_s7, 4  ;;  %s3431_s28 = int_to_ptr.vmem [resolvable:$false] %s3430_s28 }
  0x56   : > { %s3432_s12 = scalar_lea.vmem %s3431_s28, 4864  ;;  %p3433_p4 = scmp.lt.s32.totalorder %s3695_s14, %s3431_s28 }
  0x57   : > { %p3428_p2 = pnand %p3426_p12, %p3412_p0  ;;  %p3434_p13 = scmp.lt.s32.totalorder %s3432_s12, %s3425_s30 }
  0x59   : > { %p3429_p7 = pneg %p3428_p2  ;;  %p3435_p6 = por %p3434_p13, %p3433_p4 }
  0x5b   : > { %p3436_p10 = pnand %p3435_p6, %p3429_p7 }
  0x5d   : > { %3439 = shalt.err (!%p3436_p10)
}
  0x5e   : > { %s5378_s17 = smov 64   ;;  %231 = sbr.rel (%p3593_p8) target bundleno = 848 (0x350), region = 40 }
  0x5f   : > { %2899 = dma.hbm_to_vmem [thread:$0]  (!%p3686_p11), %s3693_s11, 2432, %s3695_s14, %s3697_s15, %s5378_s17, %s5378_s17, %s3517_s13  }
  0x65   : > { %s3731_s23 = sand.u32 1, %s3502_s19   ;;  %p5379_p4 = scmp.ne.s32.totalorder %s5371_s24, 0 }
  0x66   : > { %s2875_s6 = smul.u32 152, %s3731_s23  ;;  %s234_s9 = scalar_lea.sflag [#allocation3], %s3731_s23 }
  0x68   : > { %s3735_s10 = scalar_lea.vmem [#allocation2], %s2875_s6 }
  0x69   : > { %3485 = dma.done.wait (%p5379_p4), %s234_s9, 2432  }
  0x6a   : > { %3487 = vsyncadd (%p5379_p4), %s234_s9, 4294964864  ;;  %p5380_p7 = scmp.eq.s32.totalorder %s3574_s22, 0 }
  0x6c   : > { %3489 = dma.done.wait (%p5380_p7), [#allocation6], 8192   ;;  %p5381_p8 = pmov %p5380_p7 }
  0x6d   : > { %v3519_v0 = vmov 0   ;;  %v2951_v1 = vld [vmem:[#allocation5 + $0x4] ss:$16 sps:$4 sm:$0xff]   ;;  %v2953_v2 = vld [vmem:[#allocation5 + $0xc] ss:$16 sps:$4 sm:$0xff]   ;;  %s2876_s11 = smul.u32 304, %s3731_s23 }
  0x6e   : > { %3491 = vsyncadd (%p5381_p8), [#allocation6], 4294959104  ;;  %673 = vmatprep.mubr.bf16.mxu0 %v3519_v0  ;;  %896 = vmatprep.mubr.bf16.mxu1 %v3519_v0  ;;  %v2955_v3 = vld [vmem:[#allocation5] ss:$16 sps:$4 sm:$0xff]   ;;  %v2956_v4 = vld [vmem:[#allocation5 + $0x8] ss:$16 sps:$4 sm:$0xff]  }
  0x6f   : > { %641 = vmatprep.subr.bf16.mxu0 %v2951_v1  ;;  %864 = vmatprep.subr.bf16.mxu1 %v2953_v2  ;;  %v2957_v5 = vld [vmem:[#allocation5 + $0x24] ss:$16 sps:$4 sm:$0xff]   ;;  %v2959_v6 = vld [vmem:[#allocation5 + $0x2c] ss:$16 sps:$4 sm:$0xff]   ;;  %v2961_v7 = vld [vmem:[#allocation5 + $0x20] ss:$16 sps:$4 sm:$0xff]  }
  0x70   : > { %642 = vmatpush1.bf16.msra.mxu0 %v2955_v3  ;;  %865 = vmatpush1.bf16.msra.mxu1 %v2956_v4  ;;  %v2962_v8 = vld [vmem:[#allocation5 + $0x28] ss:$16 sps:$4 sm:$0xff]   ;;  %v2963_v9 = vld [vmem:[#allocation5 + $0x44] ss:$16 sps:$4 sm:$0xff]   ;;  %v2965_v10 = vld [vmem:[#allocation5 + $0x4c] ss:$16 sps:$4 sm:$0xff]  }
  0x71   : > { %643 = vmatprep.subr.bf16.mxu0 %v2957_v5  ;;  %866 = vmatprep.subr.bf16.mxu1 %v2959_v6  ;;  %v2967_v11 = vld [vmem:[#allocation5 + $0x40] ss:$16 sps:$4 sm:$0xff]   ;;  %v2968_v12 = vld [vmem:[#allocation5 + $0x48] ss:$16 sps:$4 sm:$0xff]   ;;  %v2969_v13 = vld [vmem:[#allocation5 + $0x64] ss:$16 sps:$4 sm:$0xff]  }
  0x72   : > { %v2971_v14 = vld [vmem:[#allocation5 + $0x6c] ss:$16 sps:$4 sm:$0xff]   ;;  %v2973_v15 = vld [vmem:[#allocation5 + $0x60] ss:$16 sps:$4 sm:$0xff]   ;;  %v2974_v16 = vld [vmem:[#allocation5 + $0x68] ss:$16 sps:$4 sm:$0xff]  }
  0x73   : > { %v2975_v17 = vld [vmem:[#allocation5 + $0x84] ss:$16 sps:$4 sm:$0xff]   ;;  %v2977_v18 = vld [vmem:[#allocation5 + $0x8c] ss:$16 sps:$4 sm:$0xff]   ;;  %v2979_v19 = vld [vmem:[#allocation5 + $0x80] ss:$16 sps:$4 sm:$0xff]  }
  0x74   : > { %644 = vmatpush1.bf16.msra.mxu0 %v2961_v7  ;;  %867 = vmatpush1.bf16.msra.mxu1 %v2962_v8  ;;  %v2980_v20 = vld [vmem:[#allocation5 + $0x88] ss:$16 sps:$4 sm:$0xff]   ;;  %v2981_v21 = vld [vmem:[#allocation5 + $0xa4] ss:$16 sps:$4 sm:$0xff]   ;;  %v2983_v22 = vld [vmem:[#allocation5 + $0xac] ss:$16 sps:$4 sm:$0xff]  }
  0x75   : > { %645 = vmatprep.subr.bf16.mxu0 %v2963_v9  ;;  %868 = vmatprep.subr.bf16.mxu1 %v2965_v10  ;;  %v2985_v23 = vld [vmem:[#allocation5 + $0xa0] ss:$16 sps:$4 sm:$0xff]   ;;  %v2986_v24 = vld [vmem:[#allocation5 + $0xa8] ss:$16 sps:$4 sm:$0xff]   ;;  %v2987_v25 = vld [vmem:[#allocation5 + $0xc4] ss:$16 sps:$4 sm:$0xff]  }
  0x76   : > { %v2989_v26 = vld [vmem:[#allocation5 + $0xcc] ss:$16 sps:$4 sm:$0xff]   ;;  %v2991_v27 = vld [vmem:[#allocation5 + $0xc0] ss:$16 sps:$4 sm:$0xff]   ;;  %v2992_v28 = vld [vmem:[#allocation5 + $0xc8] ss:$16 sps:$4 sm:$0xff]  }
  0x77   : > { %v2993_v29 = vld [vmem:[#allocation5 + $0xe4] ss:$16 sps:$4 sm:$0xff]   ;;  %v2995_v30 = vld [vmem:[#allocation5 + $0xec] ss:$16 sps:$4 sm:$0xff]   ;;  %v2997_v31 = vld [vmem:[#allocation5 + $0xe0] ss:$16 sps:$4 sm:$0xff]  }
  0x78   : > { %646 = vmatpush1.bf16.msra.mxu0 %v2967_v11  ;;  %869 = vmatpush1.bf16.msra.mxu1 %v2968_v12  ;;  %v2998_v32 = vld [vmem:[#allocation5 + $0xe8] ss:$16 sps:$4 sm:$0xff]   ;;  %v3010_v34 = vld [vmem:[#allocation7] sm:$0xff]   ;;  %v3017_v39 = vld [vmem:[#allocation7 + $0x10] sm:$0xff]   ;;  %s5234_s14 = scalar_lea.vmem [#allocation8], %s2876_s11  ;;  %s2797_s15 = smul.u32 4864, %s3574_s22 }
  0x79   : > { %647 = vmatprep.subr.bf16.mxu0 %v2969_v13  ;;  %870 = vmatprep.subr.bf16.mxu1 %v2971_v14  ;;  %v2999_v33 = vld [vmem:[%s3735_s10] sm:$0xff]   ;;  %v3011_v35 = vld [vmem:[#allocation7 + $0x80] sm:$0xff]   ;;  %v3000_v38 = vld [vmem:[%s3735_s10 + $0x8] sm:$0xff]   ;;  %s2608_s30 = sshll.u32 %s5234_s14, 4  ;;  %s2595_s22 = scalar_lea.sflag [#allocation4], %s3731_s23  ;;  %s5316_s30 = int_to_ptr.vmem [resolvable:$true] %s2608_s30 }
  0x7a   : > { %v3013_v36 = vld [vmem:[#allocation7 + $0x8] sm:$0xff]   ;;  %v3018_v40 = vld [vmem:[#allocation7 + $0x90] sm:$0xff]   ;;  %v3020_v41 = vld [vmem:[#allocation7 + $0x18] sm:$0xff]   ;;  %s5313_s12 = scalar_lea.hbm %s5366_s5, %s2797_s15  ;;  %s3440_s17 = scalar_lea.vmem %s5316_s30, 4864 }
  0x7b   : > { %v3015_v37 = vld [vmem:[#allocation7 + $0x88] sm:$0xff]   ;;  %v3021_v42 = vld [vmem:[#allocation7 + $0x98] sm:$0xff]   ;;  %v3023_v44 = vld [vmem:[#allocation7 + $0x20] sm:$0xff]   ;;  %p3441_p11 = scmp.ne.s32.totalorder %s5316_s30, %s3440_s17  ;;  %p5506_p0 = scmp.ne.s32.totalorder %s5376_s29, 0 }
  0x7c   : > { %648 = vmatpush1.bf16.msra.mxu0 %v2973_v15  ;;  %871 = vmatpush1.bf16.msra.mxu1 %v2974_v16  ;;  %v3001_v43 = vld [vmem:[%s3735_s10 + $0x10] sm:$0xff]   ;;  %v3026_v46 = vld [vmem:[#allocation7 + $0x28] sm:$0xff]   ;;  %v3029_v49 = vld [vmem:[#allocation7 + $0x30] sm:$0xff]   ;;  %s3520_s6 = smov [#allocation8]  }
  0x7d   : > { %649 = vmatprep.subr.bf16.mxu0 %v2975_v17  ;;  %872 = vmatprep.subr.bf16.mxu1 %v2977_v18  ;;  %v3024_v45 = vld [vmem:[#allocation7 + $0xa0] sm:$0xff]   ;;  %v3027_v47 = vld [vmem:[#allocation7 + $0xa8] sm:$0xff]   ;;  %v3031_v50 = vld [vmem:[#allocation7 + $0xb0] sm:$0xff]   ;;  %p3442_p1 = pnand %p3441_p11, %p5506_p0  ;;  %s3444_s9 = sshll.u32 %s3520_s6, 4  ;;  %s3445_s9 = int_to_ptr.vmem [resolvable:$false] %s3444_s9 }
  0x7e   : > { %v3002_v48 = vld [vmem:[%s3735_s10 + $0x18] sm:$0xff]   ;;  %v3032_v51 = vld [vmem:[#allocation7 + $0x38] sm:$0xff]   ;;  %v3003_v53 = vld [vmem:[%s3735_s10 + $0x20] sm:$0xff]   ;;  %p3447_p5 = scmp.lt.s32.totalorder %s5316_s30, %s3445_s9 }
  0x7f   : > { %v3033_v52 = vld [vmem:[#allocation7 + $0xb8] sm:$0xff]   ;;  %v3034_v54 = vld [vmem:[#allocation7 + $0x40] sm:$0xff]   ;;  %v3036_v56 = vld [vmem:[#allocation7 + $0x48] sm:$0xff]   ;;  %p3443_p3 = pneg %p3442_p1 }
  0x80   : > { %650 = vmatpush1.bf16.msra.mxu0 %v2979_v19  ;;  %873 = vmatpush1.bf16.msra.mxu1 %v2980_v20  ;;  %v3035_v55 = vld [vmem:[#allocation7 + $0xc0] sm:$0xff]   ;;  %v3037_v57 = vld [vmem:[#allocation7 + $0xc8] sm:$0xff]   ;;  %v3004_v58 = vld [vmem:[%s3735_s10 + $0x28] sm:$0xff]  }
  0x81   : > { %651 = vmatprep.subr.bf16.mxu0 %v2981_v21  ;;  %874 = vmatprep.subr.bf16.mxu1 %v2983_v22  ;;  %v3038_v59 = vld [vmem:[#allocation7 + $0x50] sm:$0xff]   ;;  %v3040_v61 = vld [vmem:[#allocation7 + $0x58] sm:$0xff]   ;;  %v3042_v1 = vld [vmem:[#allocation7 + $0x60] sm:$0xff]   ;;  %v347_v21 = vlaneseq }
  0x82   : > { %v3039_v60 = vld [vmem:[#allocation7 + $0xd0] sm:$0xff]   ;;  %v3041_v62 = vld [vmem:[#allocation7 + $0xd8] sm:$0xff]   ;;  %v3043_v2 = vld [vmem:[#allocation7 + $0xe0] sm:$0xff]  }
  0x83   : > { %v3005_v63 = vld [vmem:[%s3735_s10 + $0x30] sm:$0xff]   ;;  %v3044_v3 = vld [vmem:[#allocation7 + $0x68] sm:$0xff]   ;;  %v3008_v6 = vld [vmem:[%s3735_s10 + $0x48] sm:$0xff]   ;;  %v348_v22 = vshrl.u32 %v347_v21, 7 }
  0x84   : > { %652 = vmatpush1.bf16.msra.mxu0 %v2985_v23  ;;  %875 = vmatpush1.bf16.msra.mxu1 %v2986_v24  ;;  %v3006_v4 = vld [vmem:[%s3735_s10 + $0x38] sm:$0xff]   ;;  %v3007_v5 = vld [vmem:[%s3735_s10 + $0x40] sm:$0xff]   ;;  %v3009_v7 = vld [vmem:[%s3735_s10 + $0x50] sm:$0xff]  }
  0x85   : > { %653 = vmatprep.subr.bf16.mxu0 %v2987_v25  ;;  %876 = vmatprep.subr.bf16.mxu1 %v2989_v26  ;;  %v3012_v8 = vld [vmem:[%s3735_s10 + $0x58] sm:$0xff]   ;;  %v3014_v9 = vld [vmem:[%s3735_s10 + $0x60] sm:$0xff]   ;;  %v3016_v11 = vld [vmem:[%s3735_s10 + $0x68] sm:$0xff]   ;;  %v349_v23 = vsub.s32 0, %v348_v22  ;;  %v357_v24 = vsub.s32 2, %v348_v22  ;;  %v353_v26 = vsub.s32 1, %v348_v22 }
  0x86   : > { %v3045_v10 = vld [vmem:[#allocation7 + $0xe8] sm:$0xff]   ;;  %v3046_v12 = vld [vmem:[#allocation7 + $0x70] sm:$0xff]   ;;  %v3019_v14 = vld [vmem:[%s3735_s10 + $0x70] sm:$0xff]  }
  0x87   : > { %v3047_v13 = vld [vmem:[#allocation7 + $0xf0] sm:$0xff]   ;;  %v3048_v15 = vld [vmem:[#allocation7 + $0x78] sm:$0xff]   ;;  %v3022_v16 = vld [vmem:[%s3735_s10 + $0x78] sm:$0xff]  }
  0x88   : > { %654 = vmatpush1.bf16.msra.mxu0 %v2991_v27  ;;  %877 = vmatpush1.bf16.msra.mxu1 %v2992_v28  ;;  %v3049_v17 = vld [vmem:[#allocation7 + $0xf8] sm:$0xff]   ;;  %v3025_v18 = vld [vmem:[%s3735_s10 + $0x80] sm:$0xff]   ;;  %v361_v27 = vsub.s32 3, %v348_v22 }
  0x89   : > { %655 = vmatprep.subr.bf16.mxu0 %v2993_v29  ;;  %878 = vmatprep.subr.bf16.mxu1 %v2995_v30  ;;  %v3028_v19 = vld [vmem:[%s3735_s10 + $0x88] sm:$0xff]   ;;  %v3030_v20 = vld [vmem:[%s3735_s10 + $0x90] sm:$0xff]   ;;  %s3446_s10 = scalar_lea.vmem %s3445_s9, 9728 }
  0x8a   : > { %v345_v25 = vld [vmem:[%s5363_s2] sm:$0xf]  ;;  %p3448_p9 = scmp.lt.s32.totalorder %s3446_s10, %s3440_s17 }
  0x8b   : > { %v3837_v28 = vrot.slane %v345_v25, %v349_v23  ;;  %v3839_v29 = vrot.slane %v345_v25, %v357_v24  ;;  %v3841_v30 = vrot.slane %v345_v25, %v353_v26 }
  0x8c   : > { %656 = vmatpush1.bf16.msra.mxu0 %v2997_v31  ;;  %879 = vmatpush1.bf16.msra.mxu1 %v2998_v32  ;;  %p3449_p12 = por %p3448_p9, %p3447_p5 }
  0x8d   : > { %2186 = vmatprep.subr.bf16.mxu1 %v3519_v0  ;;  %2371 = vmatprep.subr.bf16.mxu0 %v3519_v0 }
  0x8e   : > { %p3450_p2 = pnand %p3449_p12, %p3443_p3 }
  0x8f   : > { %674 = vmatmul.mubr.bf16.vlgmr.msra.gmra.mrb[0].mxu0 %v2999_v33  ;;  %897 = vmatmul.mubr.bf16.vlgmr.msra.gmra.mrb[0].mxu1 %v2999_v33 }
  0x90   : > { %683 = vmatprep.mubr.bf16.mxu0 %v3519_v0  ;;  %906 = vmatprep.mubr.bf16.mxu1 %v3519_v0 }
  0x91   : > { %2187 = vmatpush1.bf16.msra.mxu1 %v3010_v34  ;;  %2372 = vmatpush1.bf16.msra.mxu0 %v3011_v35 }
  0x92   : > { %2188 = vmatprep.subr.bf16.mxu1 %v3519_v0  ;;  %2373 = vmatprep.subr.bf16.mxu0 %v3519_v0 }
  0x95   : > { %2189 = vmatpush1.bf16.msra.mxu1 %v3013_v36  ;;  %2374 = vmatpush1.bf16.msra.mxu0 %v3015_v37 }
  0x96   : > { %2190 = vmatprep.subr.bf16.mxu1 %v3519_v0  ;;  %2375 = vmatprep.subr.bf16.mxu0 %v3519_v0 }
  0x97   : > { %684 = vmatmul.mubr.bf16.gmra.mrb[4].mxu0 %v3000_v38  ;;  %907 = vmatmul.mubr.bf16.gmra.mrb[4].mxu1 %v3000_v38 }
  0x98   : > { %693 = vmatprep.mubr.bf16.mxu0 %v3519_v0  ;;  %916 = vmatprep.mubr.bf16.mxu1 %v3519_v0 }
  0x99   : > { %2191 = vmatpush1.bf16.msra.mxu1 %v3017_v39  ;;  %2376 = vmatpush1.bf16.msra.mxu0 %v3018_v40 }
  0x9a   : > { %2192 = vmatprep.subr.bf16.mxu1 %v3519_v0  ;;  %2377 = vmatprep.subr.bf16.mxu0 %v3519_v0 }
  0x9d   : > { %2193 = vmatpush1.bf16.msra.mxu1 %v3020_v41  ;;  %2378 = vmatpush1.bf16.msra.mxu0 %v3021_v42 }
  0x9e   : > { %2194 = vmatprep.subr.bf16.mxu1 %v3519_v0  ;;  %2379 = vmatprep.subr.bf16.mxu0 %v3519_v0 }
  0x9f   : > { %694 = vmatmul.mubr.bf16.gmra.mrb[8].mxu0 %v3001_v43  ;;  %917 = vmatmul.mubr.bf16.gmra.mrb[8].mxu1 %v3001_v43 }
  0xa0   : > { %703 = vmatprep.mubr.bf16.mxu0 %v3519_v0  ;;  %926 = vmatprep.mubr.bf16.mxu1 %v3519_v0 }
  0xa1   : > { %2195 = vmatpush1.bf16.msra.mxu1 %v3023_v44  ;;  %2380 = vmatpush1.bf16.msra.mxu0 %v3024_v45 }
  0xa2   : > { %2196 = vmatprep.subr.bf16.mxu1 %v3519_v0  ;;  %2381 = vmatprep.subr.bf16.mxu0 %v3519_v0 }
  0xa5   : > { %2197 = vmatpush1.bf16.msra.mxu1 %v3026_v46  ;;  %2382 = vmatpush1.bf16.msra.mxu0 %v3027_v47 }
  0xa6   : > { %2198 = vmatprep.subr.bf16.mxu1 %v3519_v0  ;;  %2383 = vmatprep.subr.bf16.mxu0 %v3519_v0 }
  0xa7   : > { %704 = vmatmul.mubr.bf16.gmra.mrb[12].mxu0 %v3002_v48  ;;  %927 = vmatmul.mubr.bf16.gmra.mrb[12].mxu1 %v3002_v48 }
  0xa8   : > { %713 = vmatprep.mubr.bf16.mxu0 %v3519_v0  ;;  %936 = vmatprep.mubr.bf16.mxu1 %v3519_v0 }
  0xa9   : > { %2199 = vmatpush1.bf16.msra.mxu1 %v3029_v49  ;;  %2384 = vmatpush1.bf16.msra.mxu0 %v3031_v50 }
  0xaa   : > { %2200 = vmatprep.subr.bf16.mxu1 %v3519_v0  ;;  %2385 = vmatprep.subr.bf16.mxu0 %v3519_v0 }
  0xad   : > { %2201 = vmatpush1.bf16.msra.mxu1 %v3032_v51  ;;  %2386 = vmatpush1.bf16.msra.mxu0 %v3033_v52 }
  0xae   : > { %2202 = vmatprep.subr.bf16.mxu1 %v3519_v0  ;;  %2387 = vmatprep.subr.bf16.mxu0 %v3519_v0 }
  0xaf   : > { %714 = vmatmul.mubr.bf16.gmra.mrb[16].mxu0 %v3003_v53  ;;  %937 = vmatmul.mubr.bf16.gmra.mrb[16].mxu1 %v3003_v53 }
  0xb0   : > { %723 = vmatprep.mubr.bf16.mxu0 %v3519_v0  ;;  %946 = vmatprep.mubr.bf16.mxu1 %v3519_v0 }
  0xb1   : > { %2203 = vmatpush1.bf16.msra.mxu1 %v3034_v54  ;;  %2388 = vmatpush1.bf16.msra.mxu0 %v3035_v55 }
  0xb2   : > { %2204 = vmatprep.subr.bf16.mxu1 %v3519_v0  ;;  %2389 = vmatprep.subr.bf16.mxu0 %v3519_v0 }
  0xb5   : > { %2205 = vmatpush1.bf16.msra.mxu1 %v3036_v56  ;;  %2390 = vmatpush1.bf16.msra.mxu0 %v3037_v57 }
  0xb6   : > { %2206 = vmatprep.subr.bf16.mxu1 %v3519_v0  ;;  %2391 = vmatprep.subr.bf16.mxu0 %v3519_v0 }
  0xb7   : > { %724 = vmatmul.mubr.bf16.gmra.mrb[20].mxu0 %v3004_v58  ;;  %947 = vmatmul.mubr.bf16.gmra.mrb[20].mxu1 %v3004_v58 }
  0xb8   : > { %733 = vmatprep.mubr.bf16.mxu0 %v3519_v0  ;;  %956 = vmatprep.mubr.bf16.mxu1 %v3519_v0 }
  0xb9   : > { %2207 = vmatpush1.bf16.msra.mxu1 %v3038_v59  ;;  %2392 = vmatpush1.bf16.msra.mxu0 %v3039_v60 }
  0xba   : > { %2208 = vmatprep.subr.bf16.mxu1 %v3519_v0  ;;  %2393 = vmatprep.subr.bf16.mxu0 %v3519_v0 }
  0xbd   : > { %2209 = vmatpush1.bf16.msra.mxu1 %v3040_v61  ;;  %2394 = vmatpush1.bf16.msra.mxu0 %v3041_v62 }
  0xbe   : > { %2210 = vmatprep.subr.bf16.mxu1 %v3519_v0  ;;  %2395 = vmatprep.subr.bf16.mxu0 %v3519_v0 }
  0xbf   : > { %734 = vmatmul.mubr.bf16.gmra.mrb[24].mxu0 %v3005_v63  ;;  %957 = vmatmul.mubr.bf16.gmra.mrb[24].mxu1 %v3005_v63 }
  0xc0   : > { %743 = vmatprep.mubr.bf16.mxu0 %v3519_v0  ;;  %966 = vmatprep.mubr.bf16.mxu1 %v3519_v0 }
  0xc1   : > { %2211 = vmatpush1.bf16.msra.mxu1 %v3042_v1  ;;  %2396 = vmatpush1.bf16.msra.mxu0 %v3043_v2 }
  0xc2   : > { %2212 = vmatprep.subr.bf16.mxu1 %v3519_v0  ;;  %2397 = vmatprep.subr.bf16.mxu0 %v3519_v0 }
  0xc5   : > { %2213 = vmatpush1.bf16.msra.mxu1 %v3044_v3  ;;  %2398 = vmatpush1.bf16.msra.mxu0 %v3045_v10 }
  0xc6   : > { %2214 = vmatprep.subr.bf16.mxu1 %v3519_v0  ;;  %2399 = vmatprep.subr.bf16.mxu0 %v3519_v0 }
  0xc7   : > { %744 = vmatmul.mubr.bf16.gmra.mrb[28].mxu0 %v3006_v4  ;;  %967 = vmatmul.mubr.bf16.gmra.mrb[28].mxu1 %v3006_v4 }
  0xc8   : > { %753 = vmatprep.mubr.bf16.mxu0 %v3519_v0  ;;  %976 = vmatprep.mubr.bf16.mxu1 %v3519_v0 }
  0xc9   : > { %2215 = vmatpush1.bf16.msra.mxu1 %v3046_v12  ;;  %2400 = vmatpush1.bf16.msra.mxu0 %v3047_v13 }
  0xca   : > { %2216 = vmatprep.subr.bf16.mxu1 %v3519_v0  ;;  %2401 = vmatprep.subr.bf16.mxu0 %v3519_v0 }
  0xcd   : > { %2217 = vmatpush1.bf16.msra.mxu1 %v3048_v15  ;;  %2402 = vmatpush1.bf16.msra.mxu0 %v3049_v17 }
  0xcf   : > { %754 = vmatmul.mubr.bf16.gmra.mrb[32].mxu0 %v3007_v5  ;;  %977 = vmatmul.mubr.bf16.gmra.mrb[32].mxu1 %v3007_v5 }
  0xd0   : > { %763 = vmatprep.mubr.bf16.mxu0 %v3519_v0  ;;  %986 = vmatprep.mubr.bf16.mxu1 %v3519_v0 }
  0xd7   : > { %764 = vmatmul.mubr.bf16.gmra.mrb[36].mxu0 %v3008_v6  ;;  %987 = vmatmul.mubr.bf16.gmra.mrb[36].mxu1 %v3008_v6 }
  0xd8   : > { %773 = vmatprep.mubr.bf16.mxu0 %v3519_v0  ;;  %996 = vmatprep.mubr.bf16.mxu1 %v3519_v0 }
  0xdf   : > { %774 = vmatmul.mubr.bf16.gmra.mrb[40].mxu0 %v3009_v7  ;;  %997 = vmatmul.mubr.bf16.gmra.mrb[40].mxu1 %v3009_v7 }
  0xe0   : > { %783 = vmatprep.mubr.bf16.mxu0 %v3519_v0  ;;  %1006 = vmatprep.mubr.bf16.mxu1 %v3519_v0 }
  0xe7   : > { %784 = vmatmul.mubr.bf16.gmra.mrb[44].mxu0 %v3012_v8  ;;  %1007 = vmatmul.mubr.bf16.gmra.mrb[44].mxu1 %v3012_v8 }
  0xe8   : > { %793 = vmatprep.mubr.bf16.mxu0 %v3519_v0  ;;  %1016 = vmatprep.mubr.bf16.mxu1 %v3519_v0 }
  0xef   : > { %794 = vmatmul.mubr.bf16.gmra.mrb[48].mxu0 %v3014_v9  ;;  %1017 = vmatmul.mubr.bf16.gmra.mrb[48].mxu1 %v3014_v9 }
  0xf0   : > { %803 = vmatprep.mubr.bf16.mxu0 %v3519_v0  ;;  %1026 = vmatprep.mubr.bf16.mxu1 %v3519_v0 }
  0xf7   : > { %804 = vmatmul.mubr.bf16.gmra.mrb[52].mxu0 %v3016_v11  ;;  %1027 = vmatmul.mubr.bf16.gmra.mrb[52].mxu1 %v3016_v11 }
  0xf8   : > { %813 = vmatprep.mubr.bf16.mxu0 %v3519_v0  ;;  %1036 = vmatprep.mubr.bf16.mxu1 %v3519_v0 }
  0xff   : > { %814 = vmatmul.mubr.bf16.gmra.mrb[56].mxu0 %v3019_v14  ;;  %1037 = vmatmul.mubr.bf16.gmra.mrb[56].mxu1 %v3019_v14 }
 0x100   : > { %823 = vmatprep.mubr.bf16.mxu0 %v3519_v0  ;;  %1046 = vmatprep.mubr.bf16.mxu1 %v3519_v0 }
 0x107   : > { %824 = vmatmul.mubr.bf16.gmra.mrb[60].mxu0 %v3022_v16  ;;  %1047 = vmatmul.mubr.bf16.gmra.mrb[60].mxu1 %v3022_v16 }
 0x108   : > { %833 = vmatprep.mubr.bf16.mxu0 %v3519_v0  ;;  %1056 = vmatprep.mubr.bf16.mxu1 %v3519_v0 }
 0x10f   : > { %834 = vmatmul.mubr.bf16.gmra.mrb[64].mxu0 %v3025_v18  ;;  %1057 = vmatmul.mubr.bf16.gmra.mrb[64].mxu1 %v3025_v18 }
 0x110   : > { %843 = vmatprep.mubr.bf16.mxu0 %v3519_v0  ;;  %1066 = vmatprep.mubr.bf16.mxu1 %v3519_v0 }
 0x117   : > { %844 = vmatmul.mubr.bf16.gmra.mrb[68].mxu0 %v3028_v19  ;;  %1067 = vmatmul.mubr.bf16.gmra.mrb[68].mxu1 %v3028_v19 }
 0x118   : > { %853 = vmatprep.mubr.bf16.mxu0 %v3519_v0  ;;  %1076 = vmatprep.mubr.bf16.mxu1 %v3519_v0  ;;  %v3843_v0 = vrot.slane %v345_v25, %v361_v27 }
 0x11f   : > { %854 = vmatmul.mubr.bf16.gmra.mrb[72].mxu0 %v3030_v20  ;;  %1077 = vmatmul.mubr.bf16.gmra.mrb[72].mxu1 %v3030_v20 }
 0x162   : > { %v675_v31 = vpop.f32.mrb[0].mxu0  ;;  %v898_v32 = vpop.f32.mrb[0].mxu1 }
 0x163   : > { %v676_v33 = vadd.f32 %v675_v31, %v3837_v28  ;;  %v899_v34 = vadd.f32 %v898_v32, %v3839_v29  ;;  %v677_v35 = vpop.f32.mrb[1].mxu0  ;;  %v900_v36 = vpop.f32.mrb[1].mxu1 }
 0x164   : > { %v678_v37 = vadd.f32 %v677_v35, %v3841_v30  ;;  %v901_v38 = vadd.f32 %v900_v36, %v3843_v0  ;;  %v679_v39 = vpop.f32.mrb[2].mxu0  ;;  %v902_v40 = vpop.f32.mrb[2].mxu1 }
 0x165   : > { %v1239_v41 = vmul.f32 0.70710677, %v676_v33  ;;  %v1241_v42 = vmul.f32 0.70710677, %v899_v34  ;;  %v680_v45 = vadd.f32 %v679_v39, %v3837_v28  ;;  %v903_v46 = vadd.f32 %v902_v40, %v3839_v29  ;;  %v681_v47 = vpop.f32.mrb[3].mxu0  ;;  %v904_v48 = vpop.f32.mrb[3].mxu1 }
 0x166   : > { %v1240_v43 = vmul.f32 0.70710677, %v678_v37  ;;  %v1242_v44 = vmul.f32 0.70710677, %v901_v38  ;;  %v682_v49 = vadd.f32 %v681_v47, %v3841_v30  ;;  %v905_v50 = vadd.f32 %v904_v48, %v3843_v0 }
 0x167   : > { %3050 = verf.f32 %v1239_v41  ;;  %v1243_v51 = vmul.f32 0.70710677, %v680_v45  ;;  %v1245_v52 = vmul.f32 0.70710677, %v903_v46  ;;  %v1087_v6 = vmul.f32 0.5, %v676_v33 }
 0x168   : > { %3052 = verf.f32 %v1241_v42  ;;  %v1244_v53 = vmul.f32 0.70710677, %v682_v49  ;;  %v1246_v55 = vmul.f32 0.70710677, %v905_v50  ;;  %v1089_v13 = vmul.f32 0.5, %v899_v34 }
 0x169   : > { %3054 = verf.f32 %v1240_v43  ;;  %v3863_v14 = vmul.f32 0.5, %v678_v37  ;;  %v3865_v15 = vmul.f32 0.5, %v901_v38  ;;  %v1091_v24 = vmul.f32 0.5, %v680_v45 }
 0x16a   : > { %3056 = verf.f32 %v1242_v44  ;;  %v685_v54 = vpop.f32.mrb[4].mxu0  ;;  %v908_v57 = vpop.f32.mrb[4].mxu1  ;;  %v1093_v25 = vmul.f32 0.5, %v903_v46  ;;  %v3868_v32 = vmul.f32 0.5, %v682_v49  ;;  %v3870_v33 = vmul.f32 0.5, %v905_v50 }
 0x16b   : > { %3058 = verf.f32 %v1243_v51  ;;  %v686_v56 = vadd.f32 %v685_v54, %v3837_v28  ;;  %v687_v58 = vpop.f32.mrb[5].mxu0  ;;  %v909_v59 = vadd.f32 %v908_v57, %v3839_v29  ;;  %v910_v61 = vpop.f32.mrb[5].mxu1 }
 0x16c   : > { %3060 = verf.f32 %v1245_v52  ;;  %v688_v60 = vadd.f32 %v687_v58, %v3841_v30  ;;  %v689_v62 = vpop.f32.mrb[6].mxu0  ;;  %v3857_v1 = vadd.f32 %v910_v61, %v3843_v0  ;;  %v912_v2 = vpop.f32.mrb[6].mxu1 }
 0x16d   : > { %3062 = verf.f32 %v1244_v53  ;;  %v1247_v63 = vmul.f32 0.70710677, %v686_v56  ;;  %v691_v3 = vpop.f32.mrb[7].mxu0  ;;  %v1249_v4 = vmul.f32 0.70710677, %v909_v59  ;;  %v914_v5 = vpop.f32.mrb[7].mxu1  ;;  %v690_v9 = vadd.f32 %v689_v62, %v3837_v28 }
 0x16e   : > { %3064 = verf.f32 %v1246_v55  ;;  %v1248_v7 = vmul.f32 0.70710677, %v688_v60  ;;  %v1250_v8 = vmul.f32 0.70710677, %v3857_v1  ;;  %v913_v10 = vadd.f32 %v912_v2, %v3839_v29 }
 0x16f   : > { %3066 = verf.f32 %v1247_v63  ;;  %v692_v11 = vadd.f32 %v691_v3, %v3841_v30  ;;  %v1251_v18 = vmul.f32 0.70710677, %v690_v9  ;;  %v915_v19 = vadd.f32 %v914_v5, %v3843_v0 }
 0x170   : > { %3068 = verf.f32 %v1249_v4  ;;  %v1253_v26 = vmul.f32 0.70710677, %v913_v10  ;;  %v3874_v39 = vmul.f32 0.5, %v686_v56  ;;  %v3876_v40 = vmul.f32 0.5, %v909_v59 }
 0x171   : > { %v3051_v12 = vpop.eup %3050  ;;  %3070 = verf.f32 %v1248_v7  ;;  %v1252_v34 = vmul.f32 0.70710677, %v692_v11  ;;  %v3878_v41 = vmul.f32 0.5, %v688_v60  ;;  %v1254_v47 = vmul.f32 0.70710677, %v915_v19 }
 0x172   : > { %v3053_v16 = vpop.eup %3052  ;;  %v1543_v17 = vadd.f32 1.0, %v3051_v12  ;;  %v695_v20 = vpop.f32.mrb[8].mxu0  ;;  %3072 = verf.f32 %v1250_v8  ;;  %v3896_v62 = vmul.f32 0.5, %v3857_v1  ;;  %v3898_v63 = vmul.f32 0.5, %v690_v9 }
 0x173   : > { %v918_v21 = vpop.f32.mrb[8].mxu1  ;;  %v3055_v22 = vpop.eup %3054  ;;  %v1545_v23 = vadd.f32 1.0, %v3053_v16  ;;  %3074 = verf.f32 %v1251_v18  ;;  %v696_v52 = vadd.f32 %v695_v20, %v3837_v28  ;;  %v3900_v2 = vmul.f32 0.5, %v913_v10 }
 0x174   : > { %v697_v27 = vpop.f32.mrb[9].mxu0  ;;  %v3057_v31 = vpop.eup %3056  ;;  %v3872_v38 = vmul.f32 %v1543_v17, %v1087_v6  ;;  %v1544_v45 = vadd.f32 1.0, %v3055_v22  ;;  %3076 = verf.f32 %v1253_v26  ;;  %v919_v56 = vadd.f32 %v918_v21, %v3839_v29 }
 0x175   : > { %v920_v35 = vpop.f32.mrb[9].mxu1  ;;  %v699_v36 = vpop.f32.mrb[10].mxu0  ;;  %v3884_v50 = vmul.f32 %v1545_v23, %v1089_v13  ;;  %v1546_v54 = vadd.f32 1.0, %v3057_v31  ;;  %3078 = verf.f32 %v1252_v34  ;;  %v1255_v59 = vmul.f32 0.70710677, %v696_v52 }
 0x176   : > { %v3059_v37 = vpop.eup %3058  ;;  %v922_v42 = vpop.f32.mrb[10].mxu1  ;;  %3080 = verf.f32 %v1254_v47  ;;  %v698_v60 = vadd.f32 %v697_v27, %v3841_v30  ;;  %v3906_v8 = vmul.f32 0.5, %v692_v11  ;;  %v3908_v12 = vmul.f32 0.5, %v915_v19 }
 0x177   : > { %v3880_v43 = vpop.f32.mrb[11].mxu0  ;;  %v3061_v44 = vpop.eup %3060  ;;  %v1547_v46 = vadd.f32 1.0, %v3059_v37  ;;  %v3915_v10 = vmul.f32 %v1544_v45, %v3863_v14  ;;  %3082 = verf.f32 %v1255_v59  ;;  %v1257_v17 = vmul.f32 0.70710677, %v919_v56 }
 0x178   : > { %v3882_v48 = vpop.f32.mrb[11].mxu1  ;;  %v3063_v49 = vpop.eup %3062  ;;  %v1549_v51 = vadd.f32 1.0, %v3061_v44  ;;  %v3922_v11 = vmul.f32 %v1546_v54, %v3865_v15  ;;  %v1256_v21 = vmul.f32 0.70710677, %v698_v60  ;;  %v921_v22 = vadd.f32 %v920_v35, %v3843_v0 }
 0x179   : > { %v3065_v53 = vpop.eup %3064  ;;  %v3887_v55 = vmul.f32 %v1547_v46, %v1091_v24  ;;  %v1548_v7 = vadd.f32 1.0, %v3063_v49  ;;  %v3929_v26 = vmul.f32 0.5, %v696_v52  ;;  %v700_v27 = vadd.f32 %v699_v36, %v3837_v28 }
 0x17a   : > { %v3067_v57 = vpop.eup %3066  ;;  %v3890_v58 = vmul.f32 %v1549_v51, %v1093_v25  ;;  %v705_v3 = vpop.f32.mrb[12].mxu0  ;;  %v1550_v16 = vadd.f32 1.0, %v3065_v53  ;;  %v923_v31 = vadd.f32 %v922_v42, %v3839_v29  ;;  %v3934_v37 = vmul.f32 0.5, %v919_v56 }
 0x17b   : > { %v1847_v61 = vpack.c.bf16 %v3887_v55, %v3872_v38  ;;  %v3902_v4 = vpop.f32.mrb[12].mxu1  ;;  %v3069_v5 = vpop.eup %3068  ;;  %v1551_v19 = vadd.f32 1.0, %v3067_v57  ;;  %v1700_v34 = vmul.f32 %v1548_v7, %v3868_v32  ;;  %3084 = verf.f32 %v1257_v17 }
 0x17c   : > { %v1849_v6 = vpack.c.bf16 %v3890_v58, %v3884_v50  ;;  %v3910_v13 = vpop.f32.mrb[13].mxu0  ;;  %v3912_v1 = vpop.f32.mrb[13].mxu1  ;;  %v1553_v25 = vadd.f32 1.0, %v3069_v5  ;;  %v1702_v35 = vmul.f32 %v1550_v16, %v3870_v33  ;;  %3086 = verf.f32 %v1256_v21 }
 0x17d   : > { %v3071_v9 = vpop.eup %3070  ;;  %v3917_v18 = vpop.f32.mrb[14].mxu0  ;;  %v1258_v45 = vmul.f32 0.70710677, %v921_v22  ;;  %v1259_v46 = vmul.f32 0.70710677, %v700_v27  ;;  %v3938_v49 = vmul.f32 %v1551_v19, %v3874_v39  ;;  %v3940_v36 = vmul.f32 0.5, %v698_v60 }
 0x17e   : > { %v3919_v20 = vpop.f32.mrb[14].mxu1  ;;  %v3925_v23 = vpop.f32.mrb[15].mxu0  ;;  %v1552_v15 = vadd.f32 1.0, %v3071_v9  ;;  %v1261_v42 = vmul.f32 0.70710677, %v923_v31  ;;  %v3943_v32 = vmul.f32 %v1553_v25, %v3876_v40  ;;  %v702_v53 = vadd.f32 %v3880_v43, %v3841_v30 }
 0x17f   : > { %v3927_v24 = vpop.f32.mrb[15].mxu1  ;;  %v3073_v14 = vpop.eup %3072  ;;  %3088 = verf.f32 %v1258_v45  ;;  %v925_v33 = vadd.f32 %v3882_v48, %v3843_v0  ;;  %v706_v40 = vadd.f32 %v705_v3, %v3837_v28  ;;  %v3961_v7 = vmul.f32 0.5, %v921_v22 }
 0x180   : > { %v3075_v44 = vpop.eup %3074  ;;  %v1554_v51 = vadd.f32 1.0, %v3073_v14  ;;  %v3954_v57 = vmul.f32 %v1552_v15, %v3878_v41  ;;  %3090 = verf.f32 %v1259_v46  ;;  %v1260_v48 = vmul.f32 0.70710677, %v702_v53 }
 0x181   : > { %v3077_v47 = vpop.eup %3076  ;;  %v1555_v59 = vadd.f32 1.0, %v3075_v44  ;;  %3092 = verf.f32 %v1261_v42  ;;  %v1262_v19 = vmul.f32 0.70710677, %v925_v33  ;;  %v1263_v21 = vmul.f32 0.70710677, %v706_v40 }
 0x182   : > { %v3079_v52 = vpop.eup %3078  ;;  %v3949_v54 = vpop.f32.mrb[16].mxu0  ;;  %v1557_v43 = vadd.f32 1.0, %v3077_v47  ;;  %v3968_v41 = vmul.f32 %v1554_v51, %v3896_v62  ;;  %3094 = verf.f32 %v1260_v48  ;;  %v929_v22 = vadd.f32 %v3902_v4, %v3839_v29 }
 0x183   : > { %v3951_v56 = vpop.f32.mrb[16].mxu1  ;;  %v3081_v39 = vpop.eup %3080  ;;  %v1556_v17 = vadd.f32 1.0, %v3079_v52  ;;  %v708_v15 = vadd.f32 %v3910_v13, %v3841_v30  ;;  %3096 = verf.f32 %v1262_v19  ;;  %v931_v62 = vadd.f32 %v3912_v1, %v3843_v0 }
 0x184   : > { %v3957_v60 = vpop.f32.mrb[17].mxu0  ;;  %v3959_v5 = vpop.f32.mrb[17].mxu1  ;;  %v1558_v25 = vadd.f32 1.0, %v3081_v39  ;;  %v1848_v45 = vpack.c.bf16 %v1700_v34, %v3915_v10  ;;  %v1850_v46 = vpack.c.bf16 %v1702_v35, %v3922_v11  ;;  %v3983_v47 = vmul.f32 %v1555_v59, %v3898_v63 }
 0x185   : > { %v3963_v9 = vpop.f32.mrb[18].mxu0  ;;  %v3965_v16 = vpop.f32.mrb[18].mxu1  ;;  %v3985_v51 = vmul.f32 0.5, %v700_v27  ;;  %v3987_v42 = vmul.f32 0.5, %v923_v31  ;;  %v1265_v4 = vmul.f32 0.70710677, %v929_v22  ;;  %v3990_v13 = vmul.f32 %v1557_v43, %v3900_v2 }
 0x186   : > { %v3970_v3 = vpop.f32.mrb[19].mxu0  ;;  %v3083_v14 = vpop.eup %3082  ;;  %3098 = verf.f32 %v1263_v21  ;;  %v1264_v48 = vmul.f32 0.70710677, %v708_v15  ;;  %2218 = vmatprep.mubr.bf16.mxu1 %v1848_v45  ;;  %2403 = vmatprep.mubr.bf16.mxu0 %v1850_v46  ;;  %v3993_v10 = vmul.f32 %v1556_v17, %v3906_v8  ;;  %v3995_v63 = vmul.f32 0.5, %v702_v53 }
 0x187   : > { %v3976_v44 = vpop.f32.mrb[19].mxu1  ;;  %v3085_v52 = vpop.eup %3084  ;;  %v1559_v39 = vadd.f32 1.0, %v3083_v14  ;;  %v1266_v11 = vmul.f32 0.70710677, %v931_v62  ;;  %v710_v27 = vadd.f32 %v3917_v18, %v3837_v28  ;;  %2219 = vmatmul.mubr.bf16.vlgmr.msra.gmra.mrb[76].mxu1 %v1847_v61  ;;  %2404 = vmatmul.mubr.bf16.vlgmr.msra.gmra.mrb[76].mxu0 %v1849_v6  ;;  %v4010_v8 = vmul.f32 %v1558_v25, %v3908_v12 }
 0x188   : > { %v3087_v1 = vpop.eup %3086  ;;  %v4012_v34 = vmul.f32 0.5, %v925_v33  ;;  %v933_v18 = vadd.f32 %v3919_v20, %v3839_v29  ;;  %v712_v38 = vadd.f32 %v3925_v23, %v3841_v30  ;;  %v1561_v58 = vadd.f32 1.0, %v3085_v52 }
 0x189   : > { %v3089_v50 = vpop.eup %3088  ;;  %v4022_v6 = vmul.f32 0.5, %v706_v40  ;;  %3100 = verf.f32 %v1265_v4  ;;  %v1267_v35 = vmul.f32 0.70710677, %v710_v27  ;;  %v4029_v20 = vmul.f32 %v1559_v39, %v3929_v26 }
 0x18a   : > { %v4005_v2 = vpop.f32.mrb[20].mxu0  ;;  %v4007_v31 = vpop.f32.mrb[20].mxu1  ;;  %v1560_v59 = vadd.f32 1.0, %v3087_v1  ;;  %3102 = verf.f32 %v1264_v48  ;;  %v1269_v23 = vmul.f32 0.70710677, %v933_v18  ;;  %v4033_v19 = vmul.f32 0.5, %v929_v22 }
 0x18b   : > { %v4018_v55 = vpop.f32.mrb[21].mxu0  ;;  %v4020_v61 = vpop.f32.mrb[21].mxu1  ;;  %3104 = verf.f32 %v1266_v11  ;;  %v1268_v40 = vmul.f32 0.70710677, %v712_v38  ;;  %v935_v21 = vadd.f32 %v3927_v24, %v3843_v0  ;;  %v4039_v25 = vmul.f32 0.5, %v708_v15 }
 0x18c   : > { %v4024_v12 = vpop.f32.mrb[22].mxu0  ;;  %v4026_v53 = vpop.f32.mrb[22].mxu1  ;;  %v4041_v45 = vmul.f32 0.5, %v931_v62  ;;  %3106 = verf.f32 %v1267_v35  ;;  %v716_v26 = vadd.f32 %v3949_v54, %v3837_v28  ;;  %v4046_v4 = vmul.f32 %v1561_v58, %v3934_v37 }
 0x18d   : > { %v3091_v33 = vpop.eup %3090  ;;  %v4031_v43 = vpop.f32.mrb[23].mxu0  ;;  %v1562_v22 = vadd.f32 1.0, %v3089_v50  ;;  %3108 = verf.f32 %v1269_v23  ;;  %v1270_v52 = vmul.f32 0.70710677, %v935_v21  ;;  %v4049_v24 = vmul.f32 %v1560_v59, %v3940_v36 }
 0x18e   : > { %v3093_v17 = vpop.eup %3092  ;;  %v4037_v14 = vpop.f32.mrb[23].mxu1  ;;  %v1563_v48 = vadd.f32 1.0, %v3091_v33  ;;  %3110 = verf.f32 %v1268_v40  ;;  %v1271_v62 = vmul.f32 0.70710677, %v716_v26  ;;  %v939_v1 = vadd.f32 %v3951_v56, %v3839_v29 }
 0x18f   : > { %v3095_v46 = vpop.eup %3094  ;;  %v1565_v15 = vadd.f32 1.0, %v3093_v17  ;;  %3112 = verf.f32 %v1270_v52  ;;  %v718_v54 = vadd.f32 %v3957_v60, %v3841_v30  ;;  %v4059_v36 = vmul.f32 0.5, %v710_v27 }
 0x190   : > { %v3097_v39 = vpop.eup %3096  ;;  %v1564_v58 = vadd.f32 1.0, %v3095_v46  ;;  %v941_v33 = vadd.f32 %v3959_v5, %v3843_v0  ;;  %v4068_v56 = vmul.f32 %v1562_v22, %v3961_v7  ;;  %v4070_v60 = vmul.f32 0.5, %v933_v18 }
 0x191   : > { %v3099_v50 = vpop.eup %3098  ;;  %v1566_v35 = vadd.f32 1.0, %v3097_v39  ;;  %v4072_v17 = vmul.f32 0.5, %v712_v38  ;;  %v1273_v40 = vmul.f32 0.70710677, %v939_v1  ;;  %v4079_v27 = vmul.f32 %v1563_v48, %v3985_v51 }
 0x192   : > { %v4055_v37 = vpop.f32.mrb[24].mxu0  ;;  %v4057_v11 = vpop.f32.mrb[24].mxu1  ;;  %v4082_v5 = vmul.f32 %v1565_v15, %v3987_v42  ;;  %v4084_v39 = vmul.f32 0.5, %v935_v21  ;;  %v1567_v22 = vadd.f32 1.0, %v3099_v50  ;;  %3114 = verf.f32 %v1271_v62 }
 0x193   : > { %v4063_v59 = vpop.f32.mrb[25].mxu0  ;;  %v4065_v23 = vpop.f32.mrb[25].mxu1  ;;  %v4095_v48 = vmul.f32 %v1564_v58, %v3995_v63  ;;  %v4098_v42 = vmul.f32 %v1566_v35, %v4012_v34  ;;  %v1274_v21 = vmul.f32 0.70710677, %v941_v33  ;;  %3116 = verf.f32 %v1273_v40 }
 0x194   : > { %5382 = vst [vmem:[#allocation12_spill] sm:$0xff] %v4065_v23  ;;  %v4074_v52 = vpop.f32.mrb[26].mxu0  ;;  %v4076_v46 = vpop.f32.mrb[26].mxu1  ;;  %v4086_v23 = vmul.f32 0.5, %v716_v26  ;;  %v1854_v26 = vpack.c.bf16 %v4010_v8, %v3968_v41  ;;  %v720_v62 = vadd.f32 %v3963_v9, %v3837_v28  ;;  %v4108_v50 = vmul.f32 0.5, %v718_v54 }
 0x195   : > { %5383 = vst [vmem:[#allocation13_spill] sm:$0xff] %v4074_v52  ;;  %5384 = vst [vmem:[#allocation14_spill] sm:$0xff] %v4076_v46  ;;  %v4088_v7 = vpop.f32.mrb[27].mxu0  ;;  %v4090_v18 = vpop.f32.mrb[27].mxu1  ;;  %v1272_v52 = vmul.f32 0.70710677, %v718_v54  ;;  %v1852_v46 = vpack.c.bf16 %v3993_v10, %v3954_v57  ;;  %v943_v57 = vadd.f32 %v3965_v16, %v3839_v29  ;;  %v1851_v34 = vpack.c.bf16 %v3983_v47, %v3938_v49 }
 0x196   : > { %5385 = vst [vmem:[#allocation15_spill] sm:$0xff] %v4090_v18  ;;  %v3101_v38 = vpop.eup %3100  ;;  %v4102_v18 = vmul.f32 0.5, %v939_v1  ;;  %2411 = vmatprep.mubr.bf16.mxu0 %v1854_v26  ;;  %v1853_v41 = vpack.c.bf16 %v3990_v13, %v3943_v32  ;;  %v4115_v1 = vmul.f32 %v1567_v22, %v4022_v6  ;;  %v1275_v9 = vmul.f32 0.70710677, %v720_v62 }
 0x197   : > { %v3103_v51 = vpop.eup %3102  ;;  %2226 = vmatprep.mubr.bf16.mxu1 %v1852_v46  ;;  %v1569_v63 = vadd.f32 1.0, %v3101_v38  ;;  %3118 = verf.f32 %v1272_v52  ;;  %v1277_v54 = vmul.f32 0.70710677, %v943_v57  ;;  %v722_v49 = vadd.f32 %v3970_v3, %v3841_v30 }
 0x198   : > { %v3105_v15 = vpop.eup %3104  ;;  %v1568_v58 = vadd.f32 1.0, %v3103_v51  ;;  %3120 = verf.f32 %v1274_v21  ;;  %2227 = vmatmul.mubr.bf16.gmra.mrb[80].mxu1 %v1851_v34  ;;  %2412 = vmatmul.mubr.bf16.gmra.mrb[80].mxu0 %v1853_v41  ;;  %v4125_v6 = vmul.f32 0.5, %v941_v33  ;;  %v945_v52 = vadd.f32 %v3976_v44, %v3843_v0 }
 0x199   : > { %v3107_v10 = vpop.eup %3106  ;;  %v1570_v40 = vadd.f32 1.0, %v3105_v15  ;;  %3122 = verf.f32 %v1275_v9  ;;  %v726_v46 = vadd.f32 %v4005_v2, %v3837_v28  ;;  %v4136_v3 = vmul.f32 %v1569_v63, %v4033_v19 }
 0x19a   : > { %v3109_v8 = vpop.eup %3108  ;;  %v4117_v35 = vpop.f32.mrb[28].mxu0  ;;  %v1571_v51 = vadd.f32 1.0, %v3107_v10  ;;  %3124 = verf.f32 %v1277_v54  ;;  %v4143_v15 = vmul.f32 %v1568_v58, %v4039_v25  ;;  %v1276_v34 = vmul.f32 0.70710677, %v722_v49 }
 0x19b   : > { %v3111_v16 = vpop.eup %3110  ;;  %v4121_v47 = vpop.f32.mrb[28].mxu1  ;;  %v1573_v21 = vadd.f32 1.0, %v3109_v8  ;;  %v1278_v2 = vmul.f32 0.70710677, %v945_v52  ;;  %v4146_v41 = vmul.f32 %v1570_v40, %v4041_v45  ;;  %v949_v19 = vadd.f32 %v4007_v31, %v3839_v29 }
 0x19c   : > { %v4123_v32 = vpop.f32.mrb[29].mxu0  ;;  %v3113_v13 = vpop.eup %3112  ;;  %v1572_v44 = vadd.f32 1.0, %v3111_v16  ;;  %v4152_v8 = vmul.f32 0.5, %v720_v62  ;;  %v4154_v54 = vmul.f32 0.5, %v943_v57  ;;  %v728_v25 = vadd.f32 %v4018_v55, %v3841_v30 }
 0x19d   : > { %v4131_v38 = vpop.f32.mrb[29].mxu1  ;;  %v4133_v22 = vpop.f32.mrb[30].mxu0  ;;  %v1574_v9 = vadd.f32 1.0, %v3113_v13  ;;  %v951_v58 = vadd.f32 %v4020_v61, %v3843_v0  ;;  %v4161_v45 = vmul.f32 %v1571_v51, %v4059_v36  ;;  %v4164_v16 = vmul.f32 %v1573_v21, %v4070_v60 }
 0x19e   : > { %5386 = vst [vmem:[#allocation16_spill] sm:$0xff] %v4133_v22  ;;  %v4138_v26 = vpop.f32.mrb[30].mxu1  ;;  %v4140_v33 = vpop.f32.mrb[31].mxu0  ;;  %v1279_v22 = vmul.f32 0.70710677, %v726_v46  ;;  %3126 = verf.f32 %v1276_v34  ;;  %v4167_v62 = vmul.f32 %v1572_v44, %v4072_v17  ;;  %v4169_v57 = vmul.f32 0.5, %v722_v49 }
 0x19f   : > { %v4150_v10 = vpop.f32.mrb[31].mxu1  ;;  %v3115_v63 = vpop.eup %3114  ;;  %v1281_v31 = vmul.f32 0.70710677, %v949_v19  ;;  %3128 = verf.f32 %v1278_v2  ;;  %v1280_v13 = vmul.f32 0.70710677, %v728_v25  ;;  %v4176_v61 = vmul.f32 %v1574_v9, %v4084_v39 }
 0x1a0   : > { %5387 = vst [vmem:[#allocation17_spill] sm:$0xff] %v4150_v10  ;;  %v3117_v40 = vpop.eup %3116  ;;  %v1575_v36 = vadd.f32 1.0, %v3115_v63  ;;  %v4178_v60 = vmul.f32 0.5, %v945_v52  ;;  %3130 = verf.f32 %v1279_v22  ;;  %v4184_v49 = vmul.f32 0.5, %v726_v46 }
 0x1a1   : > { %v3119_v17 = vpop.eup %3118  ;;  %3132 = verf.f32 %v1281_v31  ;;  %v1282_v44 = vmul.f32 0.70710677, %v951_v58  ;;  %v1856_v34 = vpack.c.bf16 %v4095_v48, %v4049_v24  ;;  %v1577_v52 = vadd.f32 1.0, %v3117_v40 }
 0x1a2   : > { %v4171_v55 = vpop.f32.mrb[32].mxu0  ;;  %v4173_v10 = vpop.f32.mrb[32].mxu1  ;;  %v1858_v22 = vpack.c.bf16 %v4098_v42, %v4068_v56  ;;  %v730_v63 = vadd.f32 %v4024_v12, %v3837_v28  ;;  %v953_v46 = vadd.f32 %v4026_v53, %v3839_v29  ;;  %3134 = verf.f32 %v1280_v13 }
 0x1a3   : > { %v4180_v51 = vpop.f32.mrb[33].mxu0  ;;  %v4182_v21 = vpop.f32.mrb[33].mxu1  ;;  %2234 = vmatprep.mubr.bf16.mxu1 %v1856_v34  ;;  %v1855_v48 = vpack.c.bf16 %v4079_v27, %v4029_v20  ;;  %v1857_v40 = vpack.c.bf16 %v4082_v5, %v4046_v4  ;;  %v732_v56 = vadd.f32 %v4031_v43, %v3841_v30  ;;  %v4209_v42 = vmul.f32 %v1575_v36, %v4086_v23 }
 0x1a4   : > { %5388 = vst [vmem:[#allocation18_spill] sm:$0xff] %v4182_v21  ;;  %v4188_v2 = vpop.f32.mrb[34].mxu0  ;;  %v4190_v39 = vpop.f32.mrb[34].mxu1  ;;  %v4211_v53 = vmul.f32 0.5, %v949_v19  ;;  %3136 = verf.f32 %v1282_v44  ;;  %2419 = vmatprep.mubr.bf16.mxu0 %v1858_v22  ;;  %v1576_v13 = vadd.f32 1.0, %v3119_v17  ;;  %v955_v43 = vadd.f32 %v4037_v14, %v3843_v0 }
 0x1a5   : > { %5389 = vst [vmem:[#allocation19_spill] sm:$0xff] %v4190_v39  ;;  %v3121_v9 = vpop.eup %3120  ;;  %v4198_v31 = vpop.f32.mrb[35].mxu0  ;;  %v1285_v39 = vmul.f32 0.70710677, %v953_v46  ;;  %2235 = vmatmul.mubr.bf16.gmra.mrb[84].mxu1 %v1855_v48  ;;  %2420 = vmatmul.mubr.bf16.gmra.mrb[84].mxu0 %v1857_v40  ;;  %v1284_v20 = vmul.f32 0.70710677, %v732_v56  ;;  %v736_v4 = vadd.f32 %v4055_v37, %v3837_v28  ;;  %v4218_v23 = vmul.f32 %v1577_v52, %v4102_v18 }
 0x1a6   : > { %5390 = vst [vmem:[#allocation20_spill] sm:$0xff] %v4198_v31  ;;  %v4200_v21 = vpop.f32.mrb[35].mxu1  ;;  %v3123_v24 = vpop.eup %3122  ;;  %v1578_v34 = vadd.f32 1.0, %v3121_v9  ;;  %v4220_v5 = vmul.f32 0.5, %v728_v25  ;;  %v959_v19 = vadd.f32 %v4057_v11, %v3839_v29  ;;  %v4228_v44 = vmul.f32 0.5, %v951_v58 }
 0x1a7   : > { %5391 = vst [vmem:[#allocation21_spill] sm:$0xff] %v4200_v21  ;;  %v3125_v12 = vpop.eup %3124  ;;  %v1283_v21 = vmul.f32 0.70710677, %v730_v63  ;;  %v1579_v31 = vadd.f32 1.0, %v3123_v24  ;;  %v1286_v14 = vmul.f32 0.70710677, %v955_v43  ;;  %v4232_v37 = vadd.f32 %v4063_v59, %v3841_v30 }
 0x1a8   : > { %v1581_v27 = vadd.f32 1.0, %v3125_v12  ;;  %v4239_v11 = vmul.f32 %v1576_v13, %v4108_v50  ;;  %v4242_v52 = vmul.f32 %v1578_v34, %v4125_v6  ;;  %v4244_v22 = vmul.f32 0.5, %v730_v63 }
 0x1a9   : > { %3138 = verf.f32 %v1283_v21  ;;  %v3127_v21 = vpop.eup %3126  ;;  %v1287_v58 = vmul.f32 0.70710677, %v736_v4  ;;  %v4249_v59 = vmul.f32 %v1579_v31, %v4152_v8  ;;  %v4251_v48 = vmul.f32 0.5, %v953_v46 }
 0x1aa   : > { %v4224_v36 = vpop.f32.mrb[36].mxu0  ;;  %v4226_v17 = vpop.f32.mrb[36].mxu1  ;;  %3140 = verf.f32 %v1285_v39  ;;  %v4253_v40 = vmul.f32 0.5, %v732_v56  ;;  %v4260_v63 = vmul.f32 %v1581_v27, %v4154_v54  ;;  %v1580_v13 = vadd.f32 1.0, %v3127_v21 }
 0x1ab   : > { %v4234_v18 = vpop.f32.mrb[37].mxu0  ;;  %v4236_v25 = vpop.f32.mrb[37].mxu1  ;;  %3142 = verf.f32 %v1284_v20  ;;  %v1289_v34 = vmul.f32 0.70710677, %v959_v19  ;;  %v4264_v31 = vmul.f32 0.5, %v955_v43  ;;  %v4267_v20 = vmul.f32 0.5, %v736_v4 }
 0x1ac   : > { %5392 = vst [vmem:[#allocation22_spill] sm:$0xff] %v4236_v25  ;;  %v3129_v9 = vpop.eup %3128  ;;  %v4246_v39 = vpop.f32.mrb[38].mxu0  ;;  %3144 = verf.f32 %v1286_v14  ;;  %v1288_v46 = vmul.f32 0.70710677, %v4232_v37  ;;  %v1860_v54 = vpack.c.bf16 %v4167_v62, %v4143_v15  ;;  %v1862_v27 = vpack.c.bf16 %v4176_v61, %v4146_v41 }
 0x1ad   : > { %5393 = vst [vmem:[#allocation23_spill] sm:$0xff] %v4246_v39  ;;  %v3131_v24 = vpop.eup %3130  ;;  %v4255_v12 = vpop.f32.mrb[38].mxu1  ;;  %v1582_v8 = vadd.f32 1.0, %v3129_v9  ;;  %3146 = verf.f32 %v1287_v58  ;;  %v4275_v43 = vmul.f32 0.5, %v959_v19  ;;  %v5398_v58 = vld [vmem:[#allocation13_spill] sm:$0xff]  ;;  %v1859_v15 = vpack.c.bf16 %v4161_v45, %v4115_v1 }
 0x1ae   : > { %5394 = vst [vmem:[#allocation24_spill] sm:$0xff] %v4255_v12  ;;  %v4257_v50 = vpop.f32.mrb[39].mxu0  ;;  %v3133_v6 = vpop.eup %3132  ;;  %v1583_v14 = vadd.f32 1.0, %v3131_v24  ;;  %3148 = verf.f32 %v1289_v34  ;;  %2242 = vmatprep.mubr.bf16.mxu1 %v1860_v54  ;;  %2427 = vmatprep.mubr.bf16.mxu0 %v1862_v27  ;;  %v4294_v27 = vmul.f32 %v1580_v13, %v4169_v57 }
 0x1af   : > { %5395 = vst [vmem:[#allocation25_spill] sm:$0xff] %v4257_v50  ;;  %v4262_v39 = vpop.f32.mrb[39].mxu1  ;;  %v3135_v56 = vpop.eup %3134  ;;  %v5397_v50 = vld [vmem:[#allocation12_spill] sm:$0xff]  ;;  %v1585_v9 = vadd.f32 1.0, %v3133_v6  ;;  %3150 = verf.f32 %v1288_v46  ;;  %v1861_v6 = vpack.c.bf16 %v4164_v16, %v4136_v3  ;;  %2243 = vmatmul.mubr.bf16.gmra.mrb[88].mxu1 %v1859_v15  ;;  %v742_v3 = vadd.f32 %v4088_v7, %v3841_v30  ;;  %v5401_v16 = vld [vmem:[#allocation15_spill] sm:$0xff] }
 0x1b0   : > { %5396 = vst [vmem:[#allocation26_spill] sm:$0xff] %v4262_v39  ;;  %v961_v12 = vadd.f32 %v5397_v50, %v3843_v0  ;;  %v3137_v21 = vpop.eup %3136  ;;  %v740_v39 = vadd.f32 %v5398_v58, %v3837_v28  ;;  %v5399_v50 = vld [vmem:[#allocation14_spill] sm:$0xff]  ;;  %v1584_v19 = vadd.f32 1.0, %v3135_v56  ;;  %v1734_v56 = vmul.f32 %v1582_v8, %v4178_v60 }
 0x1b1   : > { %v963_v25 = vadd.f32 %v5399_v50, %v3839_v29  ;;  %v1586_v58 = vadd.f32 1.0, %v3137_v21  ;;  %2428 = vmatmul.mubr.bf16.gmra.mrb[88].mxu0 %v1861_v6  ;;  %v965_v57 = vadd.f32 %v5401_v16, %v3843_v0  ;;  %v4310_v15 = vmul.f32 0.5, %v4232_v37 }
 0x1b2   : > { %v1290_v4 = vmul.f32 0.70710677, %v961_v12  ;;  %v4283_v62 = vpop.f32.mrb[40].mxu0  ;;  %v4285_v41 = vpop.f32.mrb[40].mxu1  ;;  %v1291_v24 = vmul.f32 0.70710677, %v740_v39  ;;  %v746_v60 = vadd.f32 %v4117_v35, %v3837_v28  ;;  %v4318_v7 = vmul.f32 %v1585_v9, %v4211_v53 }
 0x1b3   : > { %v3139_v61 = vpop.eup %3138  ;;  %v4289_v34 = vpop.f32.mrb[41].mxu0  ;;  %v1293_v1 = vmul.f32 0.70710677, %v963_v25  ;;  %v4321_v6 = vmul.f32 %v1584_v19, %v4220_v5  ;;  %v1292_v16 = vmul.f32 0.70710677, %v742_v3  ;;  %v4334_v53 = vadd.f32 %v4121_v47, %v3839_v29 }
 0x1b4   : > { %v4291_v54 = vpop.f32.mrb[41].mxu1  ;;  %3152 = verf.f32 %v1290_v4  ;;  %v4296_v45 = vpop.f32.mrb[42].mxu0  ;;  %v1587_v4 = vadd.f32 1.0, %v3139_v61  ;;  %v4324_v61 = vmul.f32 %v1586_v58, %v4228_v44  ;;  %v4341_v44 = vadd.f32 %v4123_v32, %v3841_v30 }
 0x1b5   : > { %v4298_v50 = vpop.f32.mrb[42].mxu1  ;;  %v3141_v46 = vpop.eup %3140  ;;  %3154 = verf.f32 %v1291_v24  ;;  %v4315_v24 = vmul.f32 %v1583_v14, %v4184_v49  ;;  %v4330_v49 = vmul.f32 0.5, %v963_v25  ;;  %v1295_v14 = vmul.f32 0.70710677, %v746_v60 }
 0x1b6   : > { %5400 = vst [vmem:[#allocation12_spill] sm:$0xff] %v4298_v50  ;;  %v4305_v13 = vpop.f32.mrb[43].mxu0  ;;  %v4307_v21 = vpop.f32.mrb[43].mxu1  ;;  %3156 = verf.f32 %v1293_v1  ;;  %v1589_v37 = vadd.f32 1.0, %v3141_v46  ;;  %v4326_v1 = vmul.f32 0.5, %v961_v12  ;;  %v4328_v50 = vmul.f32 0.5, %v740_v39 }
 0x1b7   : > { %5402 = vst [vmem:[#allocation13_spill] sm:$0xff] %v4305_v13  ;;  %5403 = vst [vmem:[#allocation14_spill] sm:$0xff] %v4307_v21  ;;  %v3143_v8 = vpop.eup %3142  ;;  %v1294_v13 = vmul.f32 0.70710677, %v965_v57  ;;  %v4337_v5 = vmul.f32 %v1587_v4, %v4244_v22  ;;  %3158 = verf.f32 %v1292_v16  ;;  %v4347_v19 = vmul.f32 0.5, %v742_v3 }
 0x1b8   : > { %v3145_v21 = vpop.eup %3144  ;;  %v1588_v9 = vadd.f32 1.0, %v3143_v8  ;;  %v1297_v47 = vmul.f32 0.70710677, %v4334_v53  ;;  %v4355_v4 = vmul.f32 %v1589_v37, %v4251_v48  ;;  %v4357_v8 = vmul.f32 0.5, %v965_v57 }
 0x1b9   : > { %v3147_v35 = vpop.eup %3146  ;;  %v1590_v25 = vadd.f32 1.0, %v3145_v21  ;;  %3160 = verf.f32 %v1294_v13  ;;  %v1296_v16 = vmul.f32 0.70710677, %v4341_v44  ;;  %v971_v21 = vadd.f32 %v4131_v38, %v3843_v0 }
 0x1ba   : > { %v4343_v12 = vpop.f32.mrb[44].mxu0  ;;  %v4345_v39 = vpop.f32.mrb[44].mxu1  ;;  %v1591_v32 = vadd.f32 1.0, %v3147_v35  ;;  %3162 = verf.f32 %v1295_v14  ;;  %v1866_v48 = vpack.c.bf16 %v1734_v56, %v4242_v52  ;;  %v5411_v14 = vld [vmem:[#allocation16_spill] sm:$0xff]  ;;  %v973_v38 = vadd.f32 %v4138_v26, %v3839_v29 }
 0x1bb   : > { %5404 = vst [vmem:[#allocation15_spill] sm:$0xff] %v4343_v12  ;;  %5405 = vst [vmem:[#allocation27_spill] sm:$0xff] %v4345_v39  ;;  %v4350_v58 = vpop.f32.mrb[45].mxu0  ;;  %v4352_v22 = vpop.f32.mrb[45].mxu1  ;;  %3164 = verf.f32 %v1297_v47  ;;  %v1298_v52 = vmul.f32 0.70710677, %v971_v21 }
 0x1bc   : > { %5406 = vst [vmem:[#allocation28_spill] sm:$0xff] %v4350_v58  ;;  %5407 = vst [vmem:[#allocation29_spill] sm:$0xff] %v4352_v22  ;;  %v3149_v46 = vpop.eup %3148  ;;  %v4360_v39 = vpop.f32.mrb[46].mxu0  ;;  %v1864_v22 = vpack.c.bf16 %v4294_v27, %v4239_v11  ;;  %v4374_v58 = vmul.f32 %v1588_v9, %v4253_v40  ;;  %v4383_v11 = vmul.f32 %v1590_v25, %v4264_v31  ;;  %2435 = vmatprep.mubr.bf16.mxu0 %v1866_v48 }
 0x1bd   : > { %5408 = vst [vmem:[#allocation30_spill] sm:$0xff] %v4360_v39  ;;  %v4362_v3 = vpop.f32.mrb[46].mxu1  ;;  %v3151_v13 = vpop.eup %3150  ;;  %v4376_v39 = vmul.f32 0.5, %v746_v60  ;;  %v1863_v40 = vpack.c.bf16 %v4249_v59, %v4209_v42  ;;  %v4388_v56 = vmul.f32 %v1591_v32, %v4267_v20  ;;  %v1593_v60 = vadd.f32 1.0, %v3149_v46 }
 0x1be   : > { %5409 = vst [vmem:[#allocation31_spill] sm:$0xff] %v4362_v3  ;;  %v4369_v37 = vpop.f32.mrb[47].mxu0  ;;  %v4371_v57 = vpop.f32.mrb[47].mxu1  ;;  %v750_v3 = vadd.f32 %v5411_v14, %v3837_v28  ;;  %2250 = vmatprep.mubr.bf16.mxu1 %v1864_v22  ;;  %3166 = verf.f32 %v1296_v16  ;;  %v1592_v14 = vadd.f32 1.0, %v3151_v13  ;;  %v1865_v25 = vpack.c.bf16 %v4260_v63, %v4218_v23  ;;  %v5412_v22 = vld [vmem:[#allocation17_spill] sm:$0xff] }
 0x1bf   : > { %5410 = vst [vmem:[#allocation32_spill] sm:$0xff] %v4371_v57  ;;  %v3153_v35 = vpop.eup %3152  ;;  %3168 = verf.f32 %v1298_v52  ;;  %v1301_v57 = vmul.f32 0.70710677, %v973_v38  ;;  %2251 = vmatmul.mubr.bf16.gmra.mrb[92].mxu1 %v1863_v40  ;;  %v752_v42 = vadd.f32 %v4140_v33, %v3841_v30  ;;  %v975_v46 = vadd.f32 %v5412_v22, %v3843_v0 }
 0x1c0   : > { %v3155_v12 = vpop.eup %3154  ;;  %v1299_v9 = vmul.f32 0.70710677, %v750_v3  ;;  %v1594_v26 = vadd.f32 1.0, %v3153_v35  ;;  %v756_v32 = vadd.f32 %v4171_v55, %v3837_v28  ;;  %v4407_v63 = vmul.f32 %v1593_v60, %v4275_v43  ;;  %2436 = vmatmul.mubr.bf16.gmra.mrb[92].mxu0 %v1865_v25 }
 0x1c1   : > { %v3157_v27 = vpop.eup %3156  ;;  %v1595_v31 = vadd.f32 1.0, %v3155_v12  ;;  %v4410_v33 = vmul.f32 0.5, %v4334_v53  ;;  %v1300_v13 = vmul.f32 0.70710677, %v752_v42  ;;  %v979_v48 = vadd.f32 %v4173_v10, %v3839_v29 }
 0x1c2   : > { %3170 = verf.f32 %v1299_v9  ;;  %v4394_v59 = vpop.f32.mrb[48].mxu0  ;;  %v4396_v20 = vpop.f32.mrb[48].mxu1  ;;  %v1597_v47 = vadd.f32 1.0, %v3157_v27  ;;  %v4419_v52 = vmul.f32 %v1592_v14, %v4310_v15  ;;  %v4422_v40 = vmul.f32 0.5, %v4341_v44 }
 0x1c3   : > { %3172 = verf.f32 %v1301_v57  ;;  %v4402_v12 = vpop.f32.mrb[49].mxu0  ;;  %v4404_v16 = vpop.f32.mrb[49].mxu1  ;;  %v4424_v43 = vmul.f32 0.5, %v971_v21  ;;  %v1302_v53 = vmul.f32 0.70710677, %v975_v46  ;;  %v4429_v60 = vmul.f32 %v1594_v26, %v4326_v1 }
 0x1c4   : > { %v3159_v23 = vpop.eup %3158  ;;  %v4414_v57 = vpop.f32.mrb[50].mxu0  ;;  %v4431_v10 = vmul.f32 0.5, %v750_v3  ;;  %v4433_v9 = vmul.f32 0.5, %v973_v38  ;;  %3174 = verf.f32 %v1300_v13  ;;  %v4438_v14 = vmul.f32 %v1595_v31, %v4328_v50  ;;  %v5416_v13 = vld [vmem:[#allocation18_spill] sm:$0xff] }
 0x1c5   : > { %v4416_v35 = vpop.f32.mrb[50].mxu1  ;;  %v3161_v55 = vpop.eup %3160  ;;  %v4441_v44 = vmul.f32 %v1597_v47, %v4330_v49  ;;  %v1596_v21 = vadd.f32 1.0, %v3159_v23  ;;  %v1303_v22 = vmul.f32 0.70710677, %v756_v32  ;;  %v1305_v1 = vmul.f32 0.70710677, %v979_v48 }
 0x1c6   : > { %5413 = vst [vmem:[#allocation16_spill] sm:$0xff] %v4416_v35  ;;  %v4426_v27 = vpop.f32.mrb[51].mxu0  ;;  %v4435_v25 = vpop.f32.mrb[51].mxu1  ;;  %v4443_v35 = vmul.f32 0.5, %v752_v42  ;;  %v758_v3 = vadd.f32 %v4180_v51, %v3841_v30  ;;  %v4447_v26 = vmul.f32 0.5, %v975_v46  ;;  %3176 = verf.f32 %v1302_v53 }
 0x1c7   : > { %5414 = vst [vmem:[#allocation17_spill] sm:$0xff] %v4426_v27  ;;  %5415 = vst [vmem:[#allocation33_spill] sm:$0xff] %v4435_v25  ;;  %v3163_v15 = vpop.eup %3162  ;;  %v1598_v27 = vadd.f32 1.0, %v3161_v55  ;;  %v981_v50 = vadd.f32 %v5416_v13, %v3843_v0  ;;  %v1868_v49 = vpack.c.bf16 %v4374_v58, %v4321_v6  ;;  %v4453_v23 = vmul.f32 0.5, %v756_v32 }
 0x1c8   : > { %v3165_v38 = vpop.eup %3164  ;;  %v1599_v47 = vadd.f32 1.0, %v3163_v15  ;;  %v1304_v42 = vmul.f32 0.70710677, %v758_v3  ;;  %v1870_v55 = vpack.c.bf16 %v4383_v11, %v4324_v61  ;;  %v4462_v53 = vmul.f32 %v1596_v21, %v4347_v19  ;;  %v5420_v11 = vld [vmem:[#allocation19_spill] sm:$0xff] }
 0x1c9   : > { %v3167_v31 = vpop.eup %3166  ;;  %3178 = verf.f32 %v1303_v22  ;;  %v1306_v13 = vmul.f32 0.70710677, %v981_v50  ;;  %2258 = vmatprep.mubr.bf16.mxu1 %v1868_v49  ;;  %v760_v6 = vadd.f32 %v4188_v2, %v3837_v28  ;;  %v4471_v61 = vmul.f32 %v1598_v27, %v4357_v8 }
 0x1ca   : > { %v4457_v25 = vpop.f32.mrb[52].mxu0  ;;  %v4459_v51 = vpop.f32.mrb[52].mxu1  ;;  %3180 = verf.f32 %v1305_v1  ;;  %2443 = vmatprep.mubr.bf16.mxu0 %v1870_v55  ;;  %v983_v19 = vadd.f32 %v5420_v11, %v3839_v29  ;;  %v1867_v21 = vpack.c.bf16 %v4337_v5, %v4315_v24  ;;  %v4488_v1 = vmul.f32 %v1599_v47, %v4376_v39 }
 0x1cb   : > { %5417 = vst [vmem:[#allocation18_spill] sm:$0xff] %v4459_v51  ;;  %v3169_v46 = vpop.eup %3168  ;;  %v4466_v58 = vpop.f32.mrb[53].mxu0  ;;  %v4481_v51 = vmul.f32 0.5, %v979_v48  ;;  %3182 = verf.f32 %v1304_v42  ;;  %v1600_v55 = vadd.f32 1.0, %v3167_v31  ;;  %v5425_v48 = vld [vmem:[#allocation20_spill] sm:$0xff]  ;;  %v766_v39 = vadd.f32 %v4224_v36, %v3837_v28 }
 0x1cc   : > { %5418 = vst [vmem:[#allocation34_spill] sm:$0xff] %v4466_v58  ;;  %v4468_v32 = vpop.f32.mrb[53].mxu1  ;;  %v3171_v15 = vpop.eup %3170  ;;  %v1601_v58 = vadd.f32 1.0, %v3165_v38  ;;  %v1602_v11 = vadd.f32 1.0, %v3169_v46  ;;  %3184 = verf.f32 %v1306_v13  ;;  %2259 = vmatmul.mubr.bf16.gmra.mrb[96].mxu1 %v1867_v21  ;;  %v1309_v5 = vmul.f32 0.70710677, %v983_v19 }
 0x1cd   : > { %5419 = vst [vmem:[#allocation35_spill] sm:$0xff] %v4468_v32  ;;  %v4477_v22 = vpop.f32.mrb[54].mxu0  ;;  %v4479_v49 = vpop.f32.mrb[54].mxu1  ;;  %v1307_v32 = vmul.f32 0.70710677, %v760_v6  ;;  %v1603_v24 = vadd.f32 1.0, %v3171_v15  ;;  %v1869_v38 = vpack.c.bf16 %v4355_v4, %v4318_v7  ;;  %v762_v42 = vadd.f32 %v5425_v48, %v3841_v30 }
 0x1ce   : > { %5421 = vst [vmem:[#allocation19_spill] sm:$0xff] %v4477_v22  ;;  %5422 = vst [vmem:[#allocation36_spill] sm:$0xff] %v4479_v49  ;;  %v3173_v2 = vpop.eup %3172  ;;  %v4483_v8 = vpop.f32.mrb[55].mxu0  ;;  %v4499_v31 = vmul.f32 %v1601_v58, %v4410_v33  ;;  %v4501_v47 = vmul.f32 0.5, %v758_v3  ;;  %v989_v7 = vadd.f32 %v4226_v17, %v3839_v29  ;;  %v4506_v4 = vmul.f32 %v1600_v55, %v4422_v40 }
 0x1cf   : > { %5423 = vst [vmem:[#allocation37_spill] sm:$0xff] %v4483_v8  ;;  %v4485_v27 = vpop.f32.mrb[55].mxu1  ;;  %v3175_v49 = vpop.eup %3174  ;;  %v1605_v22 = vadd.f32 1.0, %v3173_v2  ;;  %3186 = verf.f32 %v1307_v32  ;;  %2444 = vmatmul.mubr.bf16.gmra.mrb[96].mxu0 %v1869_v38  ;;  %v1308_v46 = vmul.f32 0.70710677, %v762_v42  ;;  %v4508_v13 = vmul.f32 0.5, %v981_v50 }
 0x1d0   : > { %5424 = vst [vmem:[#allocation38_spill] sm:$0xff] %v4485_v27  ;;  %v5426_v27 = vld [vmem:[#allocation21_spill] sm:$0xff]  ;;  %v4510_v32 = vmul.f32 0.5, %v760_v6  ;;  %v3177_v36 = vpop.eup %3176  ;;  %v4515_v33 = vmul.f32 %v1602_v11, %v4424_v43  ;;  %v1604_v3 = vadd.f32 1.0, %v3175_v49  ;;  %v4517_v58 = vmul.f32 0.5, %v983_v19 }
 0x1d1   : > { %v985_v8 = vadd.f32 %v5426_v27, %v3843_v0  ;;  %3188 = verf.f32 %v1309_v5  ;;  %v4524_v40 = vmul.f32 %v1603_v24, %v4431_v10  ;;  %v4527_v50 = vmul.f32 %v1605_v22, %v4433_v9  ;;  %v5431_v24 = vld [vmem:[#allocation22_spill] sm:$0xff] }
 0x1d2   : > { %v4512_v21 = vpop.f32.mrb[56].mxu0  ;;  %v4519_v2 = vpop.f32.mrb[56].mxu1  ;;  %3190 = verf.f32 %v1308_v46  ;;  %v1311_v6 = vmul.f32 0.70710677, %v766_v39  ;;  %v4533_v19 = vmul.f32 0.5, %v762_v42  ;;  %v768_v11 = vadd.f32 %v4234_v18, %v3841_v30 }
 0x1d3   : > { %v1310_v15 = vmul.f32 0.70710677, %v985_v8  ;;  %v4521_v17 = vpop.f32.mrb[57].mxu0  ;;  %v4529_v27 = vpop.f32.mrb[57].mxu1  ;;  %v1313_v55 = vmul.f32 0.70710677, %v989_v7  ;;  %v991_v38 = vadd.f32 %v5431_v24, %v3843_v0  ;;  %v1872_v48 = vpack.c.bf16 %v4462_v53, %v4419_v52 }
 0x1d4   : > { %5427 = vst [vmem:[#allocation20_spill] sm:$0xff] %v4529_v27  ;;  %v4531_v43 = vpop.f32.mrb[58].mxu0  ;;  %v3179_v49 = vpop.eup %3178  ;;  %v1606_v22 = vadd.f32 1.0, %v3177_v36  ;;  %v1874_v42 = vpack.c.bf16 %v4471_v61, %v4429_v60  ;;  %v4550_v18 = vmul.f32 %v1604_v3, %v4443_v35  ;;  %v1312_v36 = vmul.f32 0.70710677, %v768_v11  ;;  %v5432_v52 = vld [vmem:[#allocation23_spill] sm:$0xff] }
 0x1d5   : > { %5428 = vst [vmem:[#allocation21_spill] sm:$0xff] %v4531_v43  ;;  %3192 = verf.f32 %v1310_v15  ;;  %v4537_v5 = vpop.f32.mrb[58].mxu1  ;;  %v4539_v10 = vpop.f32.mrb[59].mxu0  ;;  %v1607_v27 = vadd.f32 1.0, %v3179_v49  ;;  %v1314_v24 = vmul.f32 0.70710677, %v991_v38  ;;  %2266 = vmatprep.mubr.bf16.mxu1 %v1872_v48  ;;  %v770_v60 = vadd.f32 %v5432_v52, %v3837_v28 }
 0x1d6   : > { %5429 = vst [vmem:[#allocation39_spill] sm:$0xff] %v4537_v5  ;;  %5430 = vst [vmem:[#allocation40_spill] sm:$0xff] %v4539_v10  ;;  %v3181_v9 = vpop.eup %3180  ;;  %v4547_v46 = vpop.f32.mrb[59].mxu1  ;;  %v4552_v5 = vmul.f32 0.5, %v985_v8  ;;  %v4554_v10 = vmul.f32 0.5, %v766_v39  ;;  %3194 = verf.f32 %v1311_v6  ;;  %2451 = vmatprep.mubr.bf16.mxu0 %v1874_v42  ;;  %v5433_v61 = vld [vmem:[#allocation24_spill] sm:$0xff]  ;;  %v1871_v8 = vpack.c.bf16 %v4438_v14, %v4388_v56 }
 0x1d7   : > { %v3183_v15 = vpop.eup %3182  ;;  %v1609_v53 = vadd.f32 1.0, %v3181_v9  ;;  %3196 = verf.f32 %v1313_v55  ;;  %v993_v35 = vadd.f32 %v5433_v61, %v3839_v29  ;;  %v4563_v3 = vmul.f32 %v1606_v22, %v4447_v26  ;;  %v5434_v14 = vld [vmem:[#allocation25_spill] sm:$0xff] }
 0x1d8   : > { %v3185_v43 = vpop.eup %3184  ;;  %v1608_v49 = vadd.f32 1.0, %v3183_v15  ;;  %v4565_v6 = vmul.f32 0.5, %v989_v7  ;;  %3198 = verf.f32 %v1312_v36  ;;  %v1315_v55 = vmul.f32 0.70710677, %v770_v60  ;;  %2267 = vmatmul.mubr.bf16.gmra.mrb[100].mxu1 %v1871_v8  ;;  %v5435_v7 = vld [vmem:[#allocation26_spill] sm:$0xff] }
 0x1d9   : > { %v3187_v39 = vpop.eup %3186  ;;  %v1610_v9 = vadd.f32 1.0, %v3185_v43  ;;  %3200 = verf.f32 %v1314_v24  ;;  %v1317_v52 = vmul.f32 0.70710677, %v993_v35  ;;  %v4572_v61 = vmul.f32 %v1607_v27, %v4453_v23 }
 0x1da   : > { %v4567_v48 = vpop.f32.mrb[60].mxu0  ;;  %v4569_v42 = vpop.f32.mrb[60].mxu1  ;;  %v1873_v56 = vpack.c.bf16 %v4441_v44, %v4407_v63  ;;  %v772_v26 = vadd.f32 %v5434_v14, %v3841_v30  ;;  %v995_v22 = vadd.f32 %v5435_v7, %v3843_v0  ;;  %v4585_v24 = vmul.f32 %v1609_v53, %v4481_v51 }
 0x1db   : > { %v4580_v15 = vpop.f32.mrb[61].mxu0  ;;  %v4582_v36 = vpop.f32.mrb[61].mxu1  ;;  %v1611_v8 = vadd.f32 1.0, %v3187_v39  ;;  %3202 = verf.f32 %v1315_v55  ;;  %v776_v23 = vadd.f32 %v4283_v62, %v3837_v28  ;;  %v4593_v14 = vmul.f32 0.5, %v768_v11 }
 0x1dc   : > { %5436 = vst [vmem:[#allocation22_spill] sm:$0xff] %v4580_v15  ;;  %5437 = vst [vmem:[#allocation23_spill] sm:$0xff] %v4582_v36  ;;  %v3189_v43 = vpop.eup %3188  ;;  %v4589_v63 = vpop.f32.mrb[62].mxu0  ;;  %3204 = verf.f32 %v1317_v52  ;;  %2452 = vmatmul.mubr.bf16.gmra.mrb[100].mxu0 %v1873_v56  ;;  %v1316_v7 = vmul.f32 0.70710677, %v772_v26  ;;  %v4597_v36 = vadd.f32 %v4285_v41, %v3839_v29  ;;  %v4604_v62 = vmul.f32 %v1608_v49, %v4501_v47 }
 0x1dd   : > { %5438 = vst [vmem:[#allocation24_spill] sm:$0xff] %v4589_v63  ;;  %v4591_v44 = vpop.f32.mrb[62].mxu1  ;;  %v3191_v27 = vpop.eup %3190  ;;  %v4607_v55 = vmul.f32 %v1610_v9, %v4508_v13  ;;  %v4609_v11 = vmul.f32 0.5, %v991_v38  ;;  %v1318_v52 = vmul.f32 0.70710677, %v995_v22  ;;  %v1613_v56 = vadd.f32 1.0, %v3189_v43 }
 0x1de   : > { %5439 = vst [vmem:[#allocation25_spill] sm:$0xff] %v4591_v44  ;;  %v4599_v51 = vpop.f32.mrb[63].mxu0  ;;  %v4601_v53 = vpop.f32.mrb[63].mxu1  ;;  %v4611_v44 = vmul.f32 0.5, %v770_v60  ;;  %v4613_v63 = vmul.f32 0.5, %v993_v35  ;;  %v4618_v15 = vmul.f32 0.5, %v772_v26  ;;  %3206 = verf.f32 %v1316_v7 }
 0x1df   : > { %5440 = vst [vmem:[#allocation26_spill] sm:$0xff] %v4599_v51  ;;  %5441 = vst [vmem:[#allocation41_spill] sm:$0xff] %v4601_v53  ;;  %v3193_v39 = vpop.eup %3192  ;;  %v1319_v41 = vmul.f32 0.70710677, %v776_v23  ;;  %v4616_v51 = vmul.f32 %v1611_v8, %v4510_v32  ;;  %v1612_v53 = vadd.f32 1.0, %v3191_v27  ;;  %3208 = verf.f32 %v1318_v52 }
 0x1e0   : > { %v3195_v47 = vpop.eup %3194  ;;  %v1614_v49 = vadd.f32 1.0, %v3193_v39  ;;  %v1321_v13 = vmul.f32 0.70710677, %v4597_v36  ;;  %v778_v38 = vadd.f32 %v4289_v34, %v3841_v30  ;;  %v1001_v32 = vadd.f32 %v4291_v54, %v3843_v0 }
 0x1e1   : > { %v3197_v9 = vpop.eup %3196  ;;  %3210 = verf.f32 %v1319_v41  ;;  %v1876_v26 = vpack.c.bf16 %v4550_v18, %v4506_v4  ;;  %v1878_v43 = vpack.c.bf16 %v4563_v3, %v4515_v33  ;;  %v4638_v7 = vmul.f32 %v1613_v56, %v4517_v58 }
 0x1e2   : > { %v4623_v60 = vpop.f32.mrb[64].mxu0  ;;  %v4625_v35 = vpop.f32.mrb[64].mxu1  ;;  %v4640_v39 = vmul.f32 0.5, %v995_v22  ;;  %v4642_v52 = vmul.f32 0.5, %v776_v23  ;;  %v1320_v41 = vmul.f32 0.70710677, %v778_v38  ;;  %v4649_v33 = vmul.f32 %v1612_v53, %v4533_v19 }
 0x1e3   : > { %5442 = vst [vmem:[#allocation42_spill] sm:$0xff] %v4625_v35  ;;  %v4633_v8 = vpop.f32.mrb[65].mxu0  ;;  %v4635_v27 = vpop.f32.mrb[65].mxu1  ;;  %v1615_v18 = vadd.f32 1.0, %v3195_v47  ;;  %v1322_v3 = vmul.f32 0.70710677, %v1001_v32  ;;  %2274 = vmatprep.mubr.bf16.mxu1 %v1876_v26  ;;  %2459 = vmatprep.mubr.bf16.mxu0 %v1878_v43  ;;  %v780_v58 = vadd.f32 %v4296_v45, %v3837_v28  ;;  %v4658_v56 = vmul.f32 %v1614_v49, %v4552_v5 }
 0x1e4   : > { %5443 = vst [vmem:[#allocation43_spill] sm:$0xff] %v4635_v27  ;;  %v3199_v34 = vpop.eup %3198  ;;  %v4644_v54 = vpop.f32.mrb[66].mxu0  ;;  %3212 = verf.f32 %v1321_v13  ;;  %v1875_v19 = vpack.c.bf16 %v4524_v40, %v4488_v1  ;;  %v1617_v47 = vadd.f32 1.0, %v3197_v9  ;;  %v1877_v5 = vpack.c.bf16 %v4527_v50, %v4499_v31  ;;  %v5449_v13 = vld [vmem:[#allocation13_spill] sm:$0xff]  ;;  %v5450_v1 = vld [vmem:[#allocation14_spill] sm:$0xff] }
 0x1e5   : > { %5444 = vst [vmem:[#allocation44_spill] sm:$0xff] %v4644_v54  ;;  %v4646_v35 = vpop.f32.mrb[66].mxu1  ;;  %v3201_v4 = vpop.eup %3200  ;;  %v1616_v26 = vadd.f32 1.0, %v3199_v34  ;;  %3214 = verf.f32 %v1320_v41  ;;  %v1323_v43 = vmul.f32 0.70710677, %v780_v58  ;;  %v1005_v40 = vadd.f32 %v5450_v1, %v3843_v0  ;;  %v5451_v41 = vld [vmem:[#allocation15_spill] sm:$0xff] }
 0x1e6   : > { %5445 = vst [vmem:[#allocation45_spill] sm:$0xff] %v4646_v35  ;;  %v4653_v22 = vpop.f32.mrb[67].mxu0  ;;  %v4655_v23 = vpop.f32.mrb[67].mxu1  ;;  %v5448_v35 = vld [vmem:[#allocation12_spill] sm:$0xff]  ;;  %v1618_v27 = vadd.f32 1.0, %v3201_v4  ;;  %3216 = verf.f32 %v1322_v3  ;;  %2275 = vmatmul.mubr.bf16.gmra.mrb[104].mxu1 %v1875_v19  ;;  %v4671_v34 = vmul.f32 0.5, %v4597_v36  ;;  %2460 = vmatmul.mubr.bf16.gmra.mrb[104].mxu0 %v1877_v5  ;;  %v786_v4 = vadd.f32 %v5451_v41, %v3837_v28 }
 0x1e7   : > { %5446 = vst [vmem:[#allocation46_spill] sm:$0xff] %v4653_v22  ;;  %5447 = vst [vmem:[#allocation47_spill] sm:$0xff] %v4655_v23  ;;  %v1003_v54 = vadd.f32 %v5448_v35, %v3839_v29  ;;  %v3203_v53 = vpop.eup %3202  ;;  %3218 = verf.f32 %v1323_v43  ;;  %v782_v35 = vadd.f32 %v5449_v13, %v3841_v30  ;;  %v4680_v19 = vmul.f32 %v1615_v18, %v4554_v10  ;;  %v5454_v36 = vld [vmem:[#allocation27_spill] sm:$0xff] }
 0x1e8   : > { %v3205_v45 = vpop.eup %3204  ;;  %v1619_v49 = vadd.f32 1.0, %v3203_v53  ;;  %v4683_v53 = vmul.f32 %v1617_v47, %v4565_v6  ;;  %v4692_v1 = vmul.f32 %v1616_v26, %v4593_v14  ;;  %v4694_v41 = vmul.f32 0.5, %v778_v38 }
 0x1e9   : > { %v1325_v22 = vmul.f32 0.70710677, %v1003_v54  ;;  %v1621_v9 = vadd.f32 1.0, %v3205_v45  ;;  %v3207_v50 = vpop.eup %3206  ;;  %v1324_v43 = vmul.f32 0.70710677, %v782_v35  ;;  %v1009_v45 = vadd.f32 %v5454_v36, %v3839_v29 }
 0x1ea   : > { %v4675_v3 = vpop.f32.mrb[68].mxu0  ;;  %v4677_v31 = vpop.f32.mrb[68].mxu1  ;;  %v1326_v10 = vmul.f32 0.70710677, %v1005_v40  ;;  %v4701_v47 = vmul.f32 %v1618_v27, %v4609_v11  ;;  %v4704_v36 = vmul.f32 %v1619_v49, %v4611_v44  ;;  %v1620_v26 = vadd.f32 1.0, %v3207_v50  ;;  %v5460_v27 = vld [vmem:[#allocation28_spill] sm:$0xff] }
 0x1eb   : > { %3220 = verf.f32 %v1325_v22  ;;  %5452 = vst [vmem:[#allocation12_spill] sm:$0xff] %v4675_v3  ;;  %5453 = vst [vmem:[#allocation13_spill] sm:$0xff] %v4677_v31  ;;  %v4687_v22 = vpop.f32.mrb[69].mxu0  ;;  %v4689_v5 = vpop.f32.mrb[69].mxu1  ;;  %v4696_v31 = vmul.f32 0.5, %v1001_v32  ;;  %v4715_v32 = vmul.f32 %v1621_v9, %v4613_v63  ;;  %v1880_v63 = vpack.c.bf16 %v4649_v33, %v4604_v62  ;;  %v5462_v62 = vld [vmem:[#allocation30_spill] sm:$0xff] }
 0x1ec   : > { %5455 = vst [vmem:[#allocation14_spill] sm:$0xff] %v4687_v22  ;;  %5456 = vst [vmem:[#allocation15_spill] sm:$0xff] %v4689_v5  ;;  %v3209_v13 = vpop.eup %3208  ;;  %v4698_v18 = vpop.f32.mrb[70].mxu0  ;;  %v4706_v22 = vmul.f32 0.5, %v780_v58  ;;  %v4708_v5 = vmul.f32 0.5, %v1003_v54  ;;  %3222 = verf.f32 %v1324_v43  ;;  %v788_v58 = vadd.f32 %v5460_v27, %v3841_v30 }
 0x1ed   : > { %5457 = vst [vmem:[#allocation27_spill] sm:$0xff] %v4698_v18  ;;  %v3211_v6 = vpop.eup %3210  ;;  %v4710_v14 = vpop.f32.mrb[70].mxu1  ;;  %v1327_v18 = vmul.f32 0.70710677, %v786_v4  ;;  %v1622_v11 = vadd.f32 1.0, %v3209_v13  ;;  %3224 = verf.f32 %v1326_v10  ;;  %v1882_v9 = vpack.c.bf16 %v4658_v56, %v4607_v55  ;;  %2282 = vmatprep.mubr.bf16.mxu1 %v1880_v63 }
 0x1ee   : > { %5458 = vst [vmem:[#allocation48_spill] sm:$0xff] %v4710_v14  ;;  %v4712_v38 = vpop.f32.mrb[71].mxu0  ;;  %v4717_v3 = vpop.f32.mrb[71].mxu1  ;;  %v1329_v44 = vmul.f32 0.70710677, %v1009_v45  ;;  %v1623_v49 = vadd.f32 1.0, %v3211_v6  ;;  %v4734_v6 = vmul.f32 %v1620_v26, %v4618_v15  ;;  %v790_v33 = vadd.f32 %v5462_v62, %v3837_v28 }
 0x1ef   : > { %5459 = vst [vmem:[#allocation49_spill] sm:$0xff] %v4717_v3  ;;  %v3213_v54 = vpop.eup %3212  ;;  %v5461_v14 = vld [vmem:[#allocation29_spill] sm:$0xff]  ;;  %v4727_v43 = vmul.f32 0.5, %v782_v35  ;;  %v4729_v13 = vmul.f32 0.5, %v1005_v40  ;;  %v4731_v10 = vmul.f32 0.5, %v786_v4  ;;  %3226 = verf.f32 %v1327_v18  ;;  %2467 = vmatprep.mubr.bf16.mxu0 %v1882_v9  ;;  %v5465_v4 = vld [vmem:[#allocation31_spill] sm:$0xff] }
 0x1f0   : > { %v1011_v23 = vadd.f32 %v5461_v14, %v3843_v0  ;;  %v3215_v50 = vpop.eup %3214  ;;  %v1328_v3 = vmul.f32 0.70710677, %v788_v58  ;;  %v4743_v40 = vmul.f32 %v1622_v11, %v4640_v39  ;;  %3228 = verf.f32 %v1329_v44 }
 0x1f1   : > { %v3217_v27 = vpop.eup %3216  ;;  %v1013_v15 = vadd.f32 %v5465_v4, %v3839_v29  ;;  %v1879_v18 = vpack.c.bf16 %v4616_v51, %v4572_v61  ;;  %v4754_v62 = vmul.f32 %v1623_v49, %v4642_v52  ;;  %v1624_v44 = vadd.f32 1.0, %v3215_v50 }
 0x1f2   : > { %v1330_v14 = vmul.f32 0.70710677, %v1011_v23  ;;  %v4738_v55 = vpop.f32.mrb[72].mxu0  ;;  %v4740_v56 = vpop.f32.mrb[72].mxu1  ;;  %3230 = verf.f32 %v1328_v3  ;;  %v1331_v4 = vmul.f32 0.70710677, %v790_v33  ;;  %v792_v52 = vadd.f32 %v4369_v37, %v3841_v30 }
 0x1f3   : > { %5463 = vst [vmem:[#allocation28_spill] sm:$0xff] %v4738_v55  ;;  %5464 = vst [vmem:[#allocation29_spill] sm:$0xff] %v4740_v56  ;;  %v3219_v35 = vpop.eup %3218  ;;  %v4749_v26 = vpop.f32.mrb[73].mxu0  ;;  %v1625_v56 = vadd.f32 1.0, %v3213_v54  ;;  %v4756_v55 = vmul.f32 0.5, %v1009_v45  ;;  %2283 = vmatmul.mubr.bf16.gmra.mrb[108].mxu1 %v1879_v18  ;;  %v1626_v51 = vadd.f32 1.0, %v3217_v27 }
 0x1f4   : > { %v4751_v63 = vpop.f32.mrb[73].mxu1  ;;  %v4758_v39 = vpop.f32.mrb[74].mxu0  ;;  %3232 = verf.f32 %v1330_v14  ;;  %v1333_v61 = vmul.f32 0.70710677, %v1013_v15  ;;  %v5468_v45 = vld [vmem:[#allocation32_spill] sm:$0xff]  ;;  %v796_v14 = vadd.f32 %v4394_v59, %v3837_v28 }
 0x1f5   : > { %5466 = vst [vmem:[#allocation30_spill] sm:$0xff] %v4751_v63  ;;  %v3221_v9 = vpop.eup %3220  ;;  %v4760_v11 = vpop.f32.mrb[74].mxu1  ;;  %v1881_v63 = vpack.c.bf16 %v4638_v7, %v4585_v24  ;;  %v1015_v54 = vadd.f32 %v5468_v45, %v3843_v0  ;;  %3234 = verf.f32 %v1331_v4  ;;  %v4775_v18 = vmul.f32 %v1625_v56, %v4671_v34 }
 0x1f6   : > { %5467 = vst [vmem:[#allocation31_spill] sm:$0xff] %v4760_v11  ;;  %v4768_v3 = vpop.f32.mrb[75].mxu0  ;;  %v4770_v49 = vpop.f32.mrb[75].mxu1  ;;  %v1627_v11 = vadd.f32 1.0, %v3219_v35  ;;  %v1629_v50 = vadd.f32 1.0, %v3221_v9  ;;  %3236 = verf.f32 %v1333_v61  ;;  %v1019_v24 = vadd.f32 %v4396_v20, %v3839_v29 }
 0x1f7   : > { %v3223_v27 = vpop.eup %3222  ;;  %2468 = vmatmul.mubr.bf16.gmra.mrb[108].mxu0 %v1881_v63  ;;  %v1332_v37 = vmul.f32 0.70710677, %v792_v52  ;;  %v4780_v45 = vmul.f32 %v1624_v44, %v4694_v41  ;;  %v4782_v35 = vmul.f32 0.5, %v788_v58  ;;  %v4784_v9 = vmul.f32 0.5, %v1011_v23 }
 0x1f8   : > { %v3225_v7 = vpop.eup %3224  ;;  %v1334_v4 = vmul.f32 0.70710677, %v1015_v54  ;;  %v4787_v59 = vmul.f32 %v1626_v51, %v4696_v31  ;;  %v4789_v34 = vmul.f32 0.5, %v790_v33  ;;  %v4791_v56 = vmul.f32 0.5, %v1013_v15 }
 0x1f9   : > { %v1335_v63 = vmul.f32 0.70710677, %v796_v14  ;;  %v4794_v61 = vmul.f32 %v1627_v11, %v4706_v22  ;;  %v4797_v20 = vmul.f32 %v1629_v50, %v4708_v5  ;;  %v1628_v41 = vadd.f32 1.0, %v3223_v27  ;;  %v3227_v58 = vpop.eup %3226 }
 0x1fa   : > { %3238 = verf.f32 %v1332_v37  ;;  %v1630_v23 = vadd.f32 1.0, %v3225_v7  ;;  %v1337_v44 = vmul.f32 0.70710677, %v1019_v24  ;;  %v798_v31 = vadd.f32 %v4402_v12, %v3841_v30  ;;  %v3229_v33 = vpop.eup %3228 }
 0x1fb   : > { %3240 = verf.f32 %v1334_v4  ;;  %v1021_v15 = vadd.f32 %v4404_v16, %v3843_v0  ;;  %v1884_v22 = vpack.c.bf16 %v4734_v6, %v4692_v1  ;;  %v1886_v5 = vpack.c.bf16 %v4743_v40, %v4701_v47  ;;  %v5469_v6 = vld [vmem:[#allocation16_spill] sm:$0xff] }
 0x1fc   : > { %3242 = verf.f32 %v1335_v63  ;;  %v3231_v11 = vpop.eup %3230  ;;  %v4807_v51 = vmul.f32 0.5, %v792_v52  ;;  %v4809_v50 = vmul.f32 0.5, %v1015_v54  ;;  %v4811_v27 = vmul.f32 0.5, %v796_v14 }
 0x1fd   : > { %v1336_v37 = vmul.f32 0.70710677, %v798_v31  ;;  %v4814_v7 = vmul.f32 %v1628_v41, %v4727_v43  ;;  %v1631_v4 = vadd.f32 1.0, %v3227_v58  ;;  %v1338_v16 = vmul.f32 0.70710677, %v1021_v15  ;;  %2290 = vmatprep.mubr.bf16.mxu1 %v1884_v22  ;;  %2475 = vmatprep.mubr.bf16.mxu0 %v1886_v5 }
 0x1fe   : > { %v3233_v12 = vpop.eup %3232  ;;  %v800_v1 = vadd.f32 %v4414_v57, %v3837_v28  ;;  %v1782_v47 = vmul.f32 %v1630_v23, %v4729_v13  ;;  %3244 = verf.f32 %v1337_v44  ;;  %v1023_v40 = vadd.f32 %v5469_v6, %v3839_v29  ;;  %v5470_v23 = vld [vmem:[#allocation17_spill] sm:$0xff] }
 0x1ff   : > { %v1883_v52 = vpack.c.bf16 %v4704_v36, %v4680_v19  ;;  %v3235_v54 = vpop.eup %3234  ;;  %v1633_v14 = vadd.f32 1.0, %v3229_v33  ;;  %v1632_v43 = vadd.f32 1.0, %v3231_v11  ;;  %v4823_v63 = vmul.f32 0.5, %v1019_v24  ;;  %v5471_v19 = vld [vmem:[#allocation33_spill] sm:$0xff] }
 0x200   : > { %v1339_v41 = vmul.f32 0.70710677, %v800_v1  ;;  %v3237_v58 = vpop.eup %3236  ;;  %v1634_v22 = vadd.f32 1.0, %v3233_v12  ;;  %3246 = verf.f32 %v1336_v37  ;;  %v1341_v5 = vmul.f32 0.70710677, %v1023_v40 }
 0x201   : > { %2291 = vmatmul.mubr.bf16.gmra.mrb[112].mxu1 %v1883_v52  ;;  %v1885_v57 = vpack.c.bf16 %v4715_v32, %v4683_v53  ;;  %v1635_v13 = vadd.f32 1.0, %v3235_v54  ;;  %3248 = verf.f32 %v1338_v16  ;;  %v802_v44 = vadd.f32 %v5470_v23, %v3841_v30  ;;  %v5472_v16 = vld [vmem:[#allocation18_spill] sm:$0xff] }
 0x202   : > { %v1025_v36 = vadd.f32 %v5471_v19, %v3843_v0  ;;  %v4832_v24 = vmul.f32 %v1631_v4, %v4731_v10  ;;  %v1637_v33 = vadd.f32 1.0, %v3237_v58  ;;  %3250 = verf.f32 %v1339_v41 }
 0x203   : > { %2476 = vmatmul.mubr.bf16.gmra.mrb[112].mxu0 %v1885_v57  ;;  %v806_v11 = vadd.f32 %v4457_v25, %v3837_v28  ;;  %v4837_v53 = vmul.f32 %v1633_v14, %v4756_v55  ;;  %v4839_v32 = vmul.f32 0.5, %v798_v31  ;;  %v1340_v12 = vmul.f32 0.70710677, %v802_v44  ;;  %v5473_v57 = vld [vmem:[#allocation34_spill] sm:$0xff] }
 0x204   : > { %v3239_v37 = vpop.eup %3238  ;;  %v1029_v6 = vadd.f32 %v5472_v16, %v3839_v29  ;;  %v4844_v10 = vmul.f32 %v1632_v43, %v4782_v35  ;;  %v4846_v4 = vmul.f32 0.5, %v1021_v15  ;;  %3252 = verf.f32 %v1341_v5 }
 0x205   : > { %v3241_v52 = vpop.eup %3240  ;;  %v1342_v54 = vmul.f32 0.70710677, %v1025_v36  ;;  %v4849_v25 = vmul.f32 %v1634_v22, %v4784_v9  ;;  %v4852_v55 = vmul.f32 %v1635_v13, %v4789_v34  ;;  %v4854_v31 = vmul.f32 0.5, %v800_v1  ;;  %v5474_v34 = vld [vmem:[#allocation35_spill] sm:$0xff] }
 0x206   : > { %v3243_v41 = vpop.eup %3242  ;;  %v4856_v14 = vmul.f32 0.5, %v1023_v40  ;;  %v4859_v58 = vmul.f32 %v1637_v33, %v4791_v56  ;;  %v1636_v35 = vadd.f32 1.0, %v3239_v37  ;;  %3254 = verf.f32 %v1340_v12 }
 0x207   : > { %v1343_v15 = vmul.f32 0.70710677, %v806_v11  ;;  %v1638_v43 = vadd.f32 1.0, %v3241_v52  ;;  %3256 = verf.f32 %v1342_v54  ;;  %v1345_v5 = vmul.f32 0.70710677, %v1029_v6  ;;  %v5475_v54 = vld [vmem:[#allocation19_spill] sm:$0xff] }
 0x208   : > { %v808_v9 = vadd.f32 %v5473_v57, %v3841_v30  ;;  %v3245_v22 = vpop.eup %3244  ;;  %v1639_v23 = vadd.f32 1.0, %v3243_v41  ;;  %v1031_v1 = vadd.f32 %v5474_v34, %v3843_v0  ;;  %v1888_v40 = vpack.c.bf16 %v4814_v7, %v4780_v45 }
 0x209   : > { %v1890_v56 = vpack.c.bf16 %v1782_v47, %v4787_v59  ;;  %v4868_v13 = vmul.f32 0.5, %v802_v44  ;;  %v4870_v19 = vmul.f32 0.5, %v1025_v36  ;;  %v4872_v33 = vmul.f32 0.5, %v806_v11  ;;  %v5476_v47 = vld [vmem:[#allocation36_spill] sm:$0xff] }
 0x20a   : > { %v1344_v37 = vmul.f32 0.70710677, %v808_v9  ;;  %v3247_v12 = vpop.eup %3246  ;;  %v4875_v16 = vmul.f32 %v1636_v35, %v4807_v51  ;;  %3258 = verf.f32 %v1343_v15  ;;  %v1346_v52 = vmul.f32 0.70710677, %v1031_v1  ;;  %2298 = vmatprep.mubr.bf16.mxu1 %v1888_v40 }
 0x20b   : > { %2483 = vmatprep.mubr.bf16.mxu0 %v1890_v56  ;;  %v810_v45 = vadd.f32 %v5475_v54, %v3837_v28  ;;  %v3249_v7 = vpop.eup %3248  ;;  %v1641_v59 = vadd.f32 1.0, %v3245_v22  ;;  %3260 = verf.f32 %v1345_v5  ;;  %v1033_v44 = vadd.f32 %v5476_v47, %v3839_v29 }
 0x20c   : > { %v1887_v36 = vpack.c.bf16 %v4794_v61, %v4754_v62  ;;  %v3251_v11 = vpop.eup %3250  ;;  %v1790_v51 = vmul.f32 %v1638_v43, %v4809_v50  ;;  %v4885_v41 = vmul.f32 %v1639_v23, %v4811_v27  ;;  %v4887_v35 = vmul.f32 0.5, %v1029_v6  ;;  %v5477_v62 = vld [vmem:[#allocation37_spill] sm:$0xff]  ;;  %v5478_v50 = vld [vmem:[#allocation38_spill] sm:$0xff] }
 0x20d   : > { %3262 = verf.f32 %v1344_v37  ;;  %v1640_v15 = vadd.f32 1.0, %v3247_v12  ;;  %v1347_v57 = vmul.f32 0.70710677, %v810_v45  ;;  %v1349_v22 = vmul.f32 0.70710677, %v1033_v44 }
 0x20e   : > { %3264 = verf.f32 %v1346_v52  ;;  %2299 = vmatmul.mubr.bf16.gmra.mrb[116].mxu1 %v1887_v36  ;;  %v3253_v5 = vpop.eup %3252  ;;  %v1642_v34 = vadd.f32 1.0, %v3249_v7  ;;  %v1889_v40 = vpack.c.bf16 %v4797_v20, %v4775_v18  ;;  %v812_v61 = vadd.f32 %v5477_v62, %v3841_v30 }
 0x20f   : > { %v1035_v27 = vadd.f32 %v5478_v50, %v3843_v0  ;;  %v4896_v6 = vmul.f32 %v1641_v59, %v4823_v63  ;;  %v1643_v43 = vadd.f32 1.0, %v3251_v11  ;;  %3266 = verf.f32 %v1347_v57  ;;  %v5479_v57 = vld [vmem:[#allocation20_spill] sm:$0xff] }
 0x210   : > { %v816_v23 = vadd.f32 %v4512_v21, %v3837_v28  ;;  %v3255_v56 = vpop.eup %3254  ;;  %v4900_v37 = vmul.f32 0.5, %v808_v9  ;;  %v4902_v12 = vmul.f32 0.5, %v1031_v1  ;;  %2484 = vmatmul.mubr.bf16.gmra.mrb[116].mxu0 %v1889_v40  ;;  %v1348_v18 = vmul.f32 0.70710677, %v812_v61 }
 0x211   : > { %v1039_v20 = vadd.f32 %v4519_v2, %v3839_v29  ;;  %v3257_v52 = vpop.eup %3256  ;;  %v4907_v54 = vmul.f32 %v1640_v15, %v4839_v32  ;;  %v1645_v63 = vadd.f32 1.0, %v3253_v5  ;;  %3268 = verf.f32 %v1349_v22 }
 0x212   : > { %v1350_v7 = vmul.f32 0.70710677, %v1035_v27  ;;  %v4910_v59 = vmul.f32 %v1642_v34, %v4846_v4  ;;  %v4912_v21 = vmul.f32 0.5, %v810_v45  ;;  %3270 = verf.f32 %v1348_v18 }
 0x213   : > { %v1351_v9 = vmul.f32 0.70710677, %v816_v23  ;;  %v4915_v1 = vmul.f32 %v1643_v43, %v4854_v31  ;;  %v1644_v47 = vadd.f32 1.0, %v3255_v56  ;;  %v4917_v36 = vmul.f32 0.5, %v1033_v44 }
 0x214   : > { %3272 = verf.f32 %v1350_v7  ;;  %v3259_v2 = vpop.eup %3258  ;;  %v1646_v32 = vadd.f32 1.0, %v3257_v52  ;;  %v1353_v11 = vmul.f32 0.70710677, %v1039_v20  ;;  %v818_v15 = vadd.f32 %v4521_v17, %v3841_v30 }
 0x215   : > { %3274 = verf.f32 %v1351_v9  ;;  %v3261_v4 = vpop.eup %3260  ;;  %v4922_v45 = vmul.f32 %v1645_v63, %v4856_v14  ;;  %v1041_v22 = vadd.f32 %v5479_v57, %v3843_v0  ;;  %v1892_v31 = vpack.c.bf16 %v4875_v16, %v4844_v10  ;;  %v5480_v10 = vld [vmem:[#allocation21_spill] sm:$0xff] }
 0x216   : > { %v1894_v44 = vpack.c.bf16 %v1790_v51, %v4849_v25  ;;  %v4929_v34 = vmul.f32 0.5, %v812_v61  ;;  %v4931_v40 = vmul.f32 0.5, %v1035_v27  ;;  %v4933_v62 = vmul.f32 0.5, %v816_v23  ;;  %v5481_v51 = vld [vmem:[#allocation39_spill] sm:$0xff] }
 0x217   : > { %v3263_v5 = vpop.eup %3262  ;;  %v1352_v17 = vmul.f32 0.70710677, %v818_v15  ;;  %v4936_v14 = vmul.f32 %v1644_v47, %v4868_v13  ;;  %v1647_v43 = vadd.f32 1.0, %v3259_v2  ;;  %v1354_v56 = vmul.f32 0.70710677, %v1041_v22  ;;  %2306 = vmatprep.mubr.bf16.mxu1 %v1892_v31  ;;  %v5482_v2 = vld [vmem:[#allocation40_spill] sm:$0xff] }
 0x218   : > { %v3265_v50 = vpop.eup %3264  ;;  %2491 = vmatprep.mubr.bf16.mxu0 %v1894_v44  ;;  %v820_v16 = vadd.f32 %v5480_v10, %v3837_v28  ;;  %v1798_v25 = vmul.f32 %v1646_v32, %v4870_v19  ;;  %3276 = verf.f32 %v1353_v11  ;;  %v1043_v61 = vadd.f32 %v5481_v51, %v3839_v29 }
 0x219   : > { %v1891_v27 = vpack.c.bf16 %v4852_v55, %v4832_v24  ;;  %v3267_v23 = vpop.eup %3266  ;;  %v1649_v18 = vadd.f32 1.0, %v3261_v4  ;;  %v1648_v13 = vadd.f32 1.0, %v3263_v5  ;;  %3278 = verf.f32 %v1352_v17 }
 0x21a   : > { %v1355_v52 = vmul.f32 0.70710677, %v820_v16  ;;  %v1650_v63 = vadd.f32 1.0, %v3265_v50  ;;  %3280 = verf.f32 %v1354_v56  ;;  %v1357_v7 = vmul.f32 0.70710677, %v1043_v61 }
 0x21b   : > { %2307 = vmatmul.mubr.bf16.gmra.mrb[120].mxu1 %v1891_v27  ;;  %v1893_v9 = vpack.c.bf16 %v4859_v58, %v4837_v53  ;;  %v3269_v19 = vpop.eup %3268  ;;  %v4947_v47 = vmul.f32 0.5, %v1039_v20  ;;  %v822_v32 = vadd.f32 %v5482_v2, %v3841_v30  ;;  %v1045_v24 = vadd.f32 %v4547_v46, %v3843_v0 }
 0x21c   : > { %3282 = verf.f32 %v1355_v52  ;;  %v3271_v55 = vpop.eup %3270  ;;  %v4954_v11 = vmul.f32 %v1647_v43, %v4872_v33  ;;  %v1651_v4 = vadd.f32 1.0, %v3267_v23  ;;  %v826_v53 = vadd.f32 %v4567_v48, %v3837_v28 }
 0x21d   : > { %3284 = verf.f32 %v1357_v7  ;;  %2492 = vmatmul.mubr.bf16.gmra.mrb[120].mxu0 %v1893_v9  ;;  %v4959_v20 = vmul.f32 %v1649_v18, %v4887_v35  ;;  %v4961_v57 = vmul.f32 0.5, %v818_v15  ;;  %v4963_v31 = vmul.f32 0.5, %v1041_v22 }
 0x21e   : > { %v3273_v58 = vpop.eup %3272  ;;  %v1356_v44 = vmul.f32 0.70710677, %v822_v32  ;;  %v4966_v5 = vmul.f32 %v1648_v13, %v4900_v37  ;;  %v4969_v33 = vmul.f32 %v1650_v63, %v4902_v12  ;;  %v1358_v17 = vmul.f32 0.70710677, %v1045_v24  ;;  %v5483_v12 = vld [vmem:[#allocation22_spill] sm:$0xff] }
 0x21f   : > { %v3275_v46 = vpop.eup %3274  ;;  %v1049_v48 = vadd.f32 %v4569_v42, %v3839_v29  ;;  %v1653_v50 = vadd.f32 1.0, %v3269_v19  ;;  %v4973_v43 = vmul.f32 0.5, %v820_v16  ;;  %v1359_v35 = vmul.f32 0.70710677, %v826_v53  ;;  %v5484_v16 = vld [vmem:[#allocation23_spill] sm:$0xff] }
 0x220   : > { %3286 = verf.f32 %v1356_v44  ;;  %v4976_v15 = vmul.f32 %v1651_v4, %v4912_v21  ;;  %v1652_v22 = vadd.f32 1.0, %v3271_v55  ;;  %v4978_v56 = vmul.f32 0.5, %v1043_v61 }
 0x221   : > { %3288 = verf.f32 %v1358_v17  ;;  %v1654_v37 = vadd.f32 1.0, %v3273_v58  ;;  %v1655_v10 = vadd.f32 1.0, %v3275_v46  ;;  %v828_v51 = vadd.f32 %v5483_v12, %v3841_v30 }
 0x222   : > { %3290 = verf.f32 %v1359_v35  ;;  %v3277_v27 = vpop.eup %3276  ;;  %v1361_v42 = vmul.f32 0.70710677, %v1049_v48  ;;  %v1051_v23 = vadd.f32 %v5484_v16, %v3843_v0  ;;  %v1896_v18 = vpack.c.bf16 %v4936_v14, %v4907_v54  ;;  %v5485_v54 = vld [vmem:[#allocation24_spill] sm:$0xff]  ;;  %v5487_v35 = vld [vmem:[#allocation26_spill] sm:$0xff] }
 0x223   : > { %v1898_v21 = vpack.c.bf16 %v1798_v25, %v4910_v59  ;;  %v3279_v13 = vpop.eup %3278  ;;  %v4988_v61 = vmul.f32 %v1653_v50, %v4917_v36  ;;  %v4990_v52 = vmul.f32 0.5, %v822_v32  ;;  %v4992_v63 = vmul.f32 0.5, %v1045_v24  ;;  %v5486_v32 = vld [vmem:[#allocation25_spill] sm:$0xff] }
 0x224   : > { %v1360_v7 = vmul.f32 0.70710677, %v828_v51  ;;  %v3281_v9 = vpop.eup %3280  ;;  %v4995_v19 = vmul.f32 %v1652_v22, %v4929_v34  ;;  %v4997_v2 = vmul.f32 0.5, %v826_v53  ;;  %v1362_v55 = vmul.f32 0.70710677, %v1051_v23  ;;  %2314 = vmatprep.mubr.bf16.mxu1 %v1896_v18 }
 0x225   : > { %2499 = vmatprep.mubr.bf16.mxu0 %v1898_v21  ;;  %v830_v59 = vadd.f32 %v5485_v54, %v3837_v28  ;;  %v1806_v36 = vmul.f32 %v1654_v37, %v4931_v40  ;;  %v1657_v25 = vadd.f32 1.0, %v3277_v27  ;;  %v1053_v24 = vadd.f32 %v5486_v32, %v3839_v29 }
 0x226   : > { %v3283_v14 = vpop.eup %3282  ;;  %v1895_v4 = vpack.c.bf16 %v4915_v1, %v4885_v41  ;;  %v5007_v53 = vmul.f32 %v1655_v10, %v4933_v62  ;;  %v1656_v58 = vadd.f32 1.0, %v3279_v13  ;;  %v5009_v44 = vmul.f32 0.5, %v1049_v48  ;;  %v5488_v1 = vld [vmem:[#allocation41_spill] sm:$0xff] }
 0x227   : > { %v3285_v34 = vpop.eup %3284  ;;  %3292 = verf.f32 %v1361_v42  ;;  %v1658_v46 = vadd.f32 1.0, %v3281_v9  ;;  %v1363_v17 = vmul.f32 0.70710677, %v830_v59  ;;  %v1365_v50 = vmul.f32 0.70710677, %v1053_v24 }
 0x228   : > { %3294 = verf.f32 %v1360_v7  ;;  %2315 = vmatmul.mubr.bf16.gmra.mrb[124].mxu1 %v1895_v4  ;;  %v1897_v40 = vpack.c.bf16 %v4922_v45, %v4896_v6  ;;  %v832_v41 = vadd.f32 %v5487_v35, %v3841_v30  ;;  %v1055_v62 = vadd.f32 %v5488_v1, %v3843_v0  ;;  %v5489_v45 = vld [vmem:[#allocation42_spill] sm:$0xff] }
 0x229   : > { %3296 = verf.f32 %v1362_v55  ;;  %v1659_v37 = vadd.f32 1.0, %v3283_v14  ;;  %v1661_v48 = vadd.f32 1.0, %v3285_v34  ;;  %v836_v10 = vadd.f32 %v4623_v60, %v3837_v28 }
 0x22a   : > { %v3287_v22 = vpop.eup %3286  ;;  %3298 = verf.f32 %v1363_v17  ;;  %v5020_v27 = vmul.f32 %v1657_v25, %v4947_v47  ;;  %2500 = vmatmul.mubr.bf16.gmra.mrb[124].mxu0 %v1897_v40  ;;  %v1364_v6 = vmul.f32 0.70710677, %v832_v41  ;;  %v1059_v42 = vadd.f32 %v5489_v45, %v3839_v29  ;;  %v5492_v40 = vld [vmem:[#allocation45_spill] sm:$0xff] }
 0x22b   : > { %v3289_v12 = vpop.eup %3288  ;;  %3300 = verf.f32 %v1365_v50  ;;  %v5025_v18 = vmul.f32 %v1656_v58, %v4961_v57  ;;  %v1208_v21 = vmul.f32 0.5, %v828_v51  ;;  %v5027_v13 = vmul.f32 0.5, %v1051_v23 }
 0x22c   : > { %v3291_v16 = vpop.eup %3290  ;;  %v1366_v7 = vmul.f32 0.70710677, %v1055_v62  ;;  %v5030_v60 = vmul.f32 %v1658_v46, %v4963_v31  ;;  %v5032_v9 = vmul.f32 0.5, %v830_v59  ;;  %v5034_v47 = vmul.f32 0.5, %v1053_v24  ;;  %v5490_v59 = vld [vmem:[#allocation43_spill] sm:$0xff] }
 0x22d   : > { %v1367_v55 = vmul.f32 0.70710677, %v836_v10  ;;  %v5037_v54 = vmul.f32 %v1659_v37, %v4973_v43  ;;  %v5040_v14 = vmul.f32 %v1661_v48, %v4978_v56  ;;  %v1660_v57 = vadd.f32 1.0, %v3287_v22 }
 0x22e   : > { %v1662_v25 = vadd.f32 1.0, %v3289_v12  ;;  %v1663_v51 = vadd.f32 1.0, %v3291_v16  ;;  %3302 = verf.f32 %v1364_v6  ;;  %v1369_v23 = vmul.f32 0.70710677, %v1059_v42 }
 0x22f   : > { %v838_v31 = vadd.f32 %v4633_v8, %v3841_v30  ;;  %3304 = verf.f32 %v1366_v7  ;;  %v1061_v32 = vadd.f32 %v5490_v59, %v3843_v0  ;;  %v1900_v24 = vpack.c.bf16 %v4995_v19, %v4966_v5  ;;  %v5491_v5 = vld [vmem:[#allocation44_spill] sm:$0xff] }
 0x230   : > { %v1902_v43 = vpack.c.bf16 %v1806_v36, %v4969_v33  ;;  %v5049_v56 = vmul.f32 0.5, %v832_v41  ;;  %v5051_v34 = vmul.f32 0.5, %v1055_v62  ;;  %3306 = verf.f32 %v1367_v55  ;;  %v5495_v7 = vld [vmem:[#allocation12_spill] sm:$0xff] }
 0x231   : > { %v3293_v4 = vpop.eup %3292  ;;  %v1368_v58 = vmul.f32 0.70710677, %v838_v31  ;;  %v5054_v17 = vmul.f32 %v1660_v57, %v4990_v52  ;;  %v5056_v8 = vmul.f32 0.5, %v836_v10  ;;  %v1370_v50 = vmul.f32 0.70710677, %v1061_v32  ;;  %2322 = vmatprep.mubr.bf16.mxu1 %v1900_v24 }
 0x232   : > { %v3295_v46 = vpop.eup %3294  ;;  %2507 = vmatprep.mubr.bf16.mxu0 %v1902_v43  ;;  %v840_v19 = vadd.f32 %v5491_v5, %v3837_v28  ;;  %v1814_v36 = vmul.f32 %v1662_v25, %v4992_v63  ;;  %3308 = verf.f32 %v1369_v23  ;;  %v1063_v35 = vadd.f32 %v5492_v40, %v3839_v29 }
 0x233   : > { %v3297_v33 = vpop.eup %3296  ;;  %v1899_v41 = vpack.c.bf16 %v4976_v15, %v4954_v11  ;;  %v5066_v1 = vmul.f32 %v1663_v51, %v4997_v2  ;;  %v1665_v62 = vadd.f32 1.0, %v3293_v4  ;;  %v5068_v22 = vmul.f32 0.5, %v1059_v42  ;;  %v5493_v11 = vld [vmem:[#allocation46_spill] sm:$0xff]  ;;  %v5494_v2 = vld [vmem:[#allocation47_spill] sm:$0xff] }
 0x234   : > { %v3299_v52 = vpop.eup %3298  ;;  %v1371_v37 = vmul.f32 0.70710677, %v840_v19  ;;  %v1664_v10 = vadd.f32 1.0, %v3295_v46  ;;  %3310 = verf.f32 %v1368_v58  ;;  %v1373_v12 = vmul.f32 0.70710677, %v1063_v35 }
 0x235   : > { %v3301_v48 = vpop.eup %3300  ;;  %2323 = vmatmul.mubr.bf16.gmra.mrb[128].mxu1 %v1899_v41  ;;  %v1901_v63 = vpack.c.bf16 %v4988_v61, %v4959_v20  ;;  %v1666_v6 = vadd.f32 1.0, %v3297_v33  ;;  %3312 = verf.f32 %v1370_v50  ;;  %v842_v15 = vadd.f32 %v5493_v11, %v3841_v30  ;;  %v5496_v61 = vld [vmem:[#allocation13_spill] sm:$0xff]  ;;  %v5499_v11 = vld [vmem:[#allocation27_spill] sm:$0xff] }
 0x236   : > { %v1065_v45 = vadd.f32 %v5494_v2, %v3843_v0  ;;  %v1667_v16 = vadd.f32 1.0, %v3299_v52  ;;  %v1669_v42 = vadd.f32 1.0, %v3301_v48  ;;  %3314 = verf.f32 %v1371_v37 }
 0x237   : > { %2508 = vmatmul.mubr.bf16.gmra.mrb[128].mxu0 %v1901_v63  ;;  %v846_v55 = vadd.f32 %v5495_v7, %v3837_v28  ;;  %v5079_v57 = vmul.f32 %v1665_v62, %v5009_v44  ;;  %3316 = verf.f32 %v1373_v12  ;;  %v1372_v20 = vmul.f32 0.70710677, %v842_v15  ;;  %v5498_v62 = vld [vmem:[#allocation15_spill] sm:$0xff] }
 0x238   : > { %v1069_v25 = vadd.f32 %v5496_v61, %v3839_v29  ;;  %v3303_v51 = vpop.eup %3302  ;;  %v5083_v23 = vmul.f32 %v1664_v10, %v1208_v21  ;;  %v5085_v59 = vmul.f32 0.5, %v838_v31  ;;  %v5087_v24 = vmul.f32 0.5, %v1061_v32 }
 0x239   : > { %v1374_v43 = vmul.f32 0.70710677, %v1065_v45  ;;  %v3305_v4 = vpop.eup %3304  ;;  %v5090_v58 = vmul.f32 %v1666_v6, %v5027_v13  ;;  %v5092_v46 = vmul.f32 0.5, %v840_v19  ;;  %3318 = verf.f32 %v1372_v20  ;;  %v5497_v13 = vld [vmem:[#allocation14_spill] sm:$0xff] }
 0x23a   : > { %v1375_v44 = vmul.f32 0.70710677, %v846_v55  ;;  %v3307_v50 = vpop.eup %3306  ;;  %v5095_v5 = vmul.f32 %v1667_v16, %v5032_v9  ;;  %v5098_v21 = vmul.f32 %v1669_v42, %v5034_v47  ;;  %v5100_v31 = vmul.f32 0.5, %v1063_v35 }
 0x23b   : > { %3320 = verf.f32 %v1374_v43  ;;  %v1668_v32 = vadd.f32 1.0, %v3303_v51  ;;  %v5102_v33 = vmul.f32 0.5, %v842_v15  ;;  %v1377_v40 = vmul.f32 0.70710677, %v1069_v25 }
 0x23c   : > { %v848_v19 = vadd.f32 %v5497_v13, %v3841_v30  ;;  %v3309_v41 = vpop.eup %3308  ;;  %v1670_v52 = vadd.f32 1.0, %v3305_v4  ;;  %v1071_v37 = vadd.f32 %v5498_v62, %v3843_v0  ;;  %v1904_v9 = vpack.c.bf16 %v5054_v17, %v5025_v18  ;;  %v5500_v18 = vld [vmem:[#allocation48_spill] sm:$0xff] }
 0x23d   : > { %v1906_v47 = vpack.c.bf16 %v1814_v36, %v5030_v60  ;;  %v1671_v35 = vadd.f32 1.0, %v3307_v50  ;;  %v5111_v48 = vmul.f32 0.5, %v1065_v45  ;;  %3322 = verf.f32 %v1375_v44  ;;  %v5502_v50 = vld [vmem:[#allocation28_spill] sm:$0xff] }
 0x23e   : > { %v1376_v10 = vmul.f32 0.70710677, %v848_v19  ;;  %v3311_v12 = vpop.eup %3310  ;;  %v5113_v63 = vmul.f32 0.5, %v846_v55  ;;  %3324 = verf.f32 %v1377_v40  ;;  %v1378_v6 = vmul.f32 0.70710677, %v1071_v37  ;;  %2330 = vmatprep.mubr.bf16.mxu1 %v1904_v9 }
 0x23f   : > { %2515 = vmatprep.mubr.bf16.mxu0 %v1906_v47  ;;  %v850_v15 = vadd.f32 %v5499_v11, %v3837_v28  ;;  %v3313_v2 = vpop.eup %3312  ;;  %v1673_v16 = vadd.f32 1.0, %v3309_v41  ;;  %v1073_v60 = vadd.f32 %v5500_v18, %v3839_v29  ;;  %v1903_v17 = vpack.c.bf16 %v5037_v54, %v5007_v53  ;;  %v5504_v18 = vld [vmem:[#allocation30_spill] sm:$0xff] }
 0x240   : > { %3326 = verf.f32 %v1376_v10  ;;  %v3315_v36 = vpop.eup %3314  ;;  %v1820_v45 = vmul.f32 %v1668_v32, %v5049_v56  ;;  %v1822_v42 = vmul.f32 %v1670_v52, %v5051_v34  ;;  %v5123_v7 = vmul.f32 0.5, %v1069_v25  ;;  %v5501_v56 = vld [vmem:[#allocation49_spill] sm:$0xff] }
 0x241   : > { %3328 = verf.f32 %v1378_v6  ;;  %v3317_v55 = vpop.eup %3316  ;;  %v5126_v20 = vmul.f32 %v1671_v35, %v5056_v8  ;;  %v1672_v61 = vadd.f32 1.0, %v3311_v12  ;;  %v1379_v51 = vmul.f32 0.70710677, %v850_v15  ;;  %2331 = vmatmul.mubr.bf16.gmra.mrb[132].mxu1 %v1903_v17 }
 0x242   : > { %v1381_v43 = vmul.f32 0.70710677, %v1073_v60  ;;  %v1674_v4 = vadd.f32 1.0, %v3313_v2  ;;  %v1905_v53 = vpack.c.bf16 %v5040_v14, %v5020_v27  ;;  %v852_v54 = vadd.f32 %v4712_v38, %v3841_v30  ;;  %v5503_v38 = vld [vmem:[#allocation29_spill] sm:$0xff] }
 0x243   : > { %v1075_v34 = vadd.f32 %v5501_v56, %v3843_v0  ;;  %v3319_v25 = vpop.eup %3318  ;;  %v5135_v44 = vmul.f32 %v1673_v16, %v5068_v22  ;;  %v1675_v8 = vadd.f32 1.0, %v3315_v36  ;;  %3330 = verf.f32 %v1379_v51 }
 0x244   : > { %v5139_v32 = vadd.f32 %v5502_v50, %v3837_v28  ;;  %v1677_v13 = vadd.f32 1.0, %v3317_v55  ;;  %3332 = verf.f32 %v1381_v43  ;;  %2516 = vmatmul.mubr.bf16.gmra.mrb[132].mxu0 %v1905_v53  ;;  %v1380_v27 = vmul.f32 0.70710677, %v852_v54 }
 0x245   : > { %v3321_v40 = vpop.eup %3320  ;;  %v5143_v14 = vadd.f32 %v5503_v38, %v3839_v29  ;;  %v5146_v41 = vmul.f32 %v1672_v61, %v5085_v59  ;;  %v5148_v22 = vmul.f32 0.5, %v848_v19  ;;  %v5150_v52 = vmul.f32 0.5, %v1071_v37 }
 0x246   : > { %v1382_v62 = vmul.f32 0.70710677, %v1075_v34  ;;  %v5153_v9 = vmul.f32 %v1674_v4, %v5087_v24  ;;  %v1676_v47 = vadd.f32 1.0, %v3319_v25  ;;  %v1227_v35 = vmul.f32 0.5, %v850_v15 }
 0x247   : > { %3334 = verf.f32 %v1380_v27  ;;  %v3323_v10 = vpop.eup %3322  ;;  %v1678_v12 = vadd.f32 1.0, %v3321_v40  ;;  %v1229_v6 = vmul.f32 0.5, %v1073_v60  ;;  %v1383_v11 = vmul.f32 0.70710677, %v5139_v32 }
 0x248   : > { %3336 = verf.f32 %v1382_v62  ;;  %v3325_v2 = vpop.eup %3324  ;;  %v5157_v59 = vmul.f32 %v1675_v8, %v5092_v46  ;;  %v5160_v19 = vmul.f32 %v1677_v13, %v5100_v31  ;;  %v1385_v37 = vmul.f32 0.70710677, %v5143_v14 }
 0x249   : > { %v5165_v24 = vadd.f32 %v4749_v26, %v3841_v30  ;;  %v1228_v16 = vmul.f32 0.5, %v852_v54  ;;  %v5169_v60 = vadd.f32 %v5504_v18, %v3843_v0  ;;  %v1908_v17 = vpack.c.bf16 %v1820_v45, %v5083_v23 }
 0x24a   : > { %v3327_v15 = vpop.eup %3326  ;;  %v1910_v46 = vpack.c.bf16 %v1822_v42, %v5090_v58  ;;  %v1828_v31 = vmul.f32 %v1676_v47, %v5102_v33  ;;  %v1679_v55 = vadd.f32 1.0, %v3323_v10  ;;  %v1230_v61 = vmul.f32 0.5, %v1075_v34  ;;  %v5505_v58 = vld [vmem:[#allocation31_spill] sm:$0xff] }
 0x24b   : > { %v3329_v36 = vpop.eup %3328  ;;  %v1384_v51 = vmul.f32 0.70710677, %v5165_v24  ;;  %v1830_v26 = vmul.f32 %v1678_v12, %v5111_v48  ;;  %3338 = verf.f32 %v1383_v11  ;;  %v1386_v43 = vmul.f32 0.70710677, %v5169_v60  ;;  %2338 = vmatprep.mubr.bf16.mxu1 %v1908_v17 }
 0x24c   : > { %2523 = vmatprep.mubr.bf16.mxu0 %v1910_v46  ;;  %v860_v4 = vadd.f32 %v4758_v39, %v3837_v28  ;;  %v1681_v23 = vadd.f32 1.0, %v3325_v2  ;;  %3340 = verf.f32 %v1385_v37  ;;  %v5181_v45 = vadd.f32 %v5505_v58, %v3839_v29 }
 0x24d   : > { %v1907_v33 = vpack.c.bf16 %v5095_v5, %v5066_v1  ;;  %v3331_v42 = vpop.eup %3330  ;;  %v1680_v53 = vadd.f32 1.0, %v3327_v15  ;;  %v1682_v48 = vadd.f32 1.0, %v3329_v36  ;;  %3342 = verf.f32 %v1384_v51 }
 0x24e   : > { %v1387_v54 = vmul.f32 0.70710677, %v860_v4  ;;  %v3333_v56 = vpop.eup %3332  ;;  %v1683_v34 = vadd.f32 1.0, %v3331_v42  ;;  %3344 = verf.f32 %v1386_v43  ;;  %v1389_v25 = vmul.f32 0.70710677, %v5181_v45 }
 0x24f   : > { %2339 = vmatmul.mubr.bf16.gmra.mrb[136].mxu1 %v1907_v33  ;;  %v1909_v28 = vpack.c.bf16 %v5098_v21, %v5079_v57  ;;  %v1685_v39 = vadd.f32 1.0, %v3333_v56  ;;  %v5190_v29 = vadd.f32 %v4768_v3, %v3841_v30  ;;  %v5194_v1 = vadd.f32 %v4770_v49, %v3843_v0 }
 0x250   : > { %3346 = verf.f32 %v1387_v54  ;;  %v5196_v8 = vmul.f32 %v1683_v34, %v1227_v35  ;;  %v1912_v50 = vpack.c.bf16 %v1828_v31, %v5146_v41  ;;  %v1914_v40 = vpack.c.bf16 %v1830_v26, %v5153_v9 }
 0x251   : > { %v3335_v5 = vpop.eup %3334  ;;  %3348 = verf.f32 %v1389_v25  ;;  %2524 = vmatmul.mubr.bf16.gmra.mrb[136].mxu0 %v1909_v28  ;;  %v1831_v21 = vmul.f32 %v1679_v55, %v5113_v63  ;;  %v5201_v13 = vmul.f32 %v1685_v39, %v1229_v6  ;;  %v1388_v3 = vmul.f32 0.70710677, %v5190_v29 }
 0x252   : > { %v3337_v57 = vpop.eup %3336  ;;  %v1684_v30 = vadd.f32 1.0, %v3335_v5  ;;  %v5205_v0 = vmul.f32 %v1681_v23, %v5123_v7  ;;  %v1390_v27 = vmul.f32 0.70710677, %v5194_v1  ;;  %2346 = vmatprep.mubr.bf16.mxu1 %v1912_v50  ;;  %2531 = vmatprep.mubr.bf16.mxu0 %v1914_v40  ;;  %v1911_v38 = vpack.c.bf16 %v5157_v59, %v5126_v20  ;;  %v5220_v59 = vld [vmem:[%s5365_s4] ss:$0 sm:$0xff] }
 0x253   : > { %v1686_v49 = vadd.f32 1.0, %v3337_v57  ;;  %v1832_v41 = vmul.f32 %v1680_v53, %v5148_v22  ;;  %3350 = verf.f32 %v1388_v3  ;;  %v1913_v63 = vpack.c.bf16 %v5160_v19, %v5135_v44 }
 0x254   : > { %v1836_v62 = vmul.f32 %v1684_v30, %v1228_v16  ;;  %v1834_v9 = vmul.f32 %v1682_v48, %v5150_v52  ;;  %3352 = verf.f32 %v1390_v27  ;;  %v1915_v7 = vpack.c.bf16 %v5196_v8, %v1831_v21 }
 0x255   : > { %v1838_v47 = vmul.f32 %v1686_v49, %v1230_v61  ;;  %v3339_v35 = vpop.eup %3338  ;;  %v1917_v12 = vpack.c.bf16 %v5201_v13, %v5205_v0  ;;  %v1231_v37 = vmul.f32 0.5, %v5139_v32  ;;  %v1235_v15 = vmul.f32 0.5, %v860_v4 }
 0x256   : > { %v1916_v10 = vpack.c.bf16 %v1836_v62, %v1832_v41  ;;  %v3341_v20 = vpop.eup %3340  ;;  %v1687_v2 = vadd.f32 1.0, %v3339_v35  ;;  %v1233_v18 = vmul.f32 0.5, %v5143_v14  ;;  %v1232_v17 = vmul.f32 0.5, %v5165_v24 }
 0x257   : > { %2347 = vmatmul.mubr.bf16.gmra.mrb[140].mxu1 %v1911_v38  ;;  %v1918_v22 = vpack.c.bf16 %v1838_v47, %v1834_v9  ;;  %v3343_v6 = vpop.eup %3342  ;;  %v1689_v52 = vadd.f32 1.0, %v3341_v20  ;;  %v1237_v46 = vmul.f32 0.5, %v5181_v45  ;;  %v1236_v14 = vmul.f32 0.5, %v5190_v29 }
 0x258   : > { %2354 = vmatprep.mubr.bf16.mxu1 %v1916_v10  ;;  %v3345_v11 = vpop.eup %3344  ;;  %v1839_v61 = vmul.f32 %v1687_v2, %v1231_v37  ;;  %v1688_v51 = vadd.f32 1.0, %v3343_v6  ;;  %v1234_v39 = vmul.f32 0.5, %v5169_v60  ;;  %v1238_v5 = vmul.f32 0.5, %v5194_v1 }
 0x259   : > { %2532 = vmatmul.mubr.bf16.gmra.mrb[140].mxu0 %v1913_v63  ;;  %v1841_v32 = vmul.f32 %v1689_v52, %v1233_v18  ;;  %v1690_v4 = vadd.f32 1.0, %v3345_v11 }
 0x25a   : > { %v3347_v44 = vpop.eup %3346  ;;  %2539 = vmatprep.mubr.bf16.mxu0 %v1918_v22  ;;  %v2220_v31 = vpop.f32.mrb[76].mxu1  ;;  %v1840_v40 = vmul.f32 %v1688_v51, %v1232_v17 }
 0x25b   : > { %v3349_v19 = vpop.eup %3348  ;;  %v1691_v16 = vadd.f32 1.0, %v3347_v44  ;;  %v2405_v55 = vpop.f32.mrb[76].mxu0  ;;  %v2221_v43 = vadd.f32 %v5220_v59, %v2220_v31  ;;  %v1842_v21 = vmul.f32 %v1690_v4, %v1234_v39 }
 0x25c   : > { %v1693_v36 = vadd.f32 1.0, %v3349_v19  ;;  %v2222_v23 = vpop.f32.mrb[77].mxu1  ;;  %v2407_v58 = vpop.f32.mrb[77].mxu0 }
 0x25d   : > { %v1843_v26 = vmul.f32 %v1691_v16, %v1235_v15  ;;  %v3351_v33 = vpop.eup %3350  ;;  %v2223_v53 = vpop.f32.mrb[78].mxu1  ;;  %v2406_v56 = vadd.f32 %v2405_v55, %v2221_v43 }
 0x25e   : > { %v1845_v42 = vmul.f32 %v1693_v36, %v1237_v46  ;;  %v2408_v24 = vpop.f32.mrb[78].mxu0  ;;  %v3353_v45 = vpop.eup %3352  ;;  %v1692_v48 = vadd.f32 1.0, %v3351_v33  ;;  %v2224_v34 = vadd.f32 %v5220_v59, %v2223_v53 }
 0x25f   : > { %2355 = vmatmul.mubr.bf16.gmra.mrb[144].mxu1 %v1915_v7  ;;  %v1919_v54 = vpack.c.bf16 %v1843_v26, %v1839_v61  ;;  %v2225_v25 = vpop.f32.mrb[79].mxu1  ;;  %v2410_v28 = vpop.f32.mrb[79].mxu0  ;;  %v1694_v8 = vadd.f32 1.0, %v3353_v45  ;;  %2556 = vst [vmem:[%s5234_s14] sm:$0xff] %v2406_v56 }
 0x260   : > { %v1921_v50 = vpack.c.bf16 %v1845_v42, %v1841_v32  ;;  %v1844_v29 = vmul.f32 %v1692_v48, %v1236_v14  ;;  %v2409_v57 = vadd.f32 %v2408_v24, %v2224_v34 }
 0x261   : > { %2540 = vmatmul.mubr.bf16.gmra.mrb[144].mxu0 %v1917_v12  ;;  %v1846_v13 = vmul.f32 %v1694_v8, %v1238_v5 }
 0x262   : > { %v1920_v30 = vpack.c.bf16 %v1844_v29, %v1840_v40  ;;  %2557 = vst [vmem:[%s5234_s14 + $0x8] sm:$0xff] %v2409_v57 }
 0x263   : > { %v1922_v3 = vpack.c.bf16 %v1846_v13, %v1842_v21 }
 0x264   : > { %2362 = vmatprep.mubr.bf16.mxu1 %v1920_v30 }
 0x265   : > { %2547 = vmatprep.mubr.bf16.mxu0 %v1922_v3 }
 0x267   : > { %2363 = vmatmul.mubr.bf16.gmra.mrb[148].mxu1 %v1919_v54 }
 0x269   : > { %2548 = vmatmul.mubr.bf16.gmra.mrb[148].mxu0 %v1921_v50 }
 0x26b   : > { %v2228_v60 = vpop.f32.mrb[80].mxu1  ;;  %v2413_v1 = vpop.f32.mrb[80].mxu0 }
 0x26c   : > { %v2229_v0 = vadd.f32 %v5220_v59, %v2228_v60  ;;  %v2230_v49 = vpop.f32.mrb[81].mxu1  ;;  %v2415_v27 = vpop.f32.mrb[81].mxu0 }
 0x26d   : > { %v2231_v38 = vpop.f32.mrb[82].mxu1  ;;  %v2416_v41 = vpop.f32.mrb[82].mxu0 }
 0x26e   : > { %v2414_v62 = vadd.f32 %v2413_v1, %v2229_v0  ;;  %v2232_v63 = vadd.f32 %v5220_v59, %v2231_v38  ;;  %v2233_v9 = vpop.f32.mrb[83].mxu1  ;;  %v2418_v47 = vpop.f32.mrb[83].mxu0 }
 0x270   : > { %2558 = vst [vmem:[%s5234_s14 + $0x10] sm:$0xff] %v2414_v62  ;;  %v2417_v7 = vadd.f32 %v2416_v41, %v2232_v63 }
 0x272   : > { %2559 = vst [vmem:[%s5234_s14 + $0x18] sm:$0xff] %v2417_v7 }
 0x278   : > { %v2236_v35 = vpop.f32.mrb[84].mxu1  ;;  %v2421_v10 = vpop.f32.mrb[84].mxu0 }
 0x279   : > { %v2237_v12 = vadd.f32 %v5220_v59, %v2236_v35  ;;  %v2238_v20 = vpop.f32.mrb[85].mxu1  ;;  %v2423_v22 = vpop.f32.mrb[85].mxu0 }
 0x27a   : > { %v2239_v6 = vpop.f32.mrb[86].mxu1  ;;  %v2424_v11 = vpop.f32.mrb[86].mxu0 }
 0x27b   : > { %v2422_v2 = vadd.f32 %v2421_v10, %v2237_v12  ;;  %v2240_v44 = vadd.f32 %v5220_v59, %v2239_v6  ;;  %v2241_v52 = vpop.f32.mrb[87].mxu1  ;;  %v2426_v19 = vpop.f32.mrb[87].mxu0 }
 0x27d   : > { %2560 = vst [vmem:[%s5234_s14 + $0x20] sm:$0xff] %v2422_v2  ;;  %v2425_v37 = vadd.f32 %v2424_v11, %v2240_v44 }
 0x27f   : > { %2561 = vst [vmem:[%s5234_s14 + $0x28] sm:$0xff] %v2425_v37 }
 0x282   : > { %v2244_v15 = vpop.f32.mrb[88].mxu1 }
 0x283   : > { %v2245_v16 = vadd.f32 %v5220_v59, %v2244_v15  ;;  %v2246_v17 = vpop.f32.mrb[89].mxu1 }
 0x284   : > { %v2429_v18 = vpop.f32.mrb[88].mxu0  ;;  %v2247_v36 = vpop.f32.mrb[90].mxu1 }
 0x285   : > { %v2431_v46 = vpop.f32.mrb[89].mxu0  ;;  %v2430_v31 = vadd.f32 %v2429_v18, %v2245_v16  ;;  %v2248_v55 = vadd.f32 %v5220_v59, %v2247_v36  ;;  %v2249_v51 = vpop.f32.mrb[91].mxu1 }
 0x286   : > { %v2432_v61 = vpop.f32.mrb[90].mxu0 }
 0x287   : > { %v2434_v26 = vpop.f32.mrb[91].mxu0  ;;  %2562 = vst [vmem:[%s5234_s14 + $0x30] sm:$0xff] %v2430_v31  ;;  %v2433_v43 = vadd.f32 %v2432_v61, %v2248_v55 }
 0x289   : > { %2563 = vst [vmem:[%s5234_s14 + $0x38] sm:$0xff] %v2433_v43 }
 0x292   : > { %v2252_v23 = vpop.f32.mrb[92].mxu1 }
 0x293   : > { %v2253_v58 = vadd.f32 %v5220_v59, %v2252_v23  ;;  %v2254_v33 = vpop.f32.mrb[93].mxu1  ;;  %v2437_v4 = vpop.f32.mrb[92].mxu0 }
 0x294   : > { %v2255_v32 = vpop.f32.mrb[94].mxu1  ;;  %v2439_v24 = vpop.f32.mrb[93].mxu0 }
 0x295   : > { %v2256_v42 = vadd.f32 %v5220_v59, %v2255_v32  ;;  %v2257_v14 = vpop.f32.mrb[95].mxu1  ;;  %v2438_v53 = vadd.f32 %v2437_v4, %v2253_v58  ;;  %v2440_v45 = vpop.f32.mrb[94].mxu0 }
 0x296   : > { %v2442_v54 = vpop.f32.mrb[95].mxu0 }
 0x297   : > { %2564 = vst [vmem:[%s5234_s14 + $0x40] sm:$0xff] %v2438_v53  ;;  %v2441_v48 = vadd.f32 %v2440_v45, %v2256_v42 }
 0x299   : > { %2565 = vst [vmem:[%s5234_s14 + $0x48] sm:$0xff] %v2441_v48 }
 0x29f   : > { %v2260_v56 = vpop.f32.mrb[96].mxu1 }
 0x2a0   : > { %v2261_v34 = vadd.f32 %v5220_v59, %v2260_v56  ;;  %v2262_v25 = vpop.f32.mrb[97].mxu1 }
 0x2a1   : > { %v2263_v28 = vpop.f32.mrb[98].mxu1 }
 0x2a2   : > { %v2445_v39 = vpop.f32.mrb[96].mxu0  ;;  %v2264_v5 = vadd.f32 %v5220_v59, %v2263_v28  ;;  %v2265_v8 = vpop.f32.mrb[99].mxu1 }
 0x2a3   : > { %v2446_v50 = vadd.f32 %v2445_v39, %v2261_v34  ;;  %v2447_v40 = vpop.f32.mrb[97].mxu0 }
 0x2a4   : > { %v2448_v29 = vpop.f32.mrb[98].mxu0 }
 0x2a5   : > { %2566 = vst [vmem:[%s5234_s14 + $0x50] sm:$0xff] %v2446_v50  ;;  %v2449_v57 = vadd.f32 %v2448_v29, %v2264_v5  ;;  %v2450_v21 = vpop.f32.mrb[99].mxu0 }
 0x2a7   : > { %2567 = vst [vmem:[%s5234_s14 + $0x58] sm:$0xff] %v2449_v57 }
 0x2ab   : > { %v2268_v13 = vpop.f32.mrb[100].mxu1 }
 0x2ac   : > { %v2269_v30 = vadd.f32 %v5220_v59, %v2268_v13  ;;  %v2270_v3 = vpop.f32.mrb[101].mxu1 }
 0x2ad   : > { %v2271_v60 = vpop.f32.mrb[102].mxu1 }
 0x2ae   : > { %v2272_v0 = vadd.f32 %v5220_v59, %v2271_v60  ;;  %v2273_v49 = vpop.f32.mrb[103].mxu1 }
 0x2af   : > { %v2453_v1 = vpop.f32.mrb[100].mxu0 }
 0x2b0   : > { %v2454_v27 = vadd.f32 %v2453_v1, %v2269_v30  ;;  %v2455_v38 = vpop.f32.mrb[101].mxu0 }
 0x2b1   : > { %v2456_v41 = vpop.f32.mrb[102].mxu0 }
 0x2b2   : > { %2568 = vst [vmem:[%s5234_s14 + $0x60] sm:$0xff] %v2454_v27  ;;  %v2457_v62 = vadd.f32 %v2456_v41, %v2272_v0  ;;  %v2458_v63 = vpop.f32.mrb[103].mxu0 }
 0x2b4   : > { %2569 = vst [vmem:[%s5234_s14 + $0x68] sm:$0xff] %v2457_v62 }
 0x2b9   : > { %v2276_v9 = vpop.f32.mrb[104].mxu1  ;;  %v2461_v35 = vpop.f32.mrb[104].mxu0 }
 0x2ba   : > { %v2277_v47 = vadd.f32 %v5220_v59, %v2276_v9  ;;  %v2278_v7 = vpop.f32.mrb[105].mxu1  ;;  %v2463_v20 = vpop.f32.mrb[105].mxu0 }
 0x2bb   : > { %v2279_v10 = vpop.f32.mrb[106].mxu1  ;;  %v2464_v11 = vpop.f32.mrb[106].mxu0 }
 0x2bc   : > { %v2462_v12 = vadd.f32 %v2461_v35, %v2277_v47  ;;  %v2280_v22 = vadd.f32 %v5220_v59, %v2279_v10  ;;  %v2281_v6 = vpop.f32.mrb[107].mxu1  ;;  %v2466_v44 = vpop.f32.mrb[107].mxu0 }
 0x2be   : > { %2570 = vst [vmem:[%s5234_s14 + $0x70] sm:$0xff] %v2462_v12  ;;  %v2465_v2 = vadd.f32 %v2464_v11, %v2280_v22 }
 0x2c0   : > { %2571 = vst [vmem:[%s5234_s14 + $0x78] sm:$0xff] %v2465_v2 }
 0x2c6   : > { %v2284_v52 = vpop.f32.mrb[108].mxu1 }
 0x2c7   : > { %v2285_v19 = vadd.f32 %v5220_v59, %v2284_v52  ;;  %v2286_v37 = vpop.f32.mrb[109].mxu1 }
 0x2c8   : > { %v2287_v15 = vpop.f32.mrb[110].mxu1 }
 0x2c9   : > { %v2288_v18 = vadd.f32 %v5220_v59, %v2287_v15  ;;  %v2289_v17 = vpop.f32.mrb[111].mxu1 }
 0x2ca   : > { %v2469_v16 = vpop.f32.mrb[108].mxu0 }
 0x2cb   : > { %v2470_v46 = vadd.f32 %v2469_v16, %v2285_v19  ;;  %v2471_v36 = vpop.f32.mrb[109].mxu0 }
 0x2cc   : > { %v2472_v31 = vpop.f32.mrb[110].mxu0 }
 0x2cd   : > { %2572 = vst [vmem:[%s5234_s14 + $0x80] sm:$0xff] %v2470_v46  ;;  %v2473_v55 = vadd.f32 %v2472_v31, %v2288_v18  ;;  %v2474_v61 = vpop.f32.mrb[111].mxu0 }
 0x2cf   : > { %2573 = vst [vmem:[%s5234_s14 + $0x88] sm:$0xff] %v2473_v55 }
 0x2d4   : > { %v2292_v51 = vpop.f32.mrb[112].mxu1 }
 0x2d5   : > { %v2293_v26 = vadd.f32 %v5220_v59, %v2292_v51  ;;  %v2294_v43 = vpop.f32.mrb[113].mxu1 }
 0x2d6   : > { %v2477_v23 = vpop.f32.mrb[112].mxu0  ;;  %v2295_v58 = vpop.f32.mrb[114].mxu1 }
 0x2d7   : > { %v2478_v33 = vadd.f32 %v2477_v23, %v2293_v26  ;;  %v2479_v32 = vpop.f32.mrb[113].mxu0  ;;  %v2296_v4 = vadd.f32 %v5220_v59, %v2295_v58  ;;  %v2297_v42 = vpop.f32.mrb[115].mxu1 }
 0x2d8   : > { %v2480_v14 = vpop.f32.mrb[114].mxu0 }
 0x2d9   : > { %2574 = vst [vmem:[%s5234_s14 + $0x90] sm:$0xff] %v2478_v33  ;;  %v2481_v53 = vadd.f32 %v2480_v14, %v2296_v4  ;;  %v2482_v24 = vpop.f32.mrb[115].mxu0 }
 0x2db   : > { %2575 = vst [vmem:[%s5234_s14 + $0x98] sm:$0xff] %v2481_v53 }
 0x2e1   : > { %v2300_v45 = vpop.f32.mrb[116].mxu1 }
 0x2e2   : > { %v2301_v48 = vadd.f32 %v5220_v59, %v2300_v45  ;;  %v2302_v54 = vpop.f32.mrb[117].mxu1 }
 0x2e3   : > { %v2303_v56 = vpop.f32.mrb[118].mxu1  ;;  %v2485_v34 = vpop.f32.mrb[116].mxu0 }
 0x2e4   : > { %v2304_v25 = vadd.f32 %v5220_v59, %v2303_v56  ;;  %v2305_v28 = vpop.f32.mrb[119].mxu1  ;;  %v2486_v39 = vadd.f32 %v2485_v34, %v2301_v48  ;;  %v2487_v5 = vpop.f32.mrb[117].mxu0 }
 0x2e5   : > { %v2488_v8 = vpop.f32.mrb[118].mxu0 }
 0x2e6   : > { %2576 = vst [vmem:[%s5234_s14 + $0xa0] sm:$0xff] %v2486_v39  ;;  %v2489_v50 = vadd.f32 %v2488_v8, %v2304_v25  ;;  %v2490_v40 = vpop.f32.mrb[119].mxu0 }
 0x2e8   : > { %2577 = vst [vmem:[%s5234_s14 + $0xa8] sm:$0xff] %v2489_v50 }
 0x2ee   : > { %v2308_v29 = vpop.f32.mrb[120].mxu1 }
 0x2ef   : > { %v2309_v57 = vadd.f32 %v5220_v59, %v2308_v29  ;;  %v2310_v21 = vpop.f32.mrb[121].mxu1 }
 0x2f0   : > { %v2493_v13 = vpop.f32.mrb[120].mxu0  ;;  %v2311_v30 = vpop.f32.mrb[122].mxu1 }
 0x2f1   : > { %v2494_v3 = vadd.f32 %v2493_v13, %v2309_v57  ;;  %v2495_v60 = vpop.f32.mrb[121].mxu0  ;;  %v2312_v1 = vadd.f32 %v5220_v59, %v2311_v30  ;;  %v2313_v0 = vpop.f32.mrb[123].mxu1 }
 0x2f2   : > { %v2496_v49 = vpop.f32.mrb[122].mxu0 }
 0x2f3   : > { %2578 = vst [vmem:[%s5234_s14 + $0xb0] sm:$0xff] %v2494_v3  ;;  %v2497_v27 = vadd.f32 %v2496_v49, %v2312_v1  ;;  %v2498_v38 = vpop.f32.mrb[123].mxu0 }
 0x2f5   : > { %2579 = vst [vmem:[%s5234_s14 + $0xb8] sm:$0xff] %v2497_v27 }
 0x2fb   : > { %v2316_v41 = vpop.f32.mrb[124].mxu1 }
 0x2fc   : > { %v2317_v62 = vadd.f32 %v5220_v59, %v2316_v41  ;;  %v2318_v63 = vpop.f32.mrb[125].mxu1 }
 0x2fd   : > { %v2319_v9 = vpop.f32.mrb[126].mxu1  ;;  %v2501_v47 = vpop.f32.mrb[124].mxu0 }
 0x2fe   : > { %v2320_v7 = vadd.f32 %v5220_v59, %v2319_v9  ;;  %v2321_v35 = vpop.f32.mrb[127].mxu1  ;;  %v2502_v10 = vadd.f32 %v2501_v47, %v2317_v62  ;;  %v2503_v12 = vpop.f32.mrb[125].mxu0 }
 0x2ff   : > { %v2504_v20 = vpop.f32.mrb[126].mxu0 }
 0x300   : > { %2580 = vst [vmem:[%s5234_s14 + $0xc0] sm:$0xff] %v2502_v10  ;;  %v2505_v22 = vadd.f32 %v2504_v20, %v2320_v7  ;;  %v2506_v6 = vpop.f32.mrb[127].mxu0 }
 0x302   : > { %2581 = vst [vmem:[%s5234_s14 + $0xc8] sm:$0xff] %v2505_v22 }
 0x308   : > { %v2324_v11 = vpop.f32.mrb[128].mxu1 }
 0x309   : > { %v2325_v2 = vadd.f32 %v5220_v59, %v2324_v11  ;;  %v2326_v44 = vpop.f32.mrb[129].mxu1 }
 0x30a   : > { %v2509_v52 = vpop.f32.mrb[128].mxu0  ;;  %v2327_v19 = vpop.f32.mrb[130].mxu1 }
 0x30b   : > { %v2510_v37 = vadd.f32 %v2509_v52, %v2325_v2  ;;  %v2511_v15 = vpop.f32.mrb[129].mxu0  ;;  %v2328_v16 = vadd.f32 %v5220_v59, %v2327_v19  ;;  %v2329_v18 = vpop.f32.mrb[131].mxu1 }
 0x30c   : > { %v2512_v17 = vpop.f32.mrb[130].mxu0 }
 0x30d   : > { %2582 = vst [vmem:[%s5234_s14 + $0xd0] sm:$0xff] %v2510_v37  ;;  %v2513_v46 = vadd.f32 %v2512_v17, %v2328_v16  ;;  %v2514_v36 = vpop.f32.mrb[131].mxu0 }
 0x30f   : > { %2583 = vst [vmem:[%s5234_s14 + $0xd8] sm:$0xff] %v2513_v46 }
 0x314   : > { %v2332_v31 = vpop.f32.mrb[132].mxu1 }
 0x315   : > { %v2333_v55 = vadd.f32 %v5220_v59, %v2332_v31  ;;  %v2334_v61 = vpop.f32.mrb[133].mxu1 }
 0x316   : > { %v2335_v51 = vpop.f32.mrb[134].mxu1 }
 0x317   : > { %v2517_v26 = vpop.f32.mrb[132].mxu0  ;;  %v2336_v43 = vadd.f32 %v5220_v59, %v2335_v51  ;;  %v2337_v23 = vpop.f32.mrb[135].mxu1 }
 0x318   : > { %v2518_v58 = vadd.f32 %v2517_v26, %v2333_v55  ;;  %v2519_v33 = vpop.f32.mrb[133].mxu0 }
 0x319   : > { %v2520_v32 = vpop.f32.mrb[134].mxu0 }
 0x31a   : > { %2584 = vst [vmem:[%s5234_s14 + $0xe0] sm:$0xff] %v2518_v58  ;;  %v2521_v4 = vadd.f32 %v2520_v32, %v2336_v43  ;;  %v2522_v42 = vpop.f32.mrb[135].mxu0 }
 0x31c   : > { %2585 = vst [vmem:[%s5234_s14 + $0xe8] sm:$0xff] %v2521_v4 }
 0x322   : > { %v2340_v14 = vpop.f32.mrb[136].mxu1 }
 0x323   : > { %v2341_v53 = vadd.f32 %v5220_v59, %v2340_v14  ;;  %v2342_v24 = vpop.f32.mrb[137].mxu1 }
 0x324   : > { %v2525_v45 = vpop.f32.mrb[136].mxu0  ;;  %v2343_v48 = vpop.f32.mrb[138].mxu1 }
 0x325   : > { %v2526_v54 = vadd.f32 %v2525_v45, %v2341_v53  ;;  %v2527_v56 = vpop.f32.mrb[137].mxu0  ;;  %v2344_v34 = vadd.f32 %v5220_v59, %v2343_v48  ;;  %v2345_v25 = vpop.f32.mrb[139].mxu1 }
 0x326   : > { %v2528_v28 = vpop.f32.mrb[138].mxu0 }
 0x327   : > { %2586 = vst [vmem:[%s5234_s14 + $0xf0] sm:$0xff] %v2526_v54  ;;  %v2529_v39 = vadd.f32 %v2528_v28, %v2344_v34  ;;  %v2530_v5 = vpop.f32.mrb[139].mxu0 }
 0x329   : > { %2587 = vst [vmem:[%s5234_s14 + $0xf8] sm:$0xff] %v2529_v39 }
 0x32a   : > { %v2348_v8 = vpop.f32.mrb[140].mxu1 }
 0x32b   : > { %v2349_v50 = vadd.f32 %v5220_v59, %v2348_v8  ;;  %v2350_v40 = vpop.f32.mrb[141].mxu1 }
 0x32c   : > { %v2533_v29 = vpop.f32.mrb[140].mxu0  ;;  %v2351_v57 = vpop.f32.mrb[142].mxu1 }
 0x32d   : > { %v2534_v21 = vadd.f32 %v2533_v29, %v2349_v50  ;;  %v2535_v13 = vpop.f32.mrb[141].mxu0  ;;  %v2352_v30 = vadd.f32 %v5220_v59, %v2351_v57  ;;  %v2353_v3 = vpop.f32.mrb[143].mxu1 }
 0x32e   : > { %v2536_v60 = vpop.f32.mrb[142].mxu0 }
 0x32f   : > { %2588 = vst [vmem:[%s5234_s14 + $0x100] sm:$0xff] %v2534_v21  ;;  %v2537_v1 = vadd.f32 %v2536_v60, %v2352_v30  ;;  %v2538_v0 = vpop.f32.mrb[143].mxu0 }
 0x331   : > { %2589 = vst [vmem:[%s5234_s14 + $0x108] sm:$0xff] %v2537_v1 }
 0x332   : > { %v2356_v49 = vpop.f32.mrb[144].mxu1 }
 0x333   : > { %v2357_v27 = vadd.f32 %v5220_v59, %v2356_v49  ;;  %v2358_v38 = vpop.f32.mrb[145].mxu1 }
 0x334   : > { %v2541_v41 = vpop.f32.mrb[144].mxu0  ;;  %v2359_v62 = vpop.f32.mrb[146].mxu1 }
 0x335   : > { %v2542_v63 = vadd.f32 %v2541_v41, %v2357_v27  ;;  %v2543_v9 = vpop.f32.mrb[145].mxu0  ;;  %v2360_v47 = vadd.f32 %v5220_v59, %v2359_v62  ;;  %v2361_v7 = vpop.f32.mrb[147].mxu1 }
 0x336   : > { %v2544_v35 = vpop.f32.mrb[146].mxu0 }
 0x337   : > { %2590 = vst [vmem:[%s5234_s14 + $0x110] sm:$0xff] %v2542_v63  ;;  %v2545_v10 = vadd.f32 %v2544_v35, %v2360_v47  ;;  %v2546_v12 = vpop.f32.mrb[147].mxu0 }
 0x339   : > { %2591 = vst [vmem:[%s5234_s14 + $0x118] sm:$0xff] %v2545_v10 }
 0x33a   : > { %v2364_v20 = vpop.f32.mrb[148].mxu1 }
 0x33b   : > { %v2365_v22 = vadd.f32 %v5220_v59, %v2364_v20  ;;  %v2366_v6 = vpop.f32.mrb[149].mxu1 }
 0x33c   : > { %v2549_v11 = vpop.f32.mrb[148].mxu0  ;;  %v2367_v2 = vpop.f32.mrb[150].mxu1 }
 0x33d   : > { %v2550_v44 = vadd.f32 %v2549_v11, %v2365_v22  ;;  %v2551_v52 = vpop.f32.mrb[149].mxu0  ;;  %v2368_v19 = vadd.f32 %v5220_v59, %v2367_v2  ;;  %v2369_v37 = vpop.f32.mrb[151].mxu1 }
 0x33e   : > { %v2552_v15 = vpop.f32.mrb[150].mxu0 }
 0x33f   : > { %2592 = vst [vmem:[%s5234_s14 + $0x120] sm:$0xff] %v2550_v44  ;;  %v2553_v16 = vadd.f32 %v2552_v15, %v2368_v19  ;;  %v2554_v18 = vpop.f32.mrb[151].mxu0 }
 0x341   : > { %2593 = vst [vmem:[%s5234_s14 + $0x128] sm:$0xff] %v2553_v16 }
 0x342   : > { %3453 = shalt.err (!%p3450_p2)
}
 0x343   : > { %s3454_s24 = scalar_lea.hbm %s5313_s12, 4864  ;;  %s3458_s8 = scalar_lea.hbm %s5366_s5, 9728 }
 0x344   : > { %p3455_p13 = scmp.ne.s32.totalorder %s5313_s12, %s3454_s24  ;;  %p3459_p4 = scmp.lt.u32.totalorder %s5313_s12, %s5366_s5 }
 0x345   : > { %p3460_p7 = scmp.lt.u32.totalorder %s3458_s8, %s3454_s24  ;;  %p3462_p11 = scmp.lt.u32.totalorder %s3454_s24, %s5313_s12 }
 0x346   : > { %p3456_p6 = pnand %p3455_p13, %p5506_p0 }
 0x347   : > { %p3461_p8 = por %p3460_p7, %p3459_p4 }
 0x348   : > { %p3457_p10 = pneg %p3456_p6 }
 0x349   : > { %p3463_p1 = por %p3462_p11, %p3461_p8 }
 0x34b   : > { %p3464_p3 = pnand %p3463_p1, %p3457_p10 }
 0x34d   : > { %3467 = shalt.err (!%p3464_p3)
}
 0x34e   : > { %s3521_s15 = smov 128   ;;  %s3522_s7 = smov 8  }
 0x34f   : > { %2887 = dma.vmem_to_hbm [thread:$0]  (%p5506_p0), %s5316_s30, 4864, %s5313_s12, %s2595_s22, %s3521_s15, %s3521_s15, %s3522_s7  }
 0x350 PF: > { %s2623_s28 = sand.u32 1, %s3498_s18   ;;  %p5507_p5 = scmp.ne.s32.totalorder %s5372_s25, 0 }
 0x351   : > { %p5508_p9 = scmp.ge.s32.totalorder %s3510_s21, 2  ;;  %s2624_s17 = scalar_lea.sflag [#allocation4], %s2623_s28 }
 0x353   : > { %p2901_p12 = pnand %p5508_p9, %p5507_p5 }
 0x355   : > { %3493 = dma.done.wait (!%p2901_p12), %s2624_s17, 4864  }
 0x356   : > { %3495 = vsyncadd (!%p2901_p12), %s2624_s17, 4294962432  ;;  %p19_p2 = scmp.ge.s32.totalorder %s3666_s16, 4   ;;  %s5509_s18 = smov %s3502_s19 }
 0x357   : > { %s5510_s19 = smov %s3506_s20  ;;  %s5511_s20 = smov %s3675_s27 }
 0x358   : > { %s5512_s21 = smov %s3666_s16  ;;  %21 = sbr.rel (!%p19_p2) target bundleno = 6 (0x6), region = 93 }
 0x35f   :  { %2629 = vsyncpa [#allocation3], 1 }
 0x360   :  { %2631 = vsyncpa [#allocation3 + $0x1], 1 }
 0x361   :  { %2632 = vsyncpa [#allocation6], 1 }
 0x362   :  { %2633 = vsyncpa [#allocation4], 1 }
 0x363   :  { %2635 = vsyncpa [#allocation4 + $0x1], 1 }

</bundles_post_ra>
